<compile_context>
chip_gen: v5e
topology: v5e:2x2
jax: 0.10.0
libtpu: 0.0.40
codegen_flags: <defaults>
</compile_context>

<pallas_src>
import functools

import jax
import jax.numpy as jnp
from jax.experimental import pallas as pl
from jax.experimental.pallas import tpu as pltpu


def _textrnn_att_kernel(*refs, seq_len, batch, hidden, num_layers):
    """Fused forward pass.

    refs layout:
      [x_fwd, x_rev,
       (w_x_f, w_x_b, w_h, b) * num_layers,
       w_attn, fc_w, fc_b,
       out]
    Row ordering of x_fwd: row t*B + b = embedded token at time t, batch b.
    Row ordering of x_rev: row k*B + b = embedded token at time S-1-k, batch b.
    """
    S, B, H = seq_len, batch, hidden
    H2, H4, H6, H8 = 2 * H, 4 * H, 6 * H, 8 * H
    f32, bf16 = jnp.float32, jnp.bfloat16

    xf_ref, xr_ref = refs[0], refs[1]
    lstm_refs = refs[2:2 + 4 * num_layers]
    wattn_ref, fcw_ref, fcb_ref = refs[2 + 4 * num_layers:2 + 4 * num_layers + 3]
    out_ref = refs[2 + 4 * num_layers + 3]

    x_fwd = xf_ref[...]          # (S*B, Din) bf16
    x_rev = xr_ref[...]          # (S*B, Din) bf16

    out_time = None
    for l in range(num_layers):
        wxf_ref, wxb_ref, wh_ref, b_ref = lstm_refs[4 * l:4 * l + 4]
        w_h = wh_ref[...]        # (2H, 8H) bf16, block-diagonal, gate-paired cols

        # Hoisted input projection for BOTH directions in gate-paired layout
        # [i_f i_b f_f f_b g_f g_b o_f o_b]; row tile k holds forward gates of
        # time k and backward gates of time S-1-k.
        gx = (jnp.dot(x_fwd, wxf_ref[...], preferred_element_type=f32)
              + jnp.dot(x_rev, wxb_ref[...], preferred_element_type=f32)
              + b_ref[...])                                    # (S*B, 8H) f32

        h = jnp.zeros((B, H2), f32)      # [h_f | h_b]
        c = jnp.zeros((B, H2), f32)      # [c_f | c_b]
        hs = []
        for k in range(S):               # fully unrolled (S small)
            g = gx[k * B:(k + 1) * B, :] + jnp.dot(
                h.astype(bf16), w_h, preferred_element_type=f32)   # (B, 8H)
            sig = jax.nn.sigmoid(g)                  # i|f|o for both dirs, 1 pass
            gg = jnp.tanh(g[:, H4:H6])               # [g_f | g_b], 1 pass
            c = sig[:, H2:H4] * c + sig[:, 0:H2] * gg
            h = sig[:, H6:H8] * jnp.tanh(c)
            hs.append(h)

        # Layer output at time t = [h_fwd(t) | h_bwd(t)]; the backward state of
        # time t was produced at step S-1-t.
        out_time = [
            jnp.concatenate([hs[t][:, 0:H], hs[S - 1 - t][:, H:H2]], axis=1)
            for t in range(S)
        ]
        if l + 1 < num_layers:
            # TODO(synk): inter-layer dropout omitted (eval-mode semantics).
            x_fwd = jnp.concatenate(out_time, axis=0).astype(bf16)       # time order
            x_rev = jnp.concatenate(out_time[::-1], axis=0).astype(bf16)  # reversed

    # ---- attention: softmax over time per batch element -------------------
    x_full = jnp.concatenate(out_time, axis=0)                 # (S*B, 2H) f32
    m = jnp.tanh(x_full)
    sc = jnp.sum(m * wattn_ref[...], axis=1, keepdims=True)    # (S*B, 1)
    sc_t = [sc[t * B:(t + 1) * B, :] for t in range(S)]        # S x (B, 1)
    smax = sc_t[0]
    for t in range(1, S):
        smax = jnp.maximum(smax, sc_t[t])
    e_t = [jnp.exp(sc_t[t] - smax) for t in range(S)]
    den = e_t[0]
    for t in range(1, S):
        den = den + e_t[t]
    pooled = e_t[0] * out_time[0]
    for t in range(1, S):
        pooled = pooled + e_t[t] * out_time[t]
    pooled = pooled * (1.0 / den)                              # (B, 2H)

    # ---- fused fc1 @ fc2 (no activation between them in the reference) ----
    y = jnp.dot(pooled.astype(bf16), fcw_ref[...],
                preferred_element_type=f32) + fcb_ref[...]
    out_ref[...] = y


def _place_gate_blocks(w_nat, direction, hidden):
    """w_nat: (X, 4H) with columns [i|f|g|o] (PyTorch W.T).  Returns (X, 8H) in
    the gate-paired layout [i_f i_b f_f f_b g_f g_b o_f o_b], filling only the
    given direction's slots (0=fwd, 1=bwd), zeros elsewhere."""
    H = hidden
    out = jnp.zeros((w_nat.shape[0], 8 * H), w_nat.dtype)
    for gate in range(4):
        col = (2 * gate + direction) * H
        out = out.at[:, col:col + H].set(w_nat[:, gate * H:(gate + 1) * H])
    return out


def prepare_params(raw, hidden):
    """Convert PyTorch-layout parameters into the kernel's fused/permuted layout."""
    H = hidden
    bf16, f32 = jnp.bfloat16, jnp.float32
    lstm = []
    for layer in raw["lstm"]:
        wih_f, whh_f, bih_f, bhh_f = layer["fwd"]
        wih_b, whh_b, bih_b, bhh_b = layer["bwd"]
        w_x_f = _place_gate_blocks(wih_f.T, 0, H).astype(bf16)          # (Din, 8H)
        w_x_b = _place_gate_blocks(wih_b.T, 1, H).astype(bf16)          # (Din, 8H)
        w_h = jnp.concatenate(
            [_place_gate_blocks(whh_f.T, 0, H),
             _place_gate_blocks(whh_b.T, 1, H)], axis=0).astype(bf16)   # (2H, 8H)
        b = (_place_gate_blocks((bih_f + bhh_f).reshape(1, -1), 0, H)
             + _place_gate_blocks((bih_b + bhh_b).reshape(1, -1), 1, H)
             ).astype(f32)                                              # (1, 8H)
        lstm.append({"w_x_f": w_x_f, "w_x_b": w_x_b, "w_h": w_h, "b": b})

    # Fuse fc1 and fc2 offline (linear -> linear, no activation in between).
    fc_w = (raw["fc1_w"].T @ raw["fc2_w"].T).astype(bf16)               # (2H, C)
    fc_b = (raw["fc1_b"].reshape(1, -1) @ raw["fc2_w"].T
            + raw["fc2_b"].reshape(1, -1)).astype(f32)                  # (1, C)

    return {
        "embedding": raw["embedding"].astype(f32),
        "lstm": lstm,
        "w_attn": raw["w"].reshape(1, -1).astype(f32),                  # (1, 2H)
        "fc_w": fc_w,
        "fc_b": fc_b,
    }


def model_forward(text, params):
    """text: (batch, seq) int32 token ids -> (batch, class_num) logits."""
    B, S = text.shape
    num_layers = len(params["lstm"])
    H = params["lstm"][0]["w_h"].shape[0] // 2
    C = params["fc_w"].shape[1]

    # Embedding gather (plain JAX glue), time-major flat layout (row = t*B + b),
    # plus a time-reversed copy feeding the backward direction's input matmul.
    emb = jnp.take(params["embedding"], text, axis=0)          # (B, S, E)
    emb = jnp.transpose(emb, (1, 0, 2))                        # (S, B, E)
    x_fwd = emb.reshape(S * B, -1).astype(jnp.bfloat16)
    x_rev = emb[::-1].reshape(S * B, -1).astype(jnp.bfloat16)

    flat = []
    for layer in params["lstm"]:
        flat += [layer["w_x_f"], layer["w_x_b"], layer["w_h"], layer["b"]]

    kernel = functools.partial(_textrnn_att_kernel, seq_len=S, batch=B,
                               hidden=H, num_layers=num_layers)
    vspec = pl.BlockSpec(memory_space=pltpu.MemorySpace.VMEM)
    n_in = 2 + len(flat) + 3

    return pl.pallas_call(
        kernel,
        out_shape=jax.ShapeDtypeStruct((B, C), jnp.float32),
        in_specs=[vspec] * n_in,
        out_specs=vspec,
    )(x_fwd, x_rev, *flat, params["w_attn"], params["fc_w"], params["fc_b"])


if __name__ == "__main__":
    # Small config consistent with the module.
    vocab, embed_dim = 32, 16
    hidden, num_layers = 32, 2
    hidden2, n_class = 16, 4
    seq, batch = 8, 2

    # Deterministic example input.
    text = jax.random.randint(jax.random.PRNGKey(0), (batch, seq), 0, vocab,
                              dtype=jnp.int32)

    # Deterministic parameter init in PyTorch layout, then converted.
    keys = iter(jax.random.split(jax.random.PRNGKey(42), 64))

    def rnd(shape, scale=0.1):
        return scale * jax.random.normal(next(keys), shape, dtype=jnp.float32)

    raw_layers = []
    in_dim = embed_dim
    for _ in range(num_layers):
        dirs = []
        for _ in range(2):  # forward, backward
            w_ih = rnd((4 * hidden, in_dim))       # PyTorch (4H, Din)
            w_hh = rnd((4 * hidden, hidden))       # PyTorch (4H, H)
            b_ih = rnd((4 * hidden,))
            b_hh = rnd((4 * hidden,))
            dirs.append((w_ih, w_hh, b_ih, b_hh))
        raw_layers.append({"fwd": dirs[0], "bwd": dirs[1]})
        in_dim = 2 * hidden

    raw = {
        "embedding": rnd((vocab, embed_dim), 1.0),
        "lstm": raw_layers,
        "w": rnd((2 * hidden,)),
        "fc1_w": rnd((hidden2, 2 * hidden)),
        "fc1_b": rnd((hidden2,)),
        "fc2_w": rnd((n_class, hidden2)),
        "fc2_b": rnd((n_class,)),
    }
    params = prepare_params(raw, hidden)

    out = jax.jit(model_forward)(text, params)
    out = jax.block_until_ready(out)
    assert out.shape == (batch, n_class)
    print("KERNEL_OK")
</pallas_src>

<mosaic_0001>
module attributes {stable_mosaic.version = 11 : i64} {
  func.func @_textrnn_att_kernel(%arg0: memref<16x16xbf16, #tpu.memory_space<vmem>>, %arg1: memref<16x16xbf16, #tpu.memory_space<vmem>>, %arg2: memref<16x256xbf16, #tpu.memory_space<vmem>>, %arg3: memref<16x256xbf16, #tpu.memory_space<vmem>>, %arg4: memref<64x256xbf16, #tpu.memory_space<vmem>>, %arg5: memref<1x256xf32, #tpu.memory_space<vmem>>, %arg6: memref<64x256xbf16, #tpu.memory_space<vmem>>, %arg7: memref<64x256xbf16, #tpu.memory_space<vmem>>, %arg8: memref<64x256xbf16, #tpu.memory_space<vmem>>, %arg9: memref<1x256xf32, #tpu.memory_space<vmem>>, %arg10: memref<1x64xf32, #tpu.memory_space<vmem>>, %arg11: memref<64x4xbf16, #tpu.memory_space<vmem>>, %arg12: memref<1x4xf32, #tpu.memory_space<vmem>>, %arg13: memref<2x4xf32, #tpu.memory_space<vmem>>) attributes {dimension_semantics = [], scalar_prefetch = 0 : i64, scratch_operands = 0 : i64, tpu.core_type = #tpu.core_type<tc>} {
    %c0 = arith.constant 0 : index
    %c0_0 = arith.constant 0 : index
    %0 = vector.load %arg0[%c0, %c0_0] : memref<16x16xbf16, #tpu.memory_space<vmem>>, vector<16x16xbf16>
    %c0_1 = arith.constant 0 : index
    %c0_2 = arith.constant 0 : index
    %1 = vector.load %arg1[%c0_1, %c0_2] : memref<16x16xbf16, #tpu.memory_space<vmem>>, vector<16x16xbf16>
    %c0_3 = arith.constant 0 : index
    %c0_4 = arith.constant 0 : index
    %2 = vector.load %arg4[%c0_3, %c0_4] : memref<64x256xbf16, #tpu.memory_space<vmem>>, vector<64x256xbf16>
    %c0_5 = arith.constant 0 : index
    %c0_6 = arith.constant 0 : index
    %3 = vector.load %arg2[%c0_5, %c0_6] : memref<16x256xbf16, #tpu.memory_space<vmem>>, vector<16x256xbf16>
    %cst = arith.constant dense<0.000000e+00> : vector<16x256xf32>
    %4 = tpu.matmul %0, %3, %cst {dimension_numbers = #tpu.dot_dimension_numbers<[1], [0], [0], [1], [0, 0, 1, 1], [], []>} : vector<16x16xbf16>, vector<16x256xbf16>, vector<16x256xf32> -> vector<16x256xf32>
    %c0_7 = arith.constant 0 : index
    %c0_8 = arith.constant 0 : index
    %5 = vector.load %arg3[%c0_7, %c0_8] : memref<16x256xbf16, #tpu.memory_space<vmem>>, vector<16x256xbf16>
    %cst_9 = arith.constant dense<0.000000e+00> : vector<16x256xf32>
    %6 = tpu.matmul %1, %5, %cst_9 {dimension_numbers = #tpu.dot_dimension_numbers<[1], [0], [0], [1], [0, 0, 1, 1], [], []>} : vector<16x16xbf16>, vector<16x256xbf16>, vector<16x256xf32> -> vector<16x256xf32>
    %7 = arith.addf %4, %6 : vector<16x256xf32>
    %c0_10 = arith.constant 0 : index
    %c0_11 = arith.constant 0 : index
    %8 = vector.load %arg5[%c0_10, %c0_11] : memref<1x256xf32, #tpu.memory_space<vmem>>, vector<1x256xf32>
    %9 = vector.broadcast %8 : vector<1x256xf32> to vector<16x256xf32>
    %10 = arith.addf %7, %9 : vector<16x256xf32>
    %cst_12 = arith.constant 0.000000e+00 : f32
    %11 = vector.broadcast %cst_12 : f32 to vector<2x64xf32>
    %cst_13 = arith.constant 0.000000e+00 : f32
    %12 = vector.broadcast %cst_13 : f32 to vector<2x64xf32>
    %13 = vector.extract_strided_slice %10 {offsets = [0, 0], sizes = [2, 256], strides = [1, 1]} : vector<16x256xf32> to vector<2x256xf32>
    %14 = arith.truncf %11 : vector<2x64xf32> to vector<2x64xbf16>
    %cst_14 = arith.constant dense<0.000000e+00> : vector<2x256xf32>
    %15 = tpu.matmul %14, %2, %cst_14 {dimension_numbers = #tpu.dot_dimension_numbers<[1], [0], [0], [1], [0, 0, 1, 1], [], []>} : vector<2x64xbf16>, vector<64x256xbf16>, vector<2x256xf32> -> vector<2x256xf32>
    %16 = arith.addf %13, %15 : vector<2x256xf32>
    %17 = arith.negf %16 : vector<2x256xf32>
    %18 = math.exp %17 : vector<2x256xf32>
    %cst_15 = arith.constant 1.000000e+00 : f32
    %19 = vector.broadcast %cst_15 : f32 to vector<2x256xf32>
    %20 = arith.addf %19, %18 : vector<2x256xf32>
    %21 = arith.divf %19, %20 : vector<2x256xf32>
    %22 = vector.extract_strided_slice %16 {offsets = [0, 128], sizes = [2, 64], strides = [1, 1]} : vector<2x256xf32> to vector<2x64xf32>
    %23 = math.tanh %22 : vector<2x64xf32>
    %24 = vector.extract_strided_slice %21 {offsets = [0, 64], sizes = [2, 64], strides = [1, 1]} : vector<2x256xf32> to vector<2x64xf32>
    %25 = arith.mulf %24, %12 : vector<2x64xf32>
    %26 = vector.extract_strided_slice %21 {offsets = [0, 0], sizes = [2, 64], strides = [1, 1]} : vector<2x256xf32> to vector<2x64xf32>
    %27 = arith.mulf %26, %23 : vector<2x64xf32>
    %28 = arith.addf %25, %27 : vector<2x64xf32>
    %29 = vector.extract_strided_slice %21 {offsets = [0, 192], sizes = [2, 64], strides = [1, 1]} : vector<2x256xf32> to vector<2x64xf32>
    %30 = math.tanh %28 : vector<2x64xf32>
    %31 = arith.mulf %29, %30 : vector<2x64xf32>
    %32 = vector.extract_strided_slice %10 {offsets = [2, 0], sizes = [2, 256], strides = [1, 1]} : vector<16x256xf32> to vector<2x256xf32>
    %33 = arith.truncf %31 : vector<2x64xf32> to vector<2x64xbf16>
    %cst_16 = arith.constant dense<0.000000e+00> : vector<2x256xf32>
    %34 = tpu.matmul %33, %2, %cst_16 {dimension_numbers = #tpu.dot_dimension_numbers<[1], [0], [0], [1], [0, 0, 1, 1], [], []>} : vector<2x64xbf16>, vector<64x256xbf16>, vector<2x256xf32> -> vector<2x256xf32>
    %35 = arith.addf %32, %34 : vector<2x256xf32>
    %36 = arith.negf %35 : vector<2x256xf32>
    %37 = math.exp %36 : vector<2x256xf32>
    %cst_17 = arith.constant 1.000000e+00 : f32
    %38 = vector.broadcast %cst_17 : f32 to vector<2x256xf32>
    %39 = arith.addf %38, %37 : vector<2x256xf32>
    %40 = arith.divf %38, %39 : vector<2x256xf32>
    %41 = vector.extract_strided_slice %35 {offsets = [0, 128], sizes = [2, 64], strides = [1, 1]} : vector<2x256xf32> to vector<2x64xf32>
    %42 = math.tanh %41 : vector<2x64xf32>
    %43 = vector.extract_strided_slice %40 {offsets = [0, 64], sizes = [2, 64], strides = [1, 1]} : vector<2x256xf32> to vector<2x64xf32>
    %44 = arith.mulf %43, %28 : vector<2x64xf32>
    %45 = vector.extract_strided_slice %40 {offsets = [0, 0], sizes = [2, 64], strides = [1, 1]} : vector<2x256xf32> to vector<2x64xf32>
    %46 = arith.mulf %45, %42 : vector<2x64xf32>
    %47 = arith.addf %44, %46 : vector<2x64xf32>
    %48 = vector.extract_strided_slice %40 {offsets = [0, 192], sizes = [2, 64], strides = [1, 1]} : vector<2x256xf32> to vector<2x64xf32>
    %49 = math.tanh %47 : vector<2x64xf32>
    %50 = arith.mulf %48, %49 : vector<2x64xf32>
    %51 = vector.extract_strided_slice %10 {offsets = [4, 0], sizes = [2, 256], strides = [1, 1]} : vector<16x256xf32> to vector<2x256xf32>
    %52 = arith.truncf %50 : vector<2x64xf32> to vector<2x64xbf16>
    %cst_18 = arith.constant dense<0.000000e+00> : vector<2x256xf32>
    %53 = tpu.matmul %52, %2, %cst_18 {dimension_numbers = #tpu.dot_dimension_numbers<[1], [0], [0], [1], [0, 0, 1, 1], [], []>} : vector<2x64xbf16>, vector<64x256xbf16>, vector<2x256xf32> -> vector<2x256xf32>
    %54 = arith.addf %51, %53 : vector<2x256xf32>
    %55 = arith.negf %54 : vector<2x256xf32>
    %56 = math.exp %55 : vector<2x256xf32>
    %cst_19 = arith.constant 1.000000e+00 : f32
    %57 = vector.broadcast %cst_19 : f32 to vector<2x256xf32>
    %58 = arith.addf %57, %56 : vector<2x256xf32>
    %59 = arith.divf %57, %58 : vector<2x256xf32>
    %60 = vector.extract_strided_slice %54 {offsets = [0, 128], sizes = [2, 64], strides = [1, 1]} : vector<2x256xf32> to vector<2x64xf32>
    %61 = math.tanh %60 : vector<2x64xf32>
    %62 = vector.extract_strided_slice %59 {offsets = [0, 64], sizes = [2, 64], strides = [1, 1]} : vector<2x256xf32> to vector<2x64xf32>
    %63 = arith.mulf %62, %47 : vector<2x64xf32>
    %64 = vector.extract_strided_slice %59 {offsets = [0, 0], sizes = [2, 64], strides = [1, 1]} : vector<2x256xf32> to vector<2x64xf32>
    %65 = arith.mulf %64, %61 : vector<2x64xf32>
    %66 = arith.addf %63, %65 : vector<2x64xf32>
    %67 = vector.extract_strided_slice %59 {offsets = [0, 192], sizes = [2, 64], strides = [1, 1]} : vector<2x256xf32> to vector<2x64xf32>
    %68 = math.tanh %66 : vector<2x64xf32>
    %69 = arith.mulf %67, %68 : vector<2x64xf32>
    %70 = vector.extract_strided_slice %10 {offsets = [6, 0], sizes = [2, 256], strides = [1, 1]} : vector<16x256xf32> to vector<2x256xf32>
    %71 = arith.truncf %69 : vector<2x64xf32> to vector<2x64xbf16>
    %cst_20 = arith.constant dense<0.000000e+00> : vector<2x256xf32>
    %72 = tpu.matmul %71, %2, %cst_20 {dimension_numbers = #tpu.dot_dimension_numbers<[1], [0], [0], [1], [0, 0, 1, 1], [], []>} : vector<2x64xbf16>, vector<64x256xbf16>, vector<2x256xf32> -> vector<2x256xf32>
    %73 = arith.addf %70, %72 : vector<2x256xf32>
    %74 = arith.negf %73 : vector<2x256xf32>
    %75 = math.exp %74 : vector<2x256xf32>
    %cst_21 = arith.constant 1.000000e+00 : f32
    %76 = vector.broadcast %cst_21 : f32 to vector<2x256xf32>
    %77 = arith.addf %76, %75 : vector<2x256xf32>
    %78 = arith.divf %76, %77 : vector<2x256xf32>
    %79 = vector.extract_strided_slice %73 {offsets = [0, 128], sizes = [2, 64], strides = [1, 1]} : vector<2x256xf32> to vector<2x64xf32>
    %80 = math.tanh %79 : vector<2x64xf32>
    %81 = vector.extract_strided_slice %78 {offsets = [0, 64], sizes = [2, 64], strides = [1, 1]} : vector<2x256xf32> to vector<2x64xf32>
    %82 = arith.mulf %81, %66 : vector<2x64xf32>
    %83 = vector.extract_strided_slice %78 {offsets = [0, 0], sizes = [2, 64], strides = [1, 1]} : vector<2x256xf32> to vector<2x64xf32>
    %84 = arith.mulf %83, %80 : vector<2x64xf32>
    %85 = arith.addf %82, %84 : vector<2x64xf32>
    %86 = vector.extract_strided_slice %78 {offsets = [0, 192], sizes = [2, 64], strides = [1, 1]} : vector<2x256xf32> to vector<2x64xf32>
    %87 = math.tanh %85 : vector<2x64xf32>
    %88 = arith.mulf %86, %87 : vector<2x64xf32>
    %89 = vector.extract_strided_slice %10 {offsets = [8, 0], sizes = [2, 256], strides = [1, 1]} : vector<16x256xf32> to vector<2x256xf32>
    %90 = arith.truncf %88 : vector<2x64xf32> to vector<2x64xbf16>
    %cst_22 = arith.constant dense<0.000000e+00> : vector<2x256xf32>
    %91 = tpu.matmul %90, %2, %cst_22 {dimension_numbers = #tpu.dot_dimension_numbers<[1], [0], [0], [1], [0, 0, 1, 1], [], []>} : vector<2x64xbf16>, vector<64x256xbf16>, vector<2x256xf32> -> vector<2x256xf32>
    %92 = arith.addf %89, %91 : vector<2x256xf32>
    %93 = arith.negf %92 : vector<2x256xf32>
    %94 = math.exp %93 : vector<2x256xf32>
    %cst_23 = arith.constant 1.000000e+00 : f32
    %95 = vector.broadcast %cst_23 : f32 to vector<2x256xf32>
    %96 = arith.addf %95, %94 : vector<2x256xf32>
    %97 = arith.divf %95, %96 : vector<2x256xf32>
    %98 = vector.extract_strided_slice %92 {offsets = [0, 128], sizes = [2, 64], strides = [1, 1]} : vector<2x256xf32> to vector<2x64xf32>
    %99 = math.tanh %98 : vector<2x64xf32>
    %100 = vector.extract_strided_slice %97 {offsets = [0, 64], sizes = [2, 64], strides = [1, 1]} : vector<2x256xf32> to vector<2x64xf32>
    %101 = arith.mulf %100, %85 : vector<2x64xf32>
    %102 = vector.extract_strided_slice %97 {offsets = [0, 0], sizes = [2, 64], strides = [1, 1]} : vector<2x256xf32> to vector<2x64xf32>
    %103 = arith.mulf %102, %99 : vector<2x64xf32>
    %104 = arith.addf %101, %103 : vector<2x64xf32>
    %105 = vector.extract_strided_slice %97 {offsets = [0, 192], sizes = [2, 64], strides = [1, 1]} : vector<2x256xf32> to vector<2x64xf32>
    %106 = math.tanh %104 : vector<2x64xf32>
    %107 = arith.mulf %105, %106 : vector<2x64xf32>
    %108 = vector.extract_strided_slice %10 {offsets = [10, 0], sizes = [2, 256], strides = [1, 1]} : vector<16x256xf32> to vector<2x256xf32>
    %109 = arith.truncf %107 : vector<2x64xf32> to vector<2x64xbf16>
    %cst_24 = arith.constant dense<0.000000e+00> : vector<2x256xf32>
    %110 = tpu.matmul %109, %2, %cst_24 {dimension_numbers = #tpu.dot_dimension_numbers<[1], [0], [0], [1], [0, 0, 1, 1], [], []>} : vector<2x64xbf16>, vector<64x256xbf16>, vector<2x256xf32> -> vector<2x256xf32>
    %111 = arith.addf %108, %110 : vector<2x256xf32>
    %112 = arith.negf %111 : vector<2x256xf32>
    %113 = math.exp %112 : vector<2x256xf32>
    %cst_25 = arith.constant 1.000000e+00 : f32
    %114 = vector.broadcast %cst_25 : f32 to vector<2x256xf32>
    %115 = arith.addf %114, %113 : vector<2x256xf32>
    %116 = arith.divf %114, %115 : vector<2x256xf32>
    %117 = vector.extract_strided_slice %111 {offsets = [0, 128], sizes = [2, 64], strides = [1, 1]} : vector<2x256xf32> to vector<2x64xf32>
    %118 = math.tanh %117 : vector<2x64xf32>
    %119 = vector.extract_strided_slice %116 {offsets = [0, 64], sizes = [2, 64], strides = [1, 1]} : vector<2x256xf32> to vector<2x64xf32>
    %120 = arith.mulf %119, %104 : vector<2x64xf32>
    %121 = vector.extract_strided_slice %116 {offsets = [0, 0], sizes = [2, 64], strides = [1, 1]} : vector<2x256xf32> to vector<2x64xf32>
    %122 = arith.mulf %121, %118 : vector<2x64xf32>
    %123 = arith.addf %120, %122 : vector<2x64xf32>
    %124 = vector.extract_strided_slice %116 {offsets = [0, 192], sizes = [2, 64], strides = [1, 1]} : vector<2x256xf32> to vector<2x64xf32>
    %125 = math.tanh %123 : vector<2x64xf32>
    %126 = arith.mulf %124, %125 : vector<2x64xf32>
    %127 = vector.extract_strided_slice %10 {offsets = [12, 0], sizes = [2, 256], strides = [1, 1]} : vector<16x256xf32> to vector<2x256xf32>
    %128 = arith.truncf %126 : vector<2x64xf32> to vector<2x64xbf16>
    %cst_26 = arith.constant dense<0.000000e+00> : vector<2x256xf32>
    %129 = tpu.matmul %128, %2, %cst_26 {dimension_numbers = #tpu.dot_dimension_numbers<[1], [0], [0], [1], [0, 0, 1, 1], [], []>} : vector<2x64xbf16>, vector<64x256xbf16>, vector<2x256xf32> -> vector<2x256xf32>
    %130 = arith.addf %127, %129 : vector<2x256xf32>
    %131 = arith.negf %130 : vector<2x256xf32>
    %132 = math.exp %131 : vector<2x256xf32>
    %cst_27 = arith.constant 1.000000e+00 : f32
    %133 = vector.broadcast %cst_27 : f32 to vector<2x256xf32>
    %134 = arith.addf %133, %132 : vector<2x256xf32>
    %135 = arith.divf %133, %134 : vector<2x256xf32>
    %136 = vector.extract_strided_slice %130 {offsets = [0, 128], sizes = [2, 64], strides = [1, 1]} : vector<2x256xf32> to vector<2x64xf32>
    %137 = math.tanh %136 : vector<2x64xf32>
    %138 = vector.extract_strided_slice %135 {offsets = [0, 64], sizes = [2, 64], strides = [1, 1]} : vector<2x256xf32> to vector<2x64xf32>
    %139 = arith.mulf %138, %123 : vector<2x64xf32>
    %140 = vector.extract_strided_slice %135 {offsets = [0, 0], sizes = [2, 64], strides = [1, 1]} : vector<2x256xf32> to vector<2x64xf32>
    %141 = arith.mulf %140, %137 : vector<2x64xf32>
    %142 = arith.addf %139, %141 : vector<2x64xf32>
    %143 = vector.extract_strided_slice %135 {offsets = [0, 192], sizes = [2, 64], strides = [1, 1]} : vector<2x256xf32> to vector<2x64xf32>
    %144 = math.tanh %142 : vector<2x64xf32>
    %145 = arith.mulf %143, %144 : vector<2x64xf32>
    %146 = vector.extract_strided_slice %10 {offsets = [14, 0], sizes = [2, 256], strides = [1, 1]} : vector<16x256xf32> to vector<2x256xf32>
    %147 = arith.truncf %145 : vector<2x64xf32> to vector<2x64xbf16>
    %cst_28 = arith.constant dense<0.000000e+00> : vector<2x256xf32>
    %148 = tpu.matmul %147, %2, %cst_28 {dimension_numbers = #tpu.dot_dimension_numbers<[1], [0], [0], [1], [0, 0, 1, 1], [], []>} : vector<2x64xbf16>, vector<64x256xbf16>, vector<2x256xf32> -> vector<2x256xf32>
    %149 = arith.addf %146, %148 : vector<2x256xf32>
    %150 = arith.negf %149 : vector<2x256xf32>
    %151 = math.exp %150 : vector<2x256xf32>
    %cst_29 = arith.constant 1.000000e+00 : f32
    %152 = vector.broadcast %cst_29 : f32 to vector<2x256xf32>
    %153 = arith.addf %152, %151 : vector<2x256xf32>
    %154 = arith.divf %152, %153 : vector<2x256xf32>
    %155 = vector.extract_strided_slice %149 {offsets = [0, 128], sizes = [2, 64], strides = [1, 1]} : vector<2x256xf32> to vector<2x64xf32>
    %156 = math.tanh %155 : vector<2x64xf32>
    %157 = vector.extract_strided_slice %154 {offsets = [0, 64], sizes = [2, 64], strides = [1, 1]} : vector<2x256xf32> to vector<2x64xf32>
    %158 = arith.mulf %157, %142 : vector<2x64xf32>
    %159 = vector.extract_strided_slice %154 {offsets = [0, 0], sizes = [2, 64], strides = [1, 1]} : vector<2x256xf32> to vector<2x64xf32>
    %160 = arith.mulf %159, %156 : vector<2x64xf32>
    %161 = arith.addf %158, %160 : vector<2x64xf32>
    %162 = vector.extract_strided_slice %154 {offsets = [0, 192], sizes = [2, 64], strides = [1, 1]} : vector<2x256xf32> to vector<2x64xf32>
    %163 = math.tanh %161 : vector<2x64xf32>
    %164 = arith.mulf %162, %163 : vector<2x64xf32>
    %165 = vector.extract_strided_slice %31 {offsets = [0, 0], sizes = [2, 32], strides = [1, 1]} : vector<2x64xf32> to vector<2x32xf32>
    %166 = vector.extract_strided_slice %164 {offsets = [0, 32], sizes = [2, 32], strides = [1, 1]} : vector<2x64xf32> to vector<2x32xf32>
    %167 = tpu.concatenate %165, %166 in 1 : vector<2x32xf32>, vector<2x32xf32> -> vector<2x64xf32>
    %168 = vector.extract_strided_slice %50 {offsets = [0, 0], sizes = [2, 32], strides = [1, 1]} : vector<2x64xf32> to vector<2x32xf32>
    %169 = vector.extract_strided_slice %145 {offsets = [0, 32], sizes = [2, 32], strides = [1, 1]} : vector<2x64xf32> to vector<2x32xf32>
    %170 = tpu.concatenate %168, %169 in 1 : vector<2x32xf32>, vector<2x32xf32> -> vector<2x64xf32>
    %171 = vector.extract_strided_slice %69 {offsets = [0, 0], sizes = [2, 32], strides = [1, 1]} : vector<2x64xf32> to vector<2x32xf32>
    %172 = vector.extract_strided_slice %126 {offsets = [0, 32], sizes = [2, 32], strides = [1, 1]} : vector<2x64xf32> to vector<2x32xf32>
    %173 = tpu.concatenate %171, %172 in 1 : vector<2x32xf32>, vector<2x32xf32> -> vector<2x64xf32>
    %174 = vector.extract_strided_slice %88 {offsets = [0, 0], sizes = [2, 32], strides = [1, 1]} : vector<2x64xf32> to vector<2x32xf32>
    %175 = vector.extract_strided_slice %107 {offsets = [0, 32], sizes = [2, 32], strides = [1, 1]} : vector<2x64xf32> to vector<2x32xf32>
    %176 = tpu.concatenate %174, %175 in 1 : vector<2x32xf32>, vector<2x32xf32> -> vector<2x64xf32>
    %177 = vector.extract_strided_slice %107 {offsets = [0, 0], sizes = [2, 32], strides = [1, 1]} : vector<2x64xf32> to vector<2x32xf32>
    %178 = vector.extract_strided_slice %88 {offsets = [0, 32], sizes = [2, 32], strides = [1, 1]} : vector<2x64xf32> to vector<2x32xf32>
    %179 = tpu.concatenate %177, %178 in 1 : vector<2x32xf32>, vector<2x32xf32> -> vector<2x64xf32>
    %180 = vector.extract_strided_slice %126 {offsets = [0, 0], sizes = [2, 32], strides = [1, 1]} : vector<2x64xf32> to vector<2x32xf32>
    %181 = vector.extract_strided_slice %69 {offsets = [0, 32], sizes = [2, 32], strides = [1, 1]} : vector<2x64xf32> to vector<2x32xf32>
    %182 = tpu.concatenate %180, %181 in 1 : vector<2x32xf32>, vector<2x32xf32> -> vector<2x64xf32>
    %183 = vector.extract_strided_slice %145 {offsets = [0, 0], sizes = [2, 32], strides = [1, 1]} : vector<2x64xf32> to vector<2x32xf32>
    %184 = vector.extract_strided_slice %50 {offsets = [0, 32], sizes = [2, 32], strides = [1, 1]} : vector<2x64xf32> to vector<2x32xf32>
    %185 = tpu.concatenate %183, %184 in 1 : vector<2x32xf32>, vector<2x32xf32> -> vector<2x64xf32>
    %186 = vector.extract_strided_slice %164 {offsets = [0, 0], sizes = [2, 32], strides = [1, 1]} : vector<2x64xf32> to vector<2x32xf32>
    %187 = vector.extract_strided_slice %31 {offsets = [0, 32], sizes = [2, 32], strides = [1, 1]} : vector<2x64xf32> to vector<2x32xf32>
    %188 = tpu.concatenate %186, %187 in 1 : vector<2x32xf32>, vector<2x32xf32> -> vector<2x64xf32>
    %189 = tpu.concatenate %167, %170, %173, %176, %179, %182, %185, %188 in 0 : vector<2x64xf32>, vector<2x64xf32>, vector<2x64xf32>, vector<2x64xf32>, vector<2x64xf32>, vector<2x64xf32>, vector<2x64xf32>, vector<2x64xf32> -> vector<16x64xf32>
    %190 = arith.truncf %189 : vector<16x64xf32> to vector<16x64xbf16>
    %191 = tpu.concatenate %188, %185, %182, %179, %176, %173, %170, %167 in 0 : vector<2x64xf32>, vector<2x64xf32>, vector<2x64xf32>, vector<2x64xf32>, vector<2x64xf32>, vector<2x64xf32>, vector<2x64xf32>, vector<2x64xf32> -> vector<16x64xf32>
    %192 = arith.truncf %191 : vector<16x64xf32> to vector<16x64xbf16>
    %c0_30 = arith.constant 0 : index
    %c0_31 = arith.constant 0 : index
    %193 = vector.load %arg8[%c0_30, %c0_31] : memref<64x256xbf16, #tpu.memory_space<vmem>>, vector<64x256xbf16>
    %c0_32 = arith.constant 0 : index
    %c0_33 = arith.constant 0 : index
    %194 = vector.load %arg6[%c0_32, %c0_33] : memref<64x256xbf16, #tpu.memory_space<vmem>>, vector<64x256xbf16>
    %cst_34 = arith.constant dense<0.000000e+00> : vector<16x256xf32>
    %195 = tpu.matmul %190, %194, %cst_34 {dimension_numbers = #tpu.dot_dimension_numbers<[1], [0], [0], [1], [0, 0, 1, 1], [], []>} : vector<16x64xbf16>, vector<64x256xbf16>, vector<16x256xf32> -> vector<16x256xf32>
    %c0_35 = arith.constant 0 : index
    %c0_36 = arith.constant 0 : index
    %196 = vector.load %arg7[%c0_35, %c0_36] : memref<64x256xbf16, #tpu.memory_space<vmem>>, vector<64x256xbf16>
    %cst_37 = arith.constant dense<0.000000e+00> : vector<16x256xf32>
    %197 = tpu.matmul %192, %196, %cst_37 {dimension_numbers = #tpu.dot_dimension_numbers<[1], [0], [0], [1], [0, 0, 1, 1], [], []>} : vector<16x64xbf16>, vector<64x256xbf16>, vector<16x256xf32> -> vector<16x256xf32>
    %198 = arith.addf %195, %197 : vector<16x256xf32>
    %c0_38 = arith.constant 0 : index
    %c0_39 = arith.constant 0 : index
    %199 = vector.load %arg9[%c0_38, %c0_39] : memref<1x256xf32, #tpu.memory_space<vmem>>, vector<1x256xf32>
    %200 = vector.broadcast %199 : vector<1x256xf32> to vector<16x256xf32>
    %201 = arith.addf %198, %200 : vector<16x256xf32>
    %cst_40 = arith.constant 0.000000e+00 : f32
    %202 = vector.broadcast %cst_40 : f32 to vector<2x64xf32>
    %cst_41 = arith.constant 0.000000e+00 : f32
    %203 = vector.broadcast %cst_41 : f32 to vector<2x64xf32>
    %204 = vector.extract_strided_slice %201 {offsets = [0, 0], sizes = [2, 256], strides = [1, 1]} : vector<16x256xf32> to vector<2x256xf32>
    %205 = arith.truncf %202 : vector<2x64xf32> to vector<2x64xbf16>
    %cst_42 = arith.constant dense<0.000000e+00> : vector<2x256xf32>
    %206 = tpu.matmul %205, %193, %cst_42 {dimension_numbers = #tpu.dot_dimension_numbers<[1], [0], [0], [1], [0, 0, 1, 1], [], []>} : vector<2x64xbf16>, vector<64x256xbf16>, vector<2x256xf32> -> vector<2x256xf32>
    %207 = arith.addf %204, %206 : vector<2x256xf32>
    %208 = arith.negf %207 : vector<2x256xf32>
    %209 = math.exp %208 : vector<2x256xf32>
    %cst_43 = arith.constant 1.000000e+00 : f32
    %210 = vector.broadcast %cst_43 : f32 to vector<2x256xf32>
    %211 = arith.addf %210, %209 : vector<2x256xf32>
    %212 = arith.divf %210, %211 : vector<2x256xf32>
    %213 = vector.extract_strided_slice %207 {offsets = [0, 128], sizes = [2, 64], strides = [1, 1]} : vector<2x256xf32> to vector<2x64xf32>
    %214 = math.tanh %213 : vector<2x64xf32>
    %215 = vector.extract_strided_slice %212 {offsets = [0, 64], sizes = [2, 64], strides = [1, 1]} : vector<2x256xf32> to vector<2x64xf32>
    %216 = arith.mulf %215, %203 : vector<2x64xf32>
    %217 = vector.extract_strided_slice %212 {offsets = [0, 0], sizes = [2, 64], strides = [1, 1]} : vector<2x256xf32> to vector<2x64xf32>
    %218 = arith.mulf %217, %214 : vector<2x64xf32>
    %219 = arith.addf %216, %218 : vector<2x64xf32>
    %220 = vector.extract_strided_slice %212 {offsets = [0, 192], sizes = [2, 64], strides = [1, 1]} : vector<2x256xf32> to vector<2x64xf32>
    %221 = math.tanh %219 : vector<2x64xf32>
    %222 = arith.mulf %220, %221 : vector<2x64xf32>
    %223 = vector.extract_strided_slice %201 {offsets = [2, 0], sizes = [2, 256], strides = [1, 1]} : vector<16x256xf32> to vector<2x256xf32>
    %224 = arith.truncf %222 : vector<2x64xf32> to vector<2x64xbf16>
    %cst_44 = arith.constant dense<0.000000e+00> : vector<2x256xf32>
    %225 = tpu.matmul %224, %193, %cst_44 {dimension_numbers = #tpu.dot_dimension_numbers<[1], [0], [0], [1], [0, 0, 1, 1], [], []>} : vector<2x64xbf16>, vector<64x256xbf16>, vector<2x256xf32> -> vector<2x256xf32>
    %226 = arith.addf %223, %225 : vector<2x256xf32>
    %227 = arith.negf %226 : vector<2x256xf32>
    %228 = math.exp %227 : vector<2x256xf32>
    %cst_45 = arith.constant 1.000000e+00 : f32
    %229 = vector.broadcast %cst_45 : f32 to vector<2x256xf32>
    %230 = arith.addf %229, %228 : vector<2x256xf32>
    %231 = arith.divf %229, %230 : vector<2x256xf32>
    %232 = vector.extract_strided_slice %226 {offsets = [0, 128], sizes = [2, 64], strides = [1, 1]} : vector<2x256xf32> to vector<2x64xf32>
    %233 = math.tanh %232 : vector<2x64xf32>
    %234 = vector.extract_strided_slice %231 {offsets = [0, 64], sizes = [2, 64], strides = [1, 1]} : vector<2x256xf32> to vector<2x64xf32>
    %235 = arith.mulf %234, %219 : vector<2x64xf32>
    %236 = vector.extract_strided_slice %231 {offsets = [0, 0], sizes = [2, 64], strides = [1, 1]} : vector<2x256xf32> to vector<2x64xf32>
    %237 = arith.mulf %236, %233 : vector<2x64xf32>
    %238 = arith.addf %235, %237 : vector<2x64xf32>
    %239 = vector.extract_strided_slice %231 {offsets = [0, 192], sizes = [2, 64], strides = [1, 1]} : vector<2x256xf32> to vector<2x64xf32>
    %240 = math.tanh %238 : vector<2x64xf32>
    %241 = arith.mulf %239, %240 : vector<2x64xf32>
    %242 = vector.extract_strided_slice %201 {offsets = [4, 0], sizes = [2, 256], strides = [1, 1]} : vector<16x256xf32> to vector<2x256xf32>
    %243 = arith.truncf %241 : vector<2x64xf32> to vector<2x64xbf16>
    %cst_46 = arith.constant dense<0.000000e+00> : vector<2x256xf32>
    %244 = tpu.matmul %243, %193, %cst_46 {dimension_numbers = #tpu.dot_dimension_numbers<[1], [0], [0], [1], [0, 0, 1, 1], [], []>} : vector<2x64xbf16>, vector<64x256xbf16>, vector<2x256xf32> -> vector<2x256xf32>
    %245 = arith.addf %242, %244 : vector<2x256xf32>
    %246 = arith.negf %245 : vector<2x256xf32>
    %247 = math.exp %246 : vector<2x256xf32>
    %cst_47 = arith.constant 1.000000e+00 : f32
    %248 = vector.broadcast %cst_47 : f32 to vector<2x256xf32>
    %249 = arith.addf %248, %247 : vector<2x256xf32>
    %250 = arith.divf %248, %249 : vector<2x256xf32>
    %251 = vector.extract_strided_slice %245 {offsets = [0, 128], sizes = [2, 64], strides = [1, 1]} : vector<2x256xf32> to vector<2x64xf32>
    %252 = math.tanh %251 : vector<2x64xf32>
    %253 = vector.extract_strided_slice %250 {offsets = [0, 64], sizes = [2, 64], strides = [1, 1]} : vector<2x256xf32> to vector<2x64xf32>
    %254 = arith.mulf %253, %238 : vector<2x64xf32>
    %255 = vector.extract_strided_slice %250 {offsets = [0, 0], sizes = [2, 64], strides = [1, 1]} : vector<2x256xf32> to vector<2x64xf32>
    %256 = arith.mulf %255, %252 : vector<2x64xf32>
    %257 = arith.addf %254, %256 : vector<2x64xf32>
    %258 = vector.extract_strided_slice %250 {offsets = [0, 192], sizes = [2, 64], strides = [1, 1]} : vector<2x256xf32> to vector<2x64xf32>
    %259 = math.tanh %257 : vector<2x64xf32>
    %260 = arith.mulf %258, %259 : vector<2x64xf32>
    %261 = vector.extract_strided_slice %201 {offsets = [6, 0], sizes = [2, 256], strides = [1, 1]} : vector<16x256xf32> to vector<2x256xf32>
    %262 = arith.truncf %260 : vector<2x64xf32> to vector<2x64xbf16>
    %cst_48 = arith.constant dense<0.000000e+00> : vector<2x256xf32>
    %263 = tpu.matmul %262, %193, %cst_48 {dimension_numbers = #tpu.dot_dimension_numbers<[1], [0], [0], [1], [0, 0, 1, 1], [], []>} : vector<2x64xbf16>, vector<64x256xbf16>, vector<2x256xf32> -> vector<2x256xf32>
    %264 = arith.addf %261, %263 : vector<2x256xf32>
    %265 = arith.negf %264 : vector<2x256xf32>
    %266 = math.exp %265 : vector<2x256xf32>
    %cst_49 = arith.constant 1.000000e+00 : f32
    %267 = vector.broadcast %cst_49 : f32 to vector<2x256xf32>
    %268 = arith.addf %267, %266 : vector<2x256xf32>
    %269 = arith.divf %267, %268 : vector<2x256xf32>
    %270 = vector.extract_strided_slice %264 {offsets = [0, 128], sizes = [2, 64], strides = [1, 1]} : vector<2x256xf32> to vector<2x64xf32>
    %271 = math.tanh %270 : vector<2x64xf32>
    %272 = vector.extract_strided_slice %269 {offsets = [0, 64], sizes = [2, 64], strides = [1, 1]} : vector<2x256xf32> to vector<2x64xf32>
    %273 = arith.mulf %272, %257 : vector<2x64xf32>
    %274 = vector.extract_strided_slice %269 {offsets = [0, 0], sizes = [2, 64], strides = [1, 1]} : vector<2x256xf32> to vector<2x64xf32>
    %275 = arith.mulf %274, %271 : vector<2x64xf32>
    %276 = arith.addf %273, %275 : vector<2x64xf32>
    %277 = vector.extract_strided_slice %269 {offsets = [0, 192], sizes = [2, 64], strides = [1, 1]} : vector<2x256xf32> to vector<2x64xf32>
    %278 = math.tanh %276 : vector<2x64xf32>
    %279 = arith.mulf %277, %278 : vector<2x64xf32>
    %280 = vector.extract_strided_slice %201 {offsets = [8, 0], sizes = [2, 256], strides = [1, 1]} : vector<16x256xf32> to vector<2x256xf32>
    %281 = arith.truncf %279 : vector<2x64xf32> to vector<2x64xbf16>
    %cst_50 = arith.constant dense<0.000000e+00> : vector<2x256xf32>
    %282 = tpu.matmul %281, %193, %cst_50 {dimension_numbers = #tpu.dot_dimension_numbers<[1], [0], [0], [1], [0, 0, 1, 1], [], []>} : vector<2x64xbf16>, vector<64x256xbf16>, vector<2x256xf32> -> vector<2x256xf32>
    %283 = arith.addf %280, %282 : vector<2x256xf32>
    %284 = arith.negf %283 : vector<2x256xf32>
    %285 = math.exp %284 : vector<2x256xf32>
    %cst_51 = arith.constant 1.000000e+00 : f32
    %286 = vector.broadcast %cst_51 : f32 to vector<2x256xf32>
    %287 = arith.addf %286, %285 : vector<2x256xf32>
    %288 = arith.divf %286, %287 : vector<2x256xf32>
    %289 = vector.extract_strided_slice %283 {offsets = [0, 128], sizes = [2, 64], strides = [1, 1]} : vector<2x256xf32> to vector<2x64xf32>
    %290 = math.tanh %289 : vector<2x64xf32>
    %291 = vector.extract_strided_slice %288 {offsets = [0, 64], sizes = [2, 64], strides = [1, 1]} : vector<2x256xf32> to vector<2x64xf32>
    %292 = arith.mulf %291, %276 : vector<2x64xf32>
    %293 = vector.extract_strided_slice %288 {offsets = [0, 0], sizes = [2, 64], strides = [1, 1]} : vector<2x256xf32> to vector<2x64xf32>
    %294 = arith.mulf %293, %290 : vector<2x64xf32>
    %295 = arith.addf %292, %294 : vector<2x64xf32>
    %296 = vector.extract_strided_slice %288 {offsets = [0, 192], sizes = [2, 64], strides = [1, 1]} : vector<2x256xf32> to vector<2x64xf32>
    %297 = math.tanh %295 : vector<2x64xf32>
    %298 = arith.mulf %296, %297 : vector<2x64xf32>
    %299 = vector.extract_strided_slice %201 {offsets = [10, 0], sizes = [2, 256], strides = [1, 1]} : vector<16x256xf32> to vector<2x256xf32>
    %300 = arith.truncf %298 : vector<2x64xf32> to vector<2x64xbf16>
    %cst_52 = arith.constant dense<0.000000e+00> : vector<2x256xf32>
    %301 = tpu.matmul %300, %193, %cst_52 {dimension_numbers = #tpu.dot_dimension_numbers<[1], [0], [0], [1], [0, 0, 1, 1], [], []>} : vector<2x64xbf16>, vector<64x256xbf16>, vector<2x256xf32> -> vector<2x256xf32>
    %302 = arith.addf %299, %301 : vector<2x256xf32>
    %303 = arith.negf %302 : vector<2x256xf32>
    %304 = math.exp %303 : vector<2x256xf32>
    %cst_53 = arith.constant 1.000000e+00 : f32
    %305 = vector.broadcast %cst_53 : f32 to vector<2x256xf32>
    %306 = arith.addf %305, %304 : vector<2x256xf32>
    %307 = arith.divf %305, %306 : vector<2x256xf32>
    %308 = vector.extract_strided_slice %302 {offsets = [0, 128], sizes = [2, 64], strides = [1, 1]} : vector<2x256xf32> to vector<2x64xf32>
    %309 = math.tanh %308 : vector<2x64xf32>
    %310 = vector.extract_strided_slice %307 {offsets = [0, 64], sizes = [2, 64], strides = [1, 1]} : vector<2x256xf32> to vector<2x64xf32>
    %311 = arith.mulf %310, %295 : vector<2x64xf32>
    %312 = vector.extract_strided_slice %307 {offsets = [0, 0], sizes = [2, 64], strides = [1, 1]} : vector<2x256xf32> to vector<2x64xf32>
    %313 = arith.mulf %312, %309 : vector<2x64xf32>
    %314 = arith.addf %311, %313 : vector<2x64xf32>
    %315 = vector.extract_strided_slice %307 {offsets = [0, 192], sizes = [2, 64], strides = [1, 1]} : vector<2x256xf32> to vector<2x64xf32>
    %316 = math.tanh %314 : vector<2x64xf32>
    %317 = arith.mulf %315, %316 : vector<2x64xf32>
    %318 = vector.extract_strided_slice %201 {offsets = [12, 0], sizes = [2, 256], strides = [1, 1]} : vector<16x256xf32> to vector<2x256xf32>
    %319 = arith.truncf %317 : vector<2x64xf32> to vector<2x64xbf16>
    %cst_54 = arith.constant dense<0.000000e+00> : vector<2x256xf32>
    %320 = tpu.matmul %319, %193, %cst_54 {dimension_numbers = #tpu.dot_dimension_numbers<[1], [0], [0], [1], [0, 0, 1, 1], [], []>} : vector<2x64xbf16>, vector<64x256xbf16>, vector<2x256xf32> -> vector<2x256xf32>
    %321 = arith.addf %318, %320 : vector<2x256xf32>
    %322 = arith.negf %321 : vector<2x256xf32>
    %323 = math.exp %322 : vector<2x256xf32>
    %cst_55 = arith.constant 1.000000e+00 : f32
    %324 = vector.broadcast %cst_55 : f32 to vector<2x256xf32>
    %325 = arith.addf %324, %323 : vector<2x256xf32>
    %326 = arith.divf %324, %325 : vector<2x256xf32>
    %327 = vector.extract_strided_slice %321 {offsets = [0, 128], sizes = [2, 64], strides = [1, 1]} : vector<2x256xf32> to vector<2x64xf32>
    %328 = math.tanh %327 : vector<2x64xf32>
    %329 = vector.extract_strided_slice %326 {offsets = [0, 64], sizes = [2, 64], strides = [1, 1]} : vector<2x256xf32> to vector<2x64xf32>
    %330 = arith.mulf %329, %314 : vector<2x64xf32>
    %331 = vector.extract_strided_slice %326 {offsets = [0, 0], sizes = [2, 64], strides = [1, 1]} : vector<2x256xf32> to vector<2x64xf32>
    %332 = arith.mulf %331, %328 : vector<2x64xf32>
    %333 = arith.addf %330, %332 : vector<2x64xf32>
    %334 = vector.extract_strided_slice %326 {offsets = [0, 192], sizes = [2, 64], strides = [1, 1]} : vector<2x256xf32> to vector<2x64xf32>
    %335 = math.tanh %333 : vector<2x64xf32>
    %336 = arith.mulf %334, %335 : vector<2x64xf32>
    %337 = vector.extract_strided_slice %201 {offsets = [14, 0], sizes = [2, 256], strides = [1, 1]} : vector<16x256xf32> to vector<2x256xf32>
    %338 = arith.truncf %336 : vector<2x64xf32> to vector<2x64xbf16>
    %cst_56 = arith.constant dense<0.000000e+00> : vector<2x256xf32>
    %339 = tpu.matmul %338, %193, %cst_56 {dimension_numbers = #tpu.dot_dimension_numbers<[1], [0], [0], [1], [0, 0, 1, 1], [], []>} : vector<2x64xbf16>, vector<64x256xbf16>, vector<2x256xf32> -> vector<2x256xf32>
    %340 = arith.addf %337, %339 : vector<2x256xf32>
    %341 = arith.negf %340 : vector<2x256xf32>
    %342 = math.exp %341 : vector<2x256xf32>
    %cst_57 = arith.constant 1.000000e+00 : f32
    %343 = vector.broadcast %cst_57 : f32 to vector<2x256xf32>
    %344 = arith.addf %343, %342 : vector<2x256xf32>
    %345 = arith.divf %343, %344 : vector<2x256xf32>
    %346 = vector.extract_strided_slice %340 {offsets = [0, 128], sizes = [2, 64], strides = [1, 1]} : vector<2x256xf32> to vector<2x64xf32>
    %347 = math.tanh %346 : vector<2x64xf32>
    %348 = vector.extract_strided_slice %345 {offsets = [0, 64], sizes = [2, 64], strides = [1, 1]} : vector<2x256xf32> to vector<2x64xf32>
    %349 = arith.mulf %348, %333 : vector<2x64xf32>
    %350 = vector.extract_strided_slice %345 {offsets = [0, 0], sizes = [2, 64], strides = [1, 1]} : vector<2x256xf32> to vector<2x64xf32>
    %351 = arith.mulf %350, %347 : vector<2x64xf32>
    %352 = arith.addf %349, %351 : vector<2x64xf32>
    %353 = vector.extract_strided_slice %345 {offsets = [0, 192], sizes = [2, 64], strides = [1, 1]} : vector<2x256xf32> to vector<2x64xf32>
    %354 = math.tanh %352 : vector<2x64xf32>
    %355 = arith.mulf %353, %354 : vector<2x64xf32>
    %356 = vector.extract_strided_slice %222 {offsets = [0, 0], sizes = [2, 32], strides = [1, 1]} : vector<2x64xf32> to vector<2x32xf32>
    %357 = vector.extract_strided_slice %355 {offsets = [0, 32], sizes = [2, 32], strides = [1, 1]} : vector<2x64xf32> to vector<2x32xf32>
    %358 = tpu.concatenate %356, %357 in 1 : vector<2x32xf32>, vector<2x32xf32> -> vector<2x64xf32>
    %359 = vector.extract_strided_slice %241 {offsets = [0, 0], sizes = [2, 32], strides = [1, 1]} : vector<2x64xf32> to vector<2x32xf32>
    %360 = vector.extract_strided_slice %336 {offsets = [0, 32], sizes = [2, 32], strides = [1, 1]} : vector<2x64xf32> to vector<2x32xf32>
    %361 = tpu.concatenate %359, %360 in 1 : vector<2x32xf32>, vector<2x32xf32> -> vector<2x64xf32>
    %362 = vector.extract_strided_slice %260 {offsets = [0, 0], sizes = [2, 32], strides = [1, 1]} : vector<2x64xf32> to vector<2x32xf32>
    %363 = vector.extract_strided_slice %317 {offsets = [0, 32], sizes = [2, 32], strides = [1, 1]} : vector<2x64xf32> to vector<2x32xf32>
    %364 = tpu.concatenate %362, %363 in 1 : vector<2x32xf32>, vector<2x32xf32> -> vector<2x64xf32>
    %365 = vector.extract_strided_slice %279 {offsets = [0, 0], sizes = [2, 32], strides = [1, 1]} : vector<2x64xf32> to vector<2x32xf32>
    %366 = vector.extract_strided_slice %298 {offsets = [0, 32], sizes = [2, 32], strides = [1, 1]} : vector<2x64xf32> to vector<2x32xf32>
    %367 = tpu.concatenate %365, %366 in 1 : vector<2x32xf32>, vector<2x32xf32> -> vector<2x64xf32>
    %368 = vector.extract_strided_slice %298 {offsets = [0, 0], sizes = [2, 32], strides = [1, 1]} : vector<2x64xf32> to vector<2x32xf32>
    %369 = vector.extract_strided_slice %279 {offsets = [0, 32], sizes = [2, 32], strides = [1, 1]} : vector<2x64xf32> to vector<2x32xf32>
    %370 = tpu.concatenate %368, %369 in 1 : vector<2x32xf32>, vector<2x32xf32> -> vector<2x64xf32>
    %371 = vector.extract_strided_slice %317 {offsets = [0, 0], sizes = [2, 32], strides = [1, 1]} : vector<2x64xf32> to vector<2x32xf32>
    %372 = vector.extract_strided_slice %260 {offsets = [0, 32], sizes = [2, 32], strides = [1, 1]} : vector<2x64xf32> to vector<2x32xf32>
    %373 = tpu.concatenate %371, %372 in 1 : vector<2x32xf32>, vector<2x32xf32> -> vector<2x64xf32>
    %374 = vector.extract_strided_slice %336 {offsets = [0, 0], sizes = [2, 32], strides = [1, 1]} : vector<2x64xf32> to vector<2x32xf32>
    %375 = vector.extract_strided_slice %241 {offsets = [0, 32], sizes = [2, 32], strides = [1, 1]} : vector<2x64xf32> to vector<2x32xf32>
    %376 = tpu.concatenate %374, %375 in 1 : vector<2x32xf32>, vector<2x32xf32> -> vector<2x64xf32>
    %377 = vector.extract_strided_slice %355 {offsets = [0, 0], sizes = [2, 32], strides = [1, 1]} : vector<2x64xf32> to vector<2x32xf32>
    %378 = vector.extract_strided_slice %222 {offsets = [0, 32], sizes = [2, 32], strides = [1, 1]} : vector<2x64xf32> to vector<2x32xf32>
    %379 = tpu.concatenate %377, %378 in 1 : vector<2x32xf32>, vector<2x32xf32> -> vector<2x64xf32>
    %380 = tpu.concatenate %358, %361, %364, %367, %370, %373, %376, %379 in 0 : vector<2x64xf32>, vector<2x64xf32>, vector<2x64xf32>, vector<2x64xf32>, vector<2x64xf32>, vector<2x64xf32>, vector<2x64xf32>, vector<2x64xf32> -> vector<16x64xf32>
    %381 = math.tanh %380 : vector<16x64xf32>
    %c0_58 = arith.constant 0 : index
    %c0_59 = arith.constant 0 : index
    %382 = vector.load %arg10[%c0_58, %c0_59] : memref<1x64xf32, #tpu.memory_space<vmem>>, vector<1x64xf32>
    %383 = vector.broadcast %382 : vector<1x64xf32> to vector<16x64xf32>
    %384 = arith.mulf %381, %383 : vector<16x64xf32>
    %cst_60 = arith.constant dense<0.000000e+00> : vector<16xf32>
    %385 = vector.multi_reduction <add>, %384, %cst_60 [1] : vector<16x64xf32> to vector<16xf32>
    %386 = vector.shape_cast %385 : vector<16xf32> to vector<16x1xf32>
    %387 = vector.extract_strided_slice %386 {offsets = [0, 0], sizes = [2, 1], strides = [1, 1]} : vector<16x1xf32> to vector<2x1xf32>
    %388 = vector.extract_strided_slice %386 {offsets = [2, 0], sizes = [2, 1], strides = [1, 1]} : vector<16x1xf32> to vector<2x1xf32>
    %389 = vector.extract_strided_slice %386 {offsets = [4, 0], sizes = [2, 1], strides = [1, 1]} : vector<16x1xf32> to vector<2x1xf32>
    %390 = vector.extract_strided_slice %386 {offsets = [6, 0], sizes = [2, 1], strides = [1, 1]} : vector<16x1xf32> to vector<2x1xf32>
    %391 = vector.extract_strided_slice %386 {offsets = [8, 0], sizes = [2, 1], strides = [1, 1]} : vector<16x1xf32> to vector<2x1xf32>
    %392 = vector.extract_strided_slice %386 {offsets = [10, 0], sizes = [2, 1], strides = [1, 1]} : vector<16x1xf32> to vector<2x1xf32>
    %393 = vector.extract_strided_slice %386 {offsets = [12, 0], sizes = [2, 1], strides = [1, 1]} : vector<16x1xf32> to vector<2x1xf32>
    %394 = vector.extract_strided_slice %386 {offsets = [14, 0], sizes = [2, 1], strides = [1, 1]} : vector<16x1xf32> to vector<2x1xf32>
    %395 = arith.maximumf %387, %388 : vector<2x1xf32>
    %396 = arith.maximumf %395, %389 : vector<2x1xf32>
    %397 = arith.maximumf %396, %390 : vector<2x1xf32>
    %398 = arith.maximumf %397, %391 : vector<2x1xf32>
    %399 = arith.maximumf %398, %392 : vector<2x1xf32>
    %400 = arith.maximumf %399, %393 : vector<2x1xf32>
    %401 = arith.maximumf %400, %394 : vector<2x1xf32>
    %402 = arith.subf %387, %401 : vector<2x1xf32>
    %403 = math.exp %402 : vector<2x1xf32>
    %404 = arith.subf %388, %401 : vector<2x1xf32>
    %405 = math.exp %404 : vector<2x1xf32>
    %406 = arith.subf %389, %401 : vector<2x1xf32>
    %407 = math.exp %406 : vector<2x1xf32>
    %408 = arith.subf %390, %401 : vector<2x1xf32>
    %409 = math.exp %408 : vector<2x1xf32>
    %410 = arith.subf %391, %401 : vector<2x1xf32>
    %411 = math.exp %410 : vector<2x1xf32>
    %412 = arith.subf %392, %401 : vector<2x1xf32>
    %413 = math.exp %412 : vector<2x1xf32>
    %414 = arith.subf %393, %401 : vector<2x1xf32>
    %415 = math.exp %414 : vector<2x1xf32>
    %416 = arith.subf %394, %401 : vector<2x1xf32>
    %417 = math.exp %416 : vector<2x1xf32>
    %418 = arith.addf %403, %405 : vector<2x1xf32>
    %419 = arith.addf %418, %407 : vector<2x1xf32>
    %420 = arith.addf %419, %409 : vector<2x1xf32>
    %421 = arith.addf %420, %411 : vector<2x1xf32>
    %422 = arith.addf %421, %413 : vector<2x1xf32>
    %423 = arith.addf %422, %415 : vector<2x1xf32>
    %424 = arith.addf %423, %417 : vector<2x1xf32>
    %425 = vector.broadcast %403 : vector<2x1xf32> to vector<2x64xf32>
    %426 = arith.mulf %425, %358 : vector<2x64xf32>
    %427 = vector.broadcast %405 : vector<2x1xf32> to vector<2x64xf32>
    %428 = arith.mulf %427, %361 : vector<2x64xf32>
    %429 = arith.addf %426, %428 : vector<2x64xf32>
    %430 = vector.broadcast %407 : vector<2x1xf32> to vector<2x64xf32>
    %431 = arith.mulf %430, %364 : vector<2x64xf32>
    %432 = arith.addf %429, %431 : vector<2x64xf32>
    %433 = vector.broadcast %409 : vector<2x1xf32> to vector<2x64xf32>
    %434 = arith.mulf %433, %367 : vector<2x64xf32>
    %435 = arith.addf %432, %434 : vector<2x64xf32>
    %436 = vector.broadcast %411 : vector<2x1xf32> to vector<2x64xf32>
    %437 = arith.mulf %436, %370 : vector<2x64xf32>
    %438 = arith.addf %435, %437 : vector<2x64xf32>
    %439 = vector.broadcast %413 : vector<2x1xf32> to vector<2x64xf32>
    %440 = arith.mulf %439, %373 : vector<2x64xf32>
    %441 = arith.addf %438, %440 : vector<2x64xf32>
    %442 = vector.broadcast %415 : vector<2x1xf32> to vector<2x64xf32>
    %443 = arith.mulf %442, %376 : vector<2x64xf32>
    %444 = arith.addf %441, %443 : vector<2x64xf32>
    %445 = vector.broadcast %417 : vector<2x1xf32> to vector<2x64xf32>
    %446 = arith.mulf %445, %379 : vector<2x64xf32>
    %447 = arith.addf %444, %446 : vector<2x64xf32>
    %cst_61 = arith.constant 1.000000e+00 : f32
    %448 = vector.broadcast %cst_61 : f32 to vector<2x1xf32>
    %449 = arith.divf %448, %424 : vector<2x1xf32>
    %450 = vector.broadcast %449 : vector<2x1xf32> to vector<2x64xf32>
    %451 = arith.mulf %447, %450 : vector<2x64xf32>
    %452 = arith.truncf %451 : vector<2x64xf32> to vector<2x64xbf16>
    %c0_62 = arith.constant 0 : index
    %c0_63 = arith.constant 0 : index
    %453 = vector.load %arg11[%c0_62, %c0_63] : memref<64x4xbf16, #tpu.memory_space<vmem>>, vector<64x4xbf16>
    %cst_64 = arith.constant dense<0.000000e+00> : vector<2x4xf32>
    %454 = tpu.matmul %452, %453, %cst_64 {dimension_numbers = #tpu.dot_dimension_numbers<[1], [0], [0], [1], [0, 0, 1, 1], [], []>} : vector<2x64xbf16>, vector<64x4xbf16>, vector<2x4xf32> -> vector<2x4xf32>
    %c0_65 = arith.constant 0 : index
    %c0_66 = arith.constant 0 : index
    %455 = vector.load %arg12[%c0_65, %c0_66] : memref<1x4xf32, #tpu.memory_space<vmem>>, vector<1x4xf32>
    %456 = vector.broadcast %455 : vector<1x4xf32> to vector<2x4xf32>
    %457 = arith.addf %454, %456 : vector<2x4xf32>
    %c0_67 = arith.constant 0 : index
    %c0_68 = arith.constant 0 : index
    %458 = vector.load %arg13[%c0_67, %c0_68] : memref<2x4xf32, #tpu.memory_space<vmem>>, vector<2x4xf32>
    tpu.vector_store %arg13[%c0_67, %c0_68], %457 {strides = array<i32>} : memref<2x4xf32, #tpu.memory_space<vmem>>, vector<2x4xf32>,
    return
  }
}

</mosaic_0001>

<bundles_post_ra>
// kernel: model_forward.1
= control target key start
LH: loop header
LB: loop body
LE: loop exit
PB: predicated region body
PF: predicated region fallthrough
CT: control target
= control target key end

     0   :  { %18 = vsyncpa [#allocation3], 0  ;;  %s3652_s0 = inlined_call_operand.vmem [shape: bf16[16,16], index: 0, kind: input, shape index: {}]   ;;  %s3653_s1 = inlined_call_operand.vmem [shape: bf16[16,16], index: 1, kind: input, shape index: {}]   ;;  %s3654_s2 = inlined_call_operand.vmem [shape: bf16[16,256], index: 2, kind: input, shape index: {}]   ;;  %s3655_s3 = inlined_call_operand.vmem [shape: bf16[16,256], index: 3, kind: input, shape index: {}]   ;;  %s3656_s4 = inlined_call_operand.vmem [shape: bf16[64,256], index: 4, kind: input, shape index: {}]   ;;  %s3657_s5 = inlined_call_operand.vmem [shape: f32[1,256], index: 5, kind: input, shape index: {}]   ;;  %s3658_s6 = inlined_call_operand.vmem [shape: bf16[64,256], index: 6, kind: input, shape index: {}]   ;;  %s3659_s7 = inlined_call_operand.hbm [shape: bf16[64,256], index: 7, kind: input, shape index: {}]   ;;  %s3660_s8 = inlined_call_operand.hbm [shape: bf16[64,256], index: 8, kind: input, shape index: {}]   ;;  %s3661_s9 = inlined_call_operand.vmem [shape: f32[1,256], index: 9, kind: input, shape index: {}]   ;;  %s3662_s10 = inlined_call_operand.vmem [shape: f32[1,64], index: 10, kind: input, shape index: {}]   ;;  %s3663_s11 = inlined_call_operand.vmem [shape: bf16[64,4], index: 11, kind: input, shape index: {}]   ;;  %s3664_s12 = inlined_call_operand.vmem [shape: f32[1,4], index: 12, kind: input, shape index: {}]   ;;  %s3665_s13 = inlined_call_operand.hbm [shape: f32[2,4], index: 13, kind: output, shape index: {}]  }
   0x1   :  { %19 = vsyncpa [#allocation6], 0 }
   0x2   :  { %20 = vsyncpa [#allocation4], 0  ;;  %s39_s27 = sshll.u32 %s3659_s7, 4  ;;  %s2962_s28 = smov [#allocation2]   ;;  %s40_s27 = int_to_ptr.hbm [resolvable:$true] %s39_s27 }
   0x3   :  { %s41_s29 = sshll.u32 %s2962_s28, 4  ;;  %s52_s15 = sshll.u32 %s3660_s8, 4  ;;  %s42_s29 = int_to_ptr.vmem [resolvable:$true] %s41_s29  ;;  %s53_s15 = int_to_ptr.hbm [resolvable:$true] %s52_s15 }
   0x4   :  { %s2963_s16 = smov 128   ;;  %s2964_s17 = smov 8  }
   0x5   :  { %47 = dma.hbm_to_vmem [thread:$0]  %s40_s27, 1024, %s42_s29, [#allocation3], %s2963_s16, %s2963_s16, %s2964_s17  }
   0x6   :  { %s2965_s18 = smov [#allocation5]  }
   0x7   :  { %s54_s19 = sshll.u32 %s2965_s18, 4  ;;  %s55_s19 = int_to_ptr.vmem [resolvable:$true] %s54_s19 }
   0x8   :  { %60 = dma.hbm_to_vmem [thread:$0]  %s53_s15, 1024, %s55_s19, [#allocation6], %s2963_s16, %s2963_s16, %s2964_s17  }
   0x9   :  { %2956 = dma.done.wait [#allocation3], 1024  }
   0xa   :  { %2957 = vsyncadd [#allocation3], 4294966272 }
   0xb   :  { %2958 = dma.done.wait [#allocation6], 1024  }
   0xc   :  { %2959 = vsyncadd [#allocation6], 4294966272  ;;  %v2966_v0 = vmov 0   ;;  %v2345_v1 = vld [vmem:[%s3655_s3] sm:$0xf]  ;;  %vm109_vm0 = vcmask 130048  }
   0xd   :  { %2665 = vset.pattern.permute.xlu2 %v2966_v0  ;;  %2667 = vset.pattern.permute.xlu1 %v2966_v0  ;;  %v2589_v2 = vld [vmem:[%s3655_s3 + $0x4] sm:$0xf0]  ;;  %v2588_v3 = vld [vmem:[%s3655_s3 + $0x4] sm:$0xf]  ;;  %v2347_v5 = vld [vmem:[%s3655_s3 + $0x8] sm:$0xf0] }
   0xe   :  { %2666 = vset.pattern.permute.xlu0 %v2966_v0  ;;  %v2346_v4 = vor.u32 %v2589_v2, %v2345_v1  ;;  %v2359_v6 = vld [vmem:[%s3654_s2] sm:$0xf]  ;;  %v2587_v7 = vld [vmem:[%s3654_s2 + $0x4] sm:$0xf0]  ;;  %v2350_v8 = vor.u32 %v2588_v3, %v2347_v5  ;;  %v2393_v12 = vld [vmem:[%s3656_s4 + $0x30] sm:$0xf] }
   0xf   :  { %v2360_v9 = vor.u32 %v2587_v7, %v2359_v6  ;;  %v2577_v10 = vld [vmem:[%s3653_s1] sm:$0xff]  ;;  %v2585_v13 = vld [vmem:[%s3656_s4 + $0x34] sm:$0xf0]  ;;  %v2584_v14 = vld [vmem:[%s3656_s4 + $0x34] sm:$0xf]  ;;  %vm237_vm9 = vcmask 523264  }
  0x10   :  { %v2576_v11 = vld [vmem:[%s3652_s0] sm:$0xff]  ;;  %120 = vmatpush.bf16.msra.mxu0 %v2346_v4  ;;  %v2395_v15 = vld [vmem:[%s3656_s4 + $0x38] sm:$0xf0]  ;;  %134 = vmatpush.bf16.msra.mxu1 %v2350_v8  ;;  %v3084_v16 = vor.u32 %v2585_v13, %v2393_v12  ;;  %v2361_v19 = vld [vmem:[%s3654_s2 + $0x8] sm:$0xf0]  ;;  %s2968_s0 = smov [#allocation7]  }
  0x11   :  { %166 = vmatpush.bf16.msra.mxu2 %v2360_v9  ;;  %v3086_v17 = vor.u32 %v2584_v14, %v2395_v15  ;;  %v2586_v18 = vld [vmem:[%s3654_s2 + $0x4] sm:$0xf]  ;;  %v2385_v20 = vld [vmem:[%s3656_s4 + $0x20] sm:$0xf]  ;;  %v2583_v22 = vld [vmem:[%s3656_s4 + $0x24] sm:$0xf0] }
  0x12   :  { %v2364_v21 = vor.u32 %v2586_v18, %v2361_v19  ;;  %v2582_v23 = vld [vmem:[%s3656_s4 + $0x24] sm:$0xf]  ;;  %v2387_v24 = vld [vmem:[%s3656_s4 + $0x28] sm:$0xf0]  ;;  %v2580_v26 = vld [vmem:[%s3656_s4 + $0x14] sm:$0xf]  ;;  %v3119_v28 = vor.u32 %v2583_v22, %v2385_v20 }
  0x13   :  { %2351 = vmatmul.msk.bf16.vlgmr.msra.gmra.mxu0 %vm109_vm0, %v2577_v10  ;;  %v3108_v25 = vor.u32 %v2582_v23, %v2387_v24  ;;  %2352 = vmatmul.msk.bf16.vlgmr.msra.gmra.mxu1 %vm109_vm0, %v2577_v10  ;;  %v2379_v27 = vld [vmem:[%s3656_s4 + $0x18] sm:$0xf0]  ;;  %v2377_v29 = vld [vmem:[%s3656_s4 + $0x10] sm:$0xf]  ;;  %v2581_v30 = vld [vmem:[%s3656_s4 + $0x14] sm:$0xf0] }
  0x14   :  { %258 = vmatpush.bf16.msrb.mxu1 %v3086_v17  ;;  %2365 = vmatmul.msk.bf16.vlgmr.msra.gmra.mxu2 %vm109_vm0, %v2576_v11  ;;  %v3130_v31 = vor.u32 %v2580_v26, %v2379_v27  ;;  %v2578_v32 = vld [vmem:[%s3656_s4 + $0x4] sm:$0xf]  ;;  %v2371_v33 = vld [vmem:[%s3656_s4 + $0x8] sm:$0xf0]  ;;  %v3140_v34 = vor.u32 %v2581_v30, %v2377_v29  ;;  %v2369_v35 = vld [vmem:[%s3656_s4] sm:$0xf] }
  0x15   :  { %245 = vmatpush.bf16.msrb.mxu0 %v3084_v16  ;;  %180 = vmatpush.bf16.msra.mxu3 %v2364_v21  ;;  %v2579_v36 = vld [vmem:[%s3656_s4 + $0x4] sm:$0xf0]  ;;  %v3151_v37 = vor.u32 %v2578_v32, %v2371_v33  ;;  %v187_v43 = vld [vmem:[%s3657_s5] sm:$0x3]  ;;  %s2967_s5 = smov 64   ;;  %s2326_s21 = sshll.u32 %s2968_s0, 4  ;;  %s2327_s21 = int_to_ptr.vmem [resolvable:$true] %s2326_s21 }
  0x16   :  { %328 = vmatpush.bf16.msrb.mxu2 %v3084_v16  ;;  %v3154_v38 = vor.u32 %v2579_v36, %v2369_v35  ;;  %v189_v47 = vperm.slane %v187_v43, 0  ;;  %v190_v56 = vperm.slane %v187_v43, 1  ;;  %s2328_s24 = sshll.u32 %s3665_s13, 4  ;;  %s2329_s24 = int_to_ptr.hbm [resolvable:$true] %s2328_s24 }
  0x18   :  { %259 = vmatpush.bf16.msrb.mxu1 %v3108_v25  ;;  %2366 = vmatmul.msk.bf16.vlgmr.msra.gmra.mxu3 %vm109_vm0, %v2576_v11 }
  0x19   :  { %341 = vmatpush.bf16.msrb.mxu3 %v3086_v17  ;;  %246 = vmatpush.bf16.msrb.mxu0 %v3119_v28 }
  0x1a   :  { %329 = vmatpush.bf16.msrb.mxu2 %v3119_v28 }
  0x1c   :  { %260 = vmatpush.bf16.msrb.mxu1 %v3130_v31 }
  0x1d   :  { %342 = vmatpush.bf16.msrb.mxu3 %v3108_v25  ;;  %247 = vmatpush.bf16.msrb.mxu0 %v3140_v34 }
  0x1e   :  { %330 = vmatpush.bf16.msrb.mxu2 %v3140_v34 }
  0x20   :  { %261 = vmatpush.bf16.msrb.mxu1 %v3151_v37 }
  0x21   :  { %343 = vmatpush.bf16.msrb.mxu3 %v3130_v31  ;;  %248 = vmatpush.bf16.msrb.mxu0 %v3154_v38 }
  0x22   :  { %331 = vmatpush.bf16.msrb.mxu2 %v3154_v38 }
  0x23   :  { %262 = vmatmul.bf16.vlgmr.msrb.gmra.mxu1 %v2966_v0 }
  0x24   :  { %434 = vmatpush.bf16.msra.mxu1 %v3086_v17  ;;  %249 = vmatmul.bf16.vlgmr.msrb.gmra.mxu0 %v2966_v0 }
  0x25   :  { %344 = vmatpush.bf16.msrb.mxu3 %v3151_v37  ;;  %421 = vmatpush.bf16.msra.mxu0 %v3084_v16 }
  0x26   :  { %514 = vmatpush.bf16.msra.mxu2 %v3084_v16 }
  0x28   :  { %435 = vmatpush.bf16.msra.mxu1 %v3108_v25 }
  0x29   :  { %527 = vmatpush.bf16.msra.mxu3 %v3086_v17  ;;  %422 = vmatpush.bf16.msra.mxu0 %v3119_v28 }
  0x2a   :  { %515 = vmatpush.bf16.msra.mxu2 %v3119_v28 }
  0x2c   :  { %436 = vmatpush.bf16.msra.mxu1 %v3130_v31 }
  0x2d   :  { %528 = vmatpush.bf16.msra.mxu3 %v3108_v25  ;;  %423 = vmatpush.bf16.msra.mxu0 %v3140_v34 }
  0x2e   :  { %516 = vmatpush.bf16.msra.mxu2 %v3140_v34 }
  0x30   :  { %437 = vmatpush.bf16.msra.mxu1 %v3151_v37 }
  0x31   :  { %529 = vmatpush.bf16.msra.mxu3 %v3130_v31  ;;  %424 = vmatpush.bf16.msra.mxu0 %v3154_v38 }
  0x32   :  { %517 = vmatpush.bf16.msra.mxu2 %v3154_v38 }
  0x34   :  { %620 = vmatpush.bf16.msrb.mxu1 %v3086_v17 }
  0x35   :  { %607 = vmatpush.bf16.msrb.mxu0 %v3084_v16  ;;  %530 = vmatpush.bf16.msra.mxu3 %v3151_v37 }
  0x38   :  { %621 = vmatpush.bf16.msrb.mxu1 %v3108_v25 }
  0x39   :  { %608 = vmatpush.bf16.msrb.mxu0 %v3119_v28 }
  0x3c   :  { %622 = vmatpush.bf16.msrb.mxu1 %v3130_v31 }
  0x3d   :  { %609 = vmatpush.bf16.msrb.mxu0 %v3140_v34 }
  0x40   :  { %623 = vmatpush.bf16.msrb.mxu1 %v3151_v37 }
  0x41   :  { %610 = vmatpush.bf16.msrb.mxu0 %v3154_v38 }
  0x90   :  { %v122_v39 = vpop.f32.mrf.mxu0  ;;  %v136_v40 = vpop.f32.mrf.mxu1 }
  0x97   :  { %v168_v41 = vpop.f32.mrf.mxu2 }
  0x98   :  { %v124_v42 = vpop.f32.mrf.mxu0  ;;  %v138_v44 = vpop.f32.mrf.mxu1  ;;  %v169_v46 = vadd.f32 %v168_v41, %v122_v39 }
  0x9a   :  { %v3191_v49 = vadd.f32 %v189_v47, %v169_v46 }
  0x9b   :  { %v182_v45 = vpop.f32.mrf.mxu3 }
  0x9c   :  { %v183_v1 = vadd.f32 %v182_v45, %v136_v40 }
  0x9e   :  { %v3198_v2 = vadd.f32 %v190_v56, %v183_v1 }
  0x9f   :  { %v170_v48 = vpop.f32.mrf.mxu2 }
  0xa0   :  { %v171_v50 = vadd.f32 %v170_v48, %v124_v42  ;;  %v263_v52 = vpop.f32.mrf.mxu1 }
  0xa1   :  { %v250_v51 = vpop.f32.mrf.mxu0  ;;  %v268_v5 = vadd.f32 %v263_v52, %v3198_v2 }
  0xa2   :  { %v3193_v53 = vadd.f32 %v189_v47, %v171_v50  ;;  %v267_v54 = vadd.f32 %v250_v51, %v3191_v49 }
  0xa3   :  { %v184_v55 = vpop.f32.mrf.mxu3  ;;  %v2400_v18 = vmul.f32 -1.442695, %v268_v5 }
  0xa4   :  { %v2399_v57 = vmul.f32 -1.442695, %v267_v54  ;;  %v185_v58 = vadd.f32 %v184_v55, %v138_v44 }
  0xa6   :  { %2670 = vpow2.f32 %v2399_v57  ;;  %v3196_v59 = vadd.f32 %v190_v56, %v185_v58 }
  0xa8   :  { %v265_v61 = vpop.f32.mrf.mxu1 }
  0xa9   :  { %v252_v60 = vpop.f32.mrf.mxu0 }
  0xac   :  { %v2671_v62 = vpop.eup %2670 }
  0xad   :  { %v275_v63 = vadd.f32 1.0, %v2671_v62 }
  0xaf   :  { %2672 = vrcp.f32 %v275_v63  ;;  %v288_v7 = vand.u32 2147483648, %v275_v63  ;;  %v286_v9 = vand.u32 2147483647, %v275_v63  ;;  %vm282_vm2 = vweird.f32 %v275_v63 }
  0xb0   :  { %2674 = vtanh.f32 %v268_v5 }
  0xb1   :  { %v289_v11 = vor.u32 1.1754944e-38, %v288_v7  ;;  %vm287_vm4 = vcmp.eq.f32.partialorder %v286_v9, 8.507059e+37  ;;  %2676 = vpow2.f32 %v2400_v18 }
  0xb5   :  { %v2673_v3 = vpop.eup %2672 }
  0xb6   :  { %v278_v4 = vmul.f32 %v2673_v3, %v275_v63  ;;  %vm283_vm1 = vweird.f32 %v2673_v3  ;;  %v2675_v13 = vpop.eup %2674 }
  0xb7   :  { %vm284_vm3 = vmor %vm282_vm2, %vm283_vm1  ;;  %v2677_v19 = vpop.eup %2676 }
  0xb8   :  { %v279_v6 = vsub.f32 1.0, %v278_v4  ;;  %v276_v20 = vadd.f32 1.0, %v2677_v19 }
  0xba   :  { %v280_v8 = vmul.f32 %v2673_v3, %v279_v6  ;;  %2678 = vrcp.f32 %v276_v20  ;;  %vm297_vm5 = vweird.f32 %v276_v20  ;;  %v303_v32 = vand.u32 2147483648, %v276_v20 }
  0xbb   :  { %v301_v33 = vand.u32 2147483647, %v276_v20 }
  0xbc   :  { %v281_v10 = vadd.f32 %v2673_v3, %v280_v8  ;;  %v304_v36 = vor.u32 1.1754944e-38, %v303_v32 }
  0xbd   :  { %vm302_vm8 = vcmp.eq.f32.partialorder %v301_v33, 8.507059e+37 }
  0xbe   :  { %v285_v12 = vsel %vm284_vm3, %v2673_v3, %v281_v10 }
  0xbf   :  { %v290_v14 = vsel %vm287_vm4, %v289_v11, %v285_v12 }
  0xc0   :  { %v309_v15 = vmul.f32 %v2675_v13, %v290_v14  ;;  %v2679_v21 = vpop.eup %2678  ;;  %v308_v26 = vmul.f32 0.0, %v290_v14 }
  0xc1   :  { %v293_v22 = vmul.f32 %v2679_v21, %v276_v20  ;;  %vm298_vm6 = vweird.f32 %v2679_v21 }
  0xc2   :  { %311 = vrot.lane.b32.xlu0 %v309_v15, %s2967_s5  ;;  %vm299_vm7 = vmor %vm297_vm5, %vm298_vm6 }
  0xc3   :  { %v294_v23 = vsub.f32 1.0, %v293_v22 }
  0xc5   :  { %v295_v24 = vmul.f32 %v2679_v21, %v294_v23 }
  0xc7   :  { %v296_v30 = vadd.f32 %v2679_v21, %v295_v24 }
  0xc9   :  { %v300_v35 = vsel %vm299_vm7, %v2679_v21, %v296_v30 }
  0xca   :  { %v305_v40 = vsel %vm302_vm8, %v304_v36, %v300_v35 }
 0x134   :  { %v312_v27 = vpop.permute.xlu0 %311 }
 0x135   :  { %v314_v29 = vadd.f32 %v312_v27, %v308_v26 }
 0x137   :  { %2680 = vtanh.f32 %v314_v29  ;;  %v398_v4 = vrot.slane %v314_v29, 6 }
 0x13d   :  { %v2681_v39 = vpop.eup %2680 }
 0x13e   :  { %v3202_v41 = vmul.f32 %v2681_v39, %v305_v40 }
 0x140   :  { %v317_v42 = vpack.c.bf16 %v3202_v41, %v3202_v41 }
 0x142   :  { %319 = vrot.lane.b32.xlu0 %v317_v42, %s2967_s5 }
 0x1b4   :  { %v320_v43 = vpop.permute.xlu0 %319 }
 0x1b5   :  { %2401 = vmatmul.msk.bf16.vlgmr.msrb.gmra.mxu2 %vm237_vm9, %v320_v43  ;;  %2402 = vmatmul.msk.bf16.vlgmr.msrb.gmra.mxu3 %vm237_vm9, %v320_v43 }
 0x1b6   :  { %693 = vmatpush.bf16.msrb.mxu2 %v3084_v16  ;;  %706 = vmatpush.bf16.msrb.mxu3 %v3086_v17 }
 0x1ba   :  { %694 = vmatpush.bf16.msrb.mxu2 %v3119_v28  ;;  %707 = vmatpush.bf16.msrb.mxu3 %v3108_v25 }
 0x1be   :  { %695 = vmatpush.bf16.msrb.mxu2 %v3140_v34  ;;  %708 = vmatpush.bf16.msrb.mxu3 %v3130_v31 }
 0x1c2   :  { %696 = vmatpush.bf16.msrb.mxu2 %v3154_v38  ;;  %709 = vmatpush.bf16.msrb.mxu3 %v3151_v37 }
 0x238   :  { %v333_v44 = vpop.f32.mrf.mxu2  ;;  %v346_v45 = vpop.f32.mrf.mxu3 }
 0x239   :  { %v352_v46 = vrot.slane %v333_v44, 6  ;;  %v353_v55 = vrot.slane %v346_v45, 6 }
 0x23b   :  { %v356_v47 = vadd.f32 %v352_v46, %v3191_v49  ;;  %v357_v57 = vadd.f32 %v353_v55, %v3198_v2 }
 0x23d   :  { %v2403_v48 = vmul.f32 -1.442695, %v356_v47  ;;  %v2404_v10 = vmul.f32 -1.442695, %v357_v57 }
 0x23f   :  { %2682 = vpow2.f32 %v2403_v48 }
 0x240   :  { %v335_v50 = vpop.f32.mrf.mxu2  ;;  %v348_v51 = vpop.f32.mrf.mxu3 }
 0x245   :  { %v2683_v52 = vpop.eup %2682 }
 0x246   :  { %v364_v54 = vadd.f32 1.0, %v2683_v52 }
 0x248   :  { %2684 = vrcp.f32 %v364_v54  ;;  %v377_v61 = vand.u32 2147483648, %v364_v54  ;;  %v375_v63 = vand.u32 2147483647, %v364_v54  ;;  %vm371_vm11 = vweird.f32 %v364_v54 }
 0x249   :  { %2686 = vtanh.f32 %v357_v57 }
 0x24a   :  { %v378_v3 = vor.u32 1.1754944e-38, %v377_v61  ;;  %vm376_vm13 = vcmp.eq.f32.partialorder %v375_v63, 8.507059e+37  ;;  %2688 = vpow2.f32 %v2404_v10 }
 0x24e   :  { %v2685_v56 = vpop.eup %2684 }
 0x24f   :  { %v367_v58 = vmul.f32 %v2685_v56, %v364_v54  ;;  %vm372_vm10 = vweird.f32 %v2685_v56  ;;  %v2687_v6 = vpop.eup %2686 }
 0x250   :  { %vm373_vm12 = vmor %vm371_vm11, %vm372_vm10  ;;  %v2689_v11 = vpop.eup %2688 }
 0x251   :  { %v368_v60 = vsub.f32 1.0, %v367_v58  ;;  %v365_v12 = vadd.f32 1.0, %v2689_v11 }
 0x253   :  { %v369_v62 = vmul.f32 %v2685_v56, %v368_v60  ;;  %2690 = vrcp.f32 %v365_v12  ;;  %v392_v22 = vand.u32 2147483648, %v365_v12  ;;  %vm386_vm15 = vweird.f32 %v365_v12 }
 0x254   :  { %v390_v23 = vand.u32 2147483647, %v365_v12 }
 0x255   :  { %v370_v1 = vadd.f32 %v2685_v56, %v369_v62  ;;  %v393_v26 = vor.u32 1.1754944e-38, %v392_v22 }
 0x256   :  { %vm391_vm1 = vcmp.eq.f32.partialorder %v390_v23, 8.507059e+37 }
 0x257   :  { %v374_v5 = vsel %vm373_vm12, %v2685_v56, %v370_v1 }
 0x258   :  { %v379_v7 = vsel %vm376_vm13, %v378_v3, %v374_v5 }
 0x259   :  { %v401_v8 = vmul.f32 %v2687_v6, %v379_v7  ;;  %v400_v9 = vmul.f32 %v398_v4, %v379_v7  ;;  %v2691_v13 = vpop.eup %2690 }
 0x25a   :  { %v382_v14 = vmul.f32 %v2691_v13, %v365_v12  ;;  %vm387_vm14 = vweird.f32 %v2691_v13 }
 0x25b   :  { %403 = vrot.lane.b32.xlu1 %v401_v8, %s2967_s5  ;;  %vm388_vm0 = vmor %vm386_vm15, %vm387_vm14 }
 0x25c   :  { %v383_v15 = vsub.f32 1.0, %v382_v14 }
 0x25e   :  { %v384_v18 = vmul.f32 %v2691_v13, %v383_v15 }
 0x260   :  { %v385_v21 = vadd.f32 %v2691_v13, %v384_v18 }
 0x262   :  { %v389_v24 = vsel %vm388_vm0, %v2691_v13, %v385_v21 }
 0x263   :  { %v394_v29 = vsel %vm391_vm1, %v393_v26, %v389_v24 }
 0x2cd   :  { %v404_v19 = vpop.permute.xlu1 %403 }
 0x2ce   :  { %v406_v20 = vadd.f32 %v404_v19, %v400_v9 }
 0x2d0   :  { %2692 = vtanh.f32 %v406_v20  ;;  %v491_v61 = vrot.slane %v406_v20, 6 }
 0x2d6   :  { %v2693_v27 = vpop.eup %2692 }
 0x2d7   :  { %v3220_v30 = vmul.f32 %v2693_v27, %v394_v29 }
 0x2d9   :  { %v409_v32 = vpack.c.bf16 %v3220_v30, %v3220_v30 }
 0x2db   :  { %v411_v33 = vrot.slane %v409_v32, 1 }
 0x2dd   :  { %412 = vrot.lane.b32.xlu1 %v411_v33, %s2967_s5 }
 0x34f   :  { %v413_v35 = vpop.permute.xlu1 %412 }
 0x350   :  { %2405 = vmatmul.msk.bf16.vlgmr.msra.gmra.mxu0 %vm237_vm9, %v413_v35  ;;  %2406 = vmatmul.msk.bf16.vlgmr.msra.gmra.mxu1 %vm237_vm9, %v413_v35 }
 0x351   :  { %786 = vmatpush.bf16.msra.mxu0 %v3084_v16  ;;  %799 = vmatpush.bf16.msra.mxu1 %v3086_v17 }
 0x355   :  { %787 = vmatpush.bf16.msra.mxu0 %v3119_v28  ;;  %800 = vmatpush.bf16.msra.mxu1 %v3108_v25 }
 0x359   :  { %788 = vmatpush.bf16.msra.mxu0 %v3140_v34  ;;  %801 = vmatpush.bf16.msra.mxu1 %v3130_v31 }
 0x35d   :  { %789 = vmatpush.bf16.msra.mxu0 %v3154_v38  ;;  %802 = vmatpush.bf16.msra.mxu1 %v3151_v37 }
 0x3cd   :  { %v426_v36 = vpop.f32.mrf.mxu0  ;;  %v439_v39 = vpop.f32.mrf.mxu1 }
 0x3ce   :  { %v445_v40 = vrot.slane %v426_v36, 4  ;;  %v446_v48 = vrot.slane %v439_v39, 4 }
 0x3d0   :  { %v449_v42 = vadd.f32 %v445_v40, %v3191_v49  ;;  %v450_v51 = vadd.f32 %v446_v48, %v3198_v2 }
 0x3d2   :  { %v2407_v43 = vmul.f32 -1.442695, %v449_v42  ;;  %v2408_v5 = vmul.f32 -1.442695, %v450_v51 }
 0x3d4   :  { %2694 = vpow2.f32 %v2407_v43 }
 0x3d5   :  { %v428_v44 = vpop.f32.mrf.mxu0  ;;  %v441_v45 = vpop.f32.mrf.mxu1 }
 0x3da   :  { %v2695_v46 = vpop.eup %2694 }
 0x3db   :  { %v457_v47 = vadd.f32 1.0, %v2695_v46 }
 0x3dd   :  { %2696 = vrcp.f32 %v457_v47  ;;  %v470_v55 = vand.u32 2147483648, %v457_v47  ;;  %v468_v57 = vand.u32 2147483647, %v457_v47  ;;  %vm464_vm3 = vweird.f32 %v457_v47 }
 0x3de   :  { %2698 = vtanh.f32 %v450_v51 }
 0x3df   :  { %v471_v60 = vor.u32 1.1754944e-38, %v470_v55  ;;  %vm469_vm5 = vcmp.eq.f32.partialorder %v468_v57, 8.507059e+37  ;;  %2700 = vpow2.f32 %v2408_v5 }
 0x3e3   :  { %v2697_v50 = vpop.eup %2696 }
 0x3e4   :  { %v460_v52 = vmul.f32 %v2697_v50, %v457_v47  ;;  %vm465_vm2 = vweird.f32 %v2697_v50  ;;  %v2699_v63 = vpop.eup %2698 }
 0x3e5   :  { %vm466_vm4 = vmor %vm464_vm3, %vm465_vm2  ;;  %v2701_v6 = vpop.eup %2700 }
 0x3e6   :  { %v461_v54 = vsub.f32 1.0, %v460_v52  ;;  %v458_v7 = vadd.f32 1.0, %v2701_v6 }
 0x3e8   :  { %v462_v56 = vmul.f32 %v2697_v50, %v461_v54  ;;  %2702 = vrcp.f32 %v458_v7  ;;  %v485_v15 = vand.u32 2147483648, %v458_v7  ;;  %vm479_vm7 = vweird.f32 %v458_v7 }
 0x3e9   :  { %v483_v18 = vand.u32 2147483647, %v458_v7 }
 0x3ea   :  { %v463_v58 = vadd.f32 %v2697_v50, %v462_v56  ;;  %v486_v20 = vor.u32 1.1754944e-38, %v485_v15 }
 0x3eb   :  { %vm484_vm10 = vcmp.eq.f32.partialorder %v483_v18, 8.507059e+37 }
 0x3ec   :  { %v467_v62 = vsel %vm466_vm4, %v2697_v50, %v463_v58 }
 0x3ed   :  { %v472_v1 = vsel %vm469_vm5, %v471_v60, %v467_v62 }
 0x3ee   :  { %v494_v3 = vmul.f32 %v2699_v63, %v472_v1  ;;  %v493_v4 = vmul.f32 %v491_v61, %v472_v1  ;;  %v2703_v8 = vpop.eup %2702 }
 0x3ef   :  { %v475_v9 = vmul.f32 %v2703_v8, %v458_v7  ;;  %vm480_vm6 = vweird.f32 %v2703_v8 }
 0x3f0   :  { %496 = vrot.lane.b32.xlu2 %v494_v3, %s2967_s5  ;;  %vm481_vm8 = vmor %vm479_vm7, %vm480_vm6 }
 0x3f1   :  { %v476_v10 = vsub.f32 1.0, %v475_v9 }
 0x3f3   :  { %v477_v11 = vmul.f32 %v2703_v8, %v476_v10 }
 0x3f5   :  { %v478_v14 = vadd.f32 %v2703_v8, %v477_v11 }
 0x3f7   :  { %v482_v19 = vsel %vm481_vm8, %v2703_v8, %v478_v14 }
 0x3f8   :  { %v487_v22 = vsel %vm484_vm10, %v486_v20, %v482_v19 }
 0x44a   :  { %v497_v12 = vpop.permute.xlu2 %496 }
 0x44b   :  { %v499_v13 = vadd.f32 %v497_v12, %v493_v4 }
 0x44d   :  { %2704 = vtanh.f32 %v499_v13  ;;  %v584_v45 = vrot.slane %v499_v13, 6 }
 0x453   :  { %v2705_v21 = vpop.eup %2704 }
 0x454   :  { %v3238_v23 = vmul.f32 %v2705_v21, %v487_v22 }
 0x456   :  { %v502_v24 = vpack.c.bf16 %v3238_v23, %v3238_v23 }
 0x458   :  { %v504_v26 = vrot.slane %v502_v24, 2 }
 0x45a   :  { %505 = vrot.lane.b32.xlu2 %v504_v26, %s2967_s5 }
 0x4b4   :  { %v506_v27 = vpop.permute.xlu2 %505 }
 0x4b5   :  { %2409 = vmatmul.msk.bf16.vlgmr.msra.gmra.mxu2 %vm237_vm9, %v506_v27  ;;  %2410 = vmatmul.msk.bf16.vlgmr.msra.gmra.mxu3 %vm237_vm9, %v506_v27 }
 0x4b6   :  { %879 = vmatpush.bf16.msra.mxu2 %v3084_v16  ;;  %892 = vmatpush.bf16.msra.mxu3 %v3086_v17 }
 0x4ba   :  { %880 = vmatpush.bf16.msra.mxu2 %v3119_v28  ;;  %893 = vmatpush.bf16.msra.mxu3 %v3108_v25 }
 0x4be   :  { %881 = vmatpush.bf16.msra.mxu2 %v3140_v34  ;;  %894 = vmatpush.bf16.msra.mxu3 %v3130_v31 }
 0x4c2   :  { %882 = vmatpush.bf16.msra.mxu2 %v3154_v38  ;;  %895 = vmatpush.bf16.msra.mxu3 %v3151_v37 }
 0x538   :  { %v519_v29 = vpop.f32.mrf.mxu2  ;;  %v532_v32 = vpop.f32.mrf.mxu3 }
 0x539   :  { %v538_v33 = vrot.slane %v519_v29, 2  ;;  %v539_v25 = vrot.slane %v532_v32, 2 }
 0x53b   :  { %v542_v35 = vadd.f32 %v538_v33, %v3191_v49  ;;  %v543_v31 = vadd.f32 %v539_v25, %v3198_v2 }
 0x53d   :  { %v2411_v16 = vmul.f32 -1.442695, %v542_v35  ;;  %v2412_v2 = vmul.f32 -1.442695, %v543_v31 }
 0x53f   :  { %2706 = vpow2.f32 %v2411_v16 }
 0x540   :  { %v521_v17 = vpop.f32.mrf.mxu2  ;;  %v534_v36 = vpop.f32.mrf.mxu3 }
 0x545   :  { %v2707_v28 = vpop.eup %2706 }
 0x546   :  { %v550_v39 = vadd.f32 1.0, %v2707_v28 }
 0x548   :  { %2708 = vrcp.f32 %v550_v39  ;;  %v563_v37 = vand.u32 2147483648, %v550_v39  ;;  %v561_v43 = vand.u32 2147483647, %v550_v39  ;;  %vm557_vm12 = vweird.f32 %v550_v39 }
 0x549   :  { %2710 = vtanh.f32 %v543_v31 }
 0x54a   :  { %v564_v49 = vor.u32 1.1754944e-38, %v563_v37  ;;  %vm562_vm14 = vcmp.eq.f32.partialorder %v561_v43, 8.507059e+37  ;;  %2712 = vpow2.f32 %v2412_v2 }
 0x54e   :  { %v2709_v34 = vpop.eup %2708 }
 0x54f   :  { %v553_v40 = vmul.f32 %v2709_v34, %v550_v39  ;;  %vm558_vm11 = vweird.f32 %v2709_v34  ;;  %v2711_v47 = vpop.eup %2710 }
 0x550   :  { %vm559_vm13 = vmor %vm557_vm12, %vm558_vm11  ;;  %v2713_v52 = vpop.eup %2712 }
 0x551   :  { %v554_v38 = vsub.f32 1.0, %v553_v40  ;;  %v551_v54 = vadd.f32 1.0, %v2713_v52 }
 0x553   :  { %v555_v42 = vmul.f32 %v2709_v34, %v554_v38  ;;  %2714 = vrcp.f32 %v551_v54  ;;  %v578_v63 = vand.u32 2147483648, %v551_v54  ;;  %vm572_vm0 = vweird.f32 %v551_v54 }
 0x554   :  { %v576_v1 = vand.u32 2147483647, %v551_v54 }
 0x555   :  { %v556_v44 = vadd.f32 %v2709_v34, %v555_v42  ;;  %v579_v4 = vor.u32 1.1754944e-38, %v578_v63 }
 0x556   :  { %vm577_vm2 = vcmp.eq.f32.partialorder %v576_v1, 8.507059e+37 }
 0x557   :  { %v560_v46 = vsel %vm559_vm13, %v2709_v34, %v556_v44 }
 0x558   :  { %v565_v48 = vsel %vm562_vm14, %v564_v49, %v560_v46 }
 0x559   :  { %v587_v50 = vmul.f32 %v2711_v47, %v565_v48  ;;  %v586_v51 = vmul.f32 %v584_v45, %v565_v48  ;;  %v2715_v55 = vpop.eup %2714 }
 0x55a   :  { %v568_v56 = vmul.f32 %v2715_v55, %v551_v54  ;;  %vm573_vm15 = vweird.f32 %v2715_v55 }
 0x55b   :  { %589 = vrot.lane.b32.xlu0 %v587_v50, %s2967_s5  ;;  %vm574_vm1 = vmor %vm572_vm0, %vm573_vm15 }
 0x55c   :  { %v569_v57 = vsub.f32 1.0, %v568_v56 }
 0x55e   :  { %v570_v58 = vmul.f32 %v2715_v55, %v569_v57 }
 0x560   :  { %v571_v62 = vadd.f32 %v2715_v55, %v570_v58 }
 0x562   :  { %v575_v3 = vsel %vm574_vm1, %v2715_v55, %v571_v62 }
 0x563   :  { %v580_v6 = vsel %vm577_vm2, %v579_v4, %v575_v3 }
 0x5cd   :  { %v590_v60 = vpop.permute.xlu0 %589 }
 0x5ce   :  { %v592_v61 = vadd.f32 %v590_v60, %v586_v51 }
 0x5d0   :  { %2716 = vtanh.f32 %v592_v61  ;;  %v671_v16 = vrot.slane %v592_v61, 6 }
 0x5d6   :  { %v2717_v5 = vpop.eup %2716 }
 0x5d7   :  { %v3256_v7 = vmul.f32 %v2717_v5, %v580_v6 }
 0x5d9   :  { %v595_v8 = vpack.c.bf16 %v3256_v7, %v3256_v7 }
 0x5db   :  { %v597_v9 = vrot.slane %v595_v8, 3 }
 0x5dd   :  { %598 = vrot.lane.b32.xlu1 %v597_v9, %s2967_s5 }
 0x64f   :  { %v599_v10 = vpop.permute.xlu1 %598 }
 0x650   :  { %2413 = vmatmul.msk.bf16.vlgmr.msrb.gmra.mxu0 %vm237_vm9, %v599_v10  ;;  %2414 = vmatmul.msk.bf16.vlgmr.msrb.gmra.mxu1 %vm237_vm9, %v599_v10 }
 0x6cd   :  { %v612_v11 = vpop.f32.mrf.mxu0  ;;  %v625_v12 = vpop.f32.mrf.mxu1 }
 0x6ce   :  { %v629_v13 = vadd.f32 %v612_v11, %v3193_v53  ;;  %v630_v22 = vadd.f32 %v625_v12, %v3196_v59 }
 0x6d0   :  { %v2415_v14 = vmul.f32 -1.442695, %v629_v13  ;;  %v2416_v34 = vmul.f32 -1.442695, %v630_v22 }
 0x6d2   :  { %2718 = vpow2.f32 %v2415_v14 }
 0x6d5   :  { %v614_v15 = vpop.f32.mrf.mxu0  ;;  %v627_v18 = vpop.f32.mrf.mxu1 }
 0x6d8   :  { %v2719_v19 = vpop.eup %2718 }
 0x6d9   :  { %v637_v20 = vadd.f32 1.0, %v2719_v19 }
 0x6db   :  { %2720 = vrcp.f32 %v637_v20  ;;  %v650_v27 = vand.u32 2147483648, %v637_v20  ;;  %v648_v32 = vand.u32 2147483647, %v637_v20  ;;  %vm644_vm4 = vweird.f32 %v637_v20 }
 0x6dc   :  { %2722 = vtanh.f32 %v630_v22 }
 0x6dd   :  { %v651_v35 = vor.u32 1.1754944e-38, %v650_v27  ;;  %vm649_vm6 = vcmp.eq.f32.partialorder %v648_v32, 8.507059e+37  ;;  %2724 = vpow2.f32 %v2416_v34 }
 0x6e1   :  { %v2721_v21 = vpop.eup %2720 }
 0x6e2   :  { %v640_v24 = vmul.f32 %v2721_v21, %v637_v20  ;;  %vm645_vm3 = vweird.f32 %v2721_v21  ;;  %v2723_v36 = vpop.eup %2722 }
 0x6e3   :  { %vm646_vm5 = vmor %vm644_vm4, %vm645_vm3  ;;  %v2725_v31 = vpop.eup %2724 }
 0x6e4   :  { %v641_v26 = vsub.f32 1.0, %v640_v24  ;;  %v638_v40 = vadd.f32 1.0, %v2725_v31 }
 0x6e6   :  { %v642_v29 = vmul.f32 %v2721_v21, %v641_v26  ;;  %2726 = vrcp.f32 %v638_v40  ;;  %v665_v46 = vand.u32 2147483648, %v638_v40  ;;  %vm659_vm8 = vweird.f32 %v638_v40 }
 0x6e7   :  { %v663_v47 = vand.u32 2147483647, %v638_v40 }
 0x6e8   :  { %v643_v33 = vadd.f32 %v2721_v21, %v642_v29  ;;  %v666_v50 = vor.u32 1.1754944e-38, %v665_v46 }
 0x6e9   :  { %vm664_vm11 = vcmp.eq.f32.partialorder %v663_v47, 8.507059e+37 }
 0x6ea   :  { %v647_v17 = vsel %vm646_vm5, %v2721_v21, %v643_v33 }
 0x6eb   :  { %v652_v28 = vsel %vm649_vm6, %v651_v35, %v647_v17 }
 0x6ec   :  { %v674_v39 = vmul.f32 %v2723_v36, %v652_v28  ;;  %v673_v25 = vmul.f32 %v671_v16, %v652_v28  ;;  %v2727_v38 = vpop.eup %2726 }
 0x6ed   :  { %v655_v37 = vmul.f32 %v2727_v38, %v638_v40  ;;  %vm660_vm7 = vweird.f32 %v2727_v38 }
 0x6ee   :  { %676 = vrot.lane.b32.xlu2 %v674_v39, %s2967_s5  ;;  %vm661_vm10 = vmor %vm659_vm8, %vm660_vm7 }
 0x6ef   :  { %v656_v42 = vsub.f32 1.0, %v655_v37 }
 0x6f1   :  { %v657_v43 = vmul.f32 %v2727_v38, %v656_v42 }
 0x6f3   :  { %v658_v45 = vadd.f32 %v2727_v38, %v657_v43 }
 0x6f5   :  { %v662_v48 = vsel %vm661_vm10, %v2727_v38, %v658_v45 }
 0x6f6   :  { %v667_v2 = vsel %vm664_vm11, %v666_v50, %v662_v48 }
 0x748   :  { %v677_v44 = vpop.permute.xlu2 %676 }
 0x749   :  { %v679_v49 = vadd.f32 %v677_v44, %v673_v25 }
 0x74b   :  { %2728 = vtanh.f32 %v679_v49  ;;  %v763_v15 = vrot.slane %v679_v49, 6 }
 0x751   :  { %v2729_v51 = vpop.eup %2728 }
 0x752   :  { %v3266_v52 = vmul.f32 %v2729_v51, %v667_v2 }
 0x754   :  { %v682_v54 = vpack.c.bf16 %v3266_v52, %v3266_v52 }
 0x756   :  { %684 = vrot.lane.b32.xlu0 %v682_v54, %s2967_s5 }
 0x7c8   :  { %v685_v55 = vpop.permute.xlu0 %684 }
 0x7c9   :  { %2417 = vmatmul.msk.bf16.vlgmr.msrb.gmra.mxu2 %vm237_vm9, %v685_v55  ;;  %2418 = vmatmul.msk.bf16.vlgmr.msrb.gmra.mxu3 %vm237_vm9, %v685_v55 }
 0x84c   :  { %v698_v56 = vpop.f32.mrf.mxu2  ;;  %v711_v57 = vpop.f32.mrf.mxu3 }
 0x84d   :  { %v717_v58 = vrot.slane %v698_v56, 6  ;;  %v718_v4 = vrot.slane %v711_v57, 6 }
 0x84f   :  { %v721_v60 = vadd.f32 %v717_v58, %v3193_v53  ;;  %v722_v6 = vadd.f32 %v718_v4, %v3196_v59 }
 0x851   :  { %v2419_v61 = vmul.f32 -1.442695, %v721_v60  ;;  %v2420_v24 = vmul.f32 -1.442695, %v722_v6 }
 0x853   :  { %2730 = vpow2.f32 %v2419_v61 }
 0x854   :  { %v700_v62 = vpop.f32.mrf.mxu2  ;;  %v713_v63 = vpop.f32.mrf.mxu3 }
 0x859   :  { %v2731_v1 = vpop.eup %2730 }
 0x85a   :  { %v729_v3 = vadd.f32 1.0, %v2731_v1 }
 0x85c   :  { %2732 = vrcp.f32 %v729_v3  ;;  %v742_v10 = vand.u32 2147483648, %v729_v3  ;;  %v740_v12 = vand.u32 2147483647, %v729_v3  ;;  %vm736_vm13 = vweird.f32 %v729_v3 }
 0x85d   :  { %2734 = vtanh.f32 %v722_v6 }
 0x85e   :  { %v743_v14 = vor.u32 1.1754944e-38, %v742_v10  ;;  %vm741_vm15 = vcmp.eq.f32.partialorder %v740_v12, 8.507059e+37  ;;  %2736 = vpow2.f32 %v2420_v24 }
 0x862   :  { %v2733_v5 = vpop.eup %2732 }
 0x863   :  { %v732_v8 = vmul.f32 %v2733_v5, %v729_v3  ;;  %vm737_vm12 = vweird.f32 %v2733_v5  ;;  %v2735_v19 = vpop.eup %2734 }
 0x864   :  { %vm738_vm14 = vmor %vm736_vm13, %vm737_vm12  ;;  %v2737_v26 = vpop.eup %2736 }
 0x865   :  { %v733_v9 = vsub.f32 1.0, %v732_v8  ;;  %v730_v27 = vadd.f32 1.0, %v2737_v26 }
 0x867   :  { %v734_v11 = vmul.f32 %v2733_v5, %v733_v9  ;;  %2738 = vrcp.f32 %v730_v27  ;;  %v757_v28 = vand.u32 2147483648, %v730_v27  ;;  %vm751_vm1 = vweird.f32 %v730_v27 }
 0x868   :  { %v755_v39 = vand.u32 2147483647, %v730_v27 }
 0x869   :  { %v735_v13 = vadd.f32 %v2733_v5, %v734_v11  ;;  %v758_v34 = vor.u32 1.1754944e-38, %v757_v28  ;;  %v996_v28 = vrot.slane %v3266_v52, 2 }
 0x86a   :  { %vm756_vm3 = vcmp.eq.f32.partialorder %v755_v39, 8.507059e+37 }
 0x86b   :  { %v739_v18 = vsel %vm738_vm14, %v2733_v5, %v735_v13  ;;  %v2630_v39 = vpack.i.bf16 %v996_v28, %v3256_v7  ;;  %v2489_v28 = vld [vmem:[%s3658_s6 + $0x30] sm:$0xf] }
 0x86c   :  { %v744_v20 = vsel %vm741_vm15, %v743_v14, %v739_v18 }
 0x86d   :  { %v766_v21 = vmul.f32 %v2735_v19, %v744_v20  ;;  %v765_v22 = vmul.f32 %v763_v15, %v744_v20  ;;  %v2739_v29 = vpop.eup %2738 }
 0x86e   :  { %v747_v32 = vmul.f32 %v2739_v29, %v730_v27  ;;  %vm752_vm0 = vweird.f32 %v2739_v29 }
 0x86f   :  { %768 = vrot.lane.b32.xlu1 %v766_v21, %s2967_s5  ;;  %vm753_vm2 = vmor %vm751_vm1, %vm752_vm0 }
 0x870   :  { %v748_v33 = vsub.f32 1.0, %v747_v32 }
 0x872   :  { %v749_v35 = vmul.f32 %v2739_v29, %v748_v33 }
 0x874   :  { %v750_v36 = vadd.f32 %v2739_v29, %v749_v35 }
 0x876   :  { %v754_v25 = vsel %vm753_vm2, %v2739_v29, %v750_v36 }
 0x877   :  { %v759_v40 = vsel %vm756_vm3, %v758_v34, %v754_v25 }
 0x8e1   :  { %v769_v16 = vpop.permute.xlu1 %768 }
 0x8e2   :  { %v771_v17 = vadd.f32 %v769_v16, %v765_v22 }
 0x8e4   :  { %2740 = vtanh.f32 %v771_v17  ;;  %v856_v3 = vrot.slane %v771_v17, 6 }
 0x8ea   :  { %v2741_v31 = vpop.eup %2740 }
 0x8eb   :  { %v3276_v38 = vmul.f32 %v2741_v31, %v759_v40  ;;  %v1004_v31 = vrot.slane %v3256_v7, 6 }
 0x8ed   :  { %v774_v37 = vpack.c.bf16 %v3276_v38, %v3276_v38  ;;  %v986_v10 = vrot.slane %v3276_v38, 6  ;;  %v2660_v40 = vpack.i.bf16 %v1004_v31, %v3266_v52  ;;  %v2491_v31 = vld [vmem:[%s3658_s6 + $0x38] sm:$0xf0] }
 0x8ef   :  { %v776_v42 = vrot.slane %v774_v37, 1  ;;  %v2625_v11 = vpack.i.bf16 %v986_v10, %v3238_v23 }
 0x8f1   :  { %777 = vrot.lane.b32.xlu2 %v776_v42, %s2967_s5 }
 0x94b   :  { %v778_v43 = vpop.permute.xlu2 %777 }
 0x94c   :  { %2421 = vmatmul.msk.bf16.vlgmr.msra.gmra.mxu0 %vm237_vm9, %v778_v43  ;;  %2422 = vmatmul.msk.bf16.vlgmr.msra.gmra.mxu1 %vm237_vm9, %v778_v43 }
 0x9c9   :  { %v791_v44 = vpop.f32.mrf.mxu0  ;;  %v804_v49 = vpop.f32.mrf.mxu1 }
 0x9ca   :  { %v810_v45 = vrot.slane %v791_v44, 4  ;;  %v811_v54 = vrot.slane %v804_v49, 4 }
 0x9cc   :  { %v814_v46 = vadd.f32 %v810_v45, %v3193_v53  ;;  %v815_v56 = vadd.f32 %v811_v54, %v3196_v59 }
 0x9ce   :  { %v2423_v47 = vmul.f32 -1.442695, %v814_v46  ;;  %v2424_v12 = vmul.f32 -1.442695, %v815_v56 }
 0x9d0   :  { %2742 = vpow2.f32 %v2423_v47 }
 0x9d1   :  { %v793_v48 = vpop.f32.mrf.mxu0  ;;  %v806_v50 = vpop.f32.mrf.mxu1 }
 0x9d6   :  { %v2743_v51 = vpop.eup %2742 }
 0x9d7   :  { %v822_v2 = vadd.f32 1.0, %v2743_v51 }
 0x9d9   :  { %2744 = vrcp.f32 %v822_v2  ;;  %v835_v60 = vand.u32 2147483648, %v822_v2  ;;  %v833_v62 = vand.u32 2147483647, %v822_v2  ;;  %vm829_vm5 = vweird.f32 %v822_v2 }
 0x9da   :  { %2746 = vtanh.f32 %v815_v56 }
 0x9db   :  { %v836_v1 = vor.u32 1.1754944e-38, %v835_v60  ;;  %vm834_vm7 = vcmp.eq.f32.partialorder %v833_v62, 8.507059e+37  ;;  %2748 = vpow2.f32 %v2424_v12 }
 0x9df   :  { %v2745_v55 = vpop.eup %2744 }
 0x9e0   :  { %v825_v57 = vmul.f32 %v2745_v55, %v822_v2  ;;  %vm830_vm4 = vweird.f32 %v2745_v55  ;;  %v2747_v5 = vpop.eup %2746 }
 0x9e1   :  { %vm831_vm6 = vmor %vm829_vm5, %vm830_vm4  ;;  %v2749_v13 = vpop.eup %2748  ;;  %vm969_vm5 = vcmask 261120  }
 0x9e2   :  { %v826_v58 = vsub.f32 1.0, %v825_v57  ;;  %v823_v14 = vadd.f32 1.0, %v2749_v13 }
 0x9e4   :  { %v827_v61 = vmul.f32 %v2745_v55, %v826_v58  ;;  %2750 = vrcp.f32 %v823_v14  ;;  %v850_v26 = vand.u32 2147483648, %v823_v14  ;;  %vm844_vm10 = vweird.f32 %v823_v14 }
 0x9e5   :  { %v848_v27 = vand.u32 2147483647, %v823_v14 }
 0x9e6   :  { %v828_v63 = vadd.f32 %v2745_v55, %v827_v61  ;;  %v851_v32 = vor.u32 1.1754944e-38, %v850_v26  ;;  %v1028_v26 = vrot.slane %v3202_v41, 2 }
 0x9e7   :  { %vm849_vm12 = vcmp.eq.f32.partialorder %v848_v27, 8.507059e+37 }
 0x9e8   :  { %v832_v4 = vsel %vm831_vm6, %v2745_v55, %v828_v63  ;;  %vm1033_vm6 = vcmask 1041408  }
 0x9e9   :  { %v837_v6 = vsel %vm834_vm7, %v836_v1, %v832_v4  ;;  %vm1035_vm7 = vcmask 1043456  }
 0x9ea   :  { %v859_v8 = vmul.f32 %v2747_v5, %v837_v6  ;;  %v858_v9 = vmul.f32 %v856_v3, %v837_v6  ;;  %v2751_v15 = vpop.eup %2750  ;;  %v1012_v5 = vrot.slane %v3238_v23, 2 }
 0x9eb   :  { %v840_v18 = vmul.f32 %v2751_v15, %v823_v14  ;;  %vm845_vm8 = vweird.f32 %v2751_v15 }
 0x9ec   :  { %861 = vrot.lane.b32.xlu0 %v859_v8, %s2967_s5  ;;  %vm846_vm11 = vmor %vm844_vm10, %vm845_vm8  ;;  %v2645_v6 = vpack.i.bf16 %v1012_v5, %v3276_v38  ;;  %v2433_v5 = vld [vmem:[#allocation2 + $0x8] sm:$0xf0]  ;;  %vm1037_vm8 = vcmask 1045504  }
 0x9ed   :  { %v841_v19 = vsub.f32 1.0, %v840_v18 }
 0x9ef   :  { %v842_v20 = vmul.f32 %v2751_v15, %v841_v19 }
 0x9f1   :  { %v843_v24 = vadd.f32 %v2751_v15, %v842_v20 }
 0x9f3   :  { %v847_v29 = vsel %vm846_vm11, %v2751_v15, %v843_v24 }
 0x9f4   :  { %2626 = vrot.lane.b32.xlu0 %v2625_v11, %s2967_s5  ;;  %v852_v35 = vsel %vm849_vm12, %v851_v32, %v847_v29 }
 0xa5e   :  { %v862_v21 = vpop.permute.xlu0 %861 }
 0xa5f   :  { %v864_v22 = vadd.f32 %v862_v21, %v858_v9 }
 0xa61   :  { %2752 = vtanh.f32 %v864_v22  ;;  %v949_v60 = vrot.slane %v864_v22, 6 }
 0xa67   :  { %v2753_v33 = vpop.eup %2752 }
 0xa68   :  { %v866_v16 = vmul.f32 %v2753_v33, %v852_v35  ;;  %v2455_v33 = vld [vmem:[#allocation2 + $0x30] sm:$0xf]  ;;  %v2613_v35 = vld [vmem:[#allocation2 + $0x34] sm:$0xf0] }
 0xa6a   :  { %v867_v17 = vpack.c.bf16 %v866_v16, %v866_v16  ;;  %v976_v25 = vrot.slane %v866_v16, 2 }
 0xa6c   :  { %v869_v36 = vrot.slane %v867_v17, 2  ;;  %v2640_v34 = vpack.i.bf16 %v976_v25, %v3220_v30  ;;  %v2456_v17 = vor.u32 %v2613_v35, %v2455_v33  ;;  %v2592_v35 = vld [vmem:[#allocation5 + $0x14] sm:$0xf] }
 0xa6e   :  { %870 = vrot.lane.b32.xlu1 %v869_v36, %s2967_s5  ;;  %v2457_v36 = vld [vmem:[#allocation2 + $0x38] sm:$0xf0]  ;;  %1145 = vmatpush.bf16.msrb.mxu0 %v2456_v17 }
 0xa76   :  { %2631 = vrot.lane.b32.xlu1 %v2630_v39, %s2967_s5  ;;  %v2605_v39 = vld [vmem:[%s3658_s6 + $0x34] sm:$0xf0] }
 0xa7e   :  { %2641 = vrot.lane.b32.xlu1 %v2640_v34, %s2967_s5  ;;  %v2490_v34 = vor.u32 %v2605_v39, %v2489_v28 }
 0xa80   :  { %1216 = vmatpush.bf16.msrb.mxu2 %v2490_v34  ;;  %v2591_v34 = vld [vmem:[#allocation5 + $0x4] sm:$0xf0] }
 0xa86   :  { %2661 = vrot.lane.b32.xlu1 %v2660_v40, %s2967_s5 }
 0xae0   :  { %v871_v37 = vpop.permute.xlu1 %870 }
 0xae1   :  { %2425 = vmatmul.msk.bf16.vlgmr.msra.gmra.mxu2 %vm237_vm9, %v871_v37  ;;  %2426 = vmatmul.msk.bf16.vlgmr.msra.gmra.mxu3 %vm237_vm9, %v871_v37  ;;  %v2447_v37 = vld [vmem:[#allocation2 + $0x20] sm:$0xf] }
 0xb64   :  { %v884_v42 = vpop.f32.mrf.mxu2  ;;  %v897_v43 = vpop.f32.mrf.mxu3 }
 0xb65   :  { %v903_v44 = vrot.slane %v884_v42, 2  ;;  %v904_v52 = vrot.slane %v897_v43, 2  ;;  %v2611_v42 = vld [vmem:[#allocation2 + $0x24] sm:$0xf0]  ;;  %v2610_v43 = vld [vmem:[#allocation2 + $0x24] sm:$0xf] }
 0xb67   :  { %v907_v49 = vadd.f32 %v903_v44, %v3193_v53  ;;  %v908_v51 = vadd.f32 %v904_v52, %v3196_v59  ;;  %v1020_v59 = vrot.slane %v3220_v30, 6  ;;  %v2448_v44 = vor.u32 %v2611_v42, %v2447_v37  ;;  %v2483_v52 = vld [vmem:[%s3658_s6 + $0x28] sm:$0xf0] }
 0xb69   :  { %v2427_v45 = vmul.f32 -1.442695, %v907_v49  ;;  %v2635_v4 = vpack.i.bf16 %v1020_v59, %v866_v16  ;;  %v2428_v8 = vmul.f32 -1.442695, %v908_v51  ;;  %v2612_v16 = vld [vmem:[#allocation2 + $0x34] sm:$0xf]  ;;  %1146 = vmatpush.bf16.msrb.mxu0 %v2448_v44 }
 0xb6a   :  { %v2460_v25 = vor.u32 %v2612_v16, %v2457_v36  ;;  %v2449_v49 = vld [vmem:[#allocation2 + $0x28] sm:$0xf0]  ;;  %v2606_v59 = vld [vmem:[#allocation2 + $0x4] sm:$0xf]  ;;  %v2509_v16 = vld [vmem:[#allocation5 + $0x18] sm:$0xf0]  ;;  %v2627_v36 = vpop.permute.xlu0 %2626 }
 0xb6b   :  { %2754 = vpow2.f32 %v2427_v45  ;;  %v2481_v45 = vld [vmem:[%s3658_s6 + $0x20] sm:$0xf]  ;;  %v3379_v39 = vor.u32 %v2592_v35, %v2509_v16 }
 0xb6c   :  { %v886_v46 = vpop.f32.mrf.mxu2  ;;  %v899_v47 = vpop.f32.mrf.mxu3  ;;  %1159 = vmatpush.bf16.msrb.mxu1 %v2460_v25  ;;  %v2499_v25 = vld [vmem:[#allocation5] sm:$0xf] }
 0xb6d   :  { %v2603_v46 = vld [vmem:[%s3658_s6 + $0x24] sm:$0xf0]  ;;  %v2452_v47 = vor.u32 %v2610_v43, %v2449_v49 }
 0xb70   :  { %1160 = vmatpush.bf16.msrb.mxu1 %v2452_v47 }
 0xb71   :  { %v2755_v48 = vpop.eup %2754 }
 0xb72   :  { %v915_v7 = vadd.f32 1.0, %v2755_v48  ;;  %v2482_v48 = vor.u32 %v2603_v46, %v2481_v45 }
 0xb74   :  { %2756 = vrcp.f32 %v915_v7  ;;  %v928_v55 = vand.u32 2147483648, %v915_v7  ;;  %v926_v57 = vand.u32 2147483647, %v915_v7  ;;  %vm922_vm14 = vweird.f32 %v915_v7  ;;  %1217 = vmatpush.bf16.msrb.mxu2 %v2482_v48 }
 0xb75   :  { %2758 = vtanh.f32 %v908_v51  ;;  %v2439_v51 = vld [vmem:[#allocation2 + $0x10] sm:$0xf] }
 0xb76   :  { %v929_v53 = vor.u32 1.1754944e-38, %v928_v55  ;;  %vm927_vm0 = vcmp.eq.f32.partialorder %v926_v57, 8.507059e+37  ;;  %2760 = vpow2.f32 %v2428_v8  ;;  %v2473_v57 = vld [vmem:[%s3658_s6 + $0x10] sm:$0xf]  ;;  %v2599_v8 = vld [vmem:[%s3658_s6 + $0x4] sm:$0xf0] }
 0xb7a   :  { %v2757_v50 = vpop.eup %2756 }
 0xb7b   :  { %v918_v2 = vmul.f32 %v2757_v50, %v915_v7  ;;  %vm923_vm13 = vweird.f32 %v2757_v50  ;;  %v2759_v62 = vpop.eup %2758  ;;  %v2602_v7 = vld [vmem:[%s3658_s6 + $0x24] sm:$0xf] }
 0xb7c   :  { %vm924_vm15 = vmor %vm922_vm14, %vm923_vm13  ;;  %v2761_v9 = vpop.eup %2760 }
 0xb7d   :  { %v919_v54 = vsub.f32 1.0, %v918_v2  ;;  %v916_v10 = vadd.f32 1.0, %v2761_v9  ;;  %v2609_v2 = vld [vmem:[#allocation2 + $0x14] sm:$0xf0]  ;;  %v3354_v9 = vpop.permute.xlu1 %2631 }
 0xb7e   :  { %v2440_v55 = vor.u32 %v2609_v2, %v2439_v51  ;;  %v2634_v49 = vunpack.i.h.bf16 %v3354_v9  ;;  %v2633_v45 = vunpack.i.l.bf16 %v3354_v9 }
 0xb7f   :  { %v920_v56 = vmul.f32 %v2757_v50, %v919_v54  ;;  %2762 = vrcp.f32 %v916_v10  ;;  %v943_v19 = vand.u32 2147483648, %v916_v10  ;;  %vm937_vm2 = vweird.f32 %v916_v10  ;;  %v2608_v54 = vld [vmem:[#allocation2 + $0x14] sm:$0xf] }
 0xb80   :  { %v941_v23 = vand.u32 2147483647, %v916_v10  ;;  %1147 = vmatpush.bf16.msrb.mxu0 %v2440_v55  ;;  %v2628_v55 = vunpack.i.l.bf16 %v2627_v36 }
 0xb81   :  { %v921_v58 = vadd.f32 %v2757_v50, %v920_v56  ;;  %v944_v20 = vor.u32 1.1754944e-38, %v943_v19  ;;  %v2441_v56 = vld [vmem:[#allocation2 + $0x18] sm:$0xf0] }
 0xb82   :  { %vm942_vm4 = vcmp.eq.f32.partialorder %v941_v23, 8.507059e+37  ;;  %v2525_v23 = vld [vmem:[#allocation5 + $0x38] sm:$0xf0] }
 0xb83   :  { %v925_v61 = vsel %vm924_vm15, %v2757_v50, %v921_v58  ;;  %v2486_v50 = vor.u32 %v2602_v7, %v2483_v52  ;;  %v2601_v58 = vld [vmem:[%s3658_s6 + $0x14] sm:$0xf0] }
 0xb84   :  { %v930_v63 = vsel %vm927_vm0, %v929_v53, %v925_v61  ;;  %v2444_v53 = vor.u32 %v2608_v54, %v2441_v56  ;;  %v2600_v61 = vld [vmem:[%s3658_s6 + $0x14] sm:$0xf]  ;;  %v2629_v54 = vunpack.i.h.bf16 %v2627_v36 }
 0xb85   :  { %v952_v1 = vmul.f32 %v2759_v62, %v930_v63  ;;  %v951_v3 = vmul.f32 %v949_v60, %v930_v63  ;;  %v2763_v11 = vpop.eup %2762  ;;  %v2474_v60 = vor.u32 %v2601_v58, %v2473_v57  ;;  %v2475_v62 = vld [vmem:[%s3658_s6 + $0x18] sm:$0xf0]  ;;  %v2642_v28 = vpop.permute.xlu1 %2641 }
 0xb86   :  { %v933_v12 = vmul.f32 %v2763_v11, %v916_v10  ;;  %vm938_vm1 = vweird.f32 %v2763_v11  ;;  %v2478_v63 = vor.u32 %v2600_v61, %v2475_v62  ;;  %1161 = vmatpush.bf16.msrb.mxu1 %v2444_v53  ;;  %v2436_v10 = vor.u32 %v2606_v59, %v2433_v5 }
 0xb87   :  { %954 = vrot.lane.b32.xlu2 %v952_v1, %s2967_s5  ;;  %vm939_vm3 = vmor %vm937_vm2, %vm938_vm1  ;;  %1218 = vmatpush.bf16.msrb.mxu2 %v2474_v60  ;;  %v2431_v1 = vld [vmem:[#allocation2] sm:$0xf]  ;;  %v2644_v47 = vunpack.i.h.bf16 %v2642_v28  ;;  %v2643_v48 = vunpack.i.l.bf16 %v2642_v28  ;;  %v1000_v53 = vsel %vm969_vm5, %v2633_v45, %v2634_v49 }
 0xb88   :  { %v934_v13 = vsub.f32 1.0, %v933_v12  ;;  %v2598_v12 = vld [vmem:[%s3658_s6 + $0x4] sm:$0xf]  ;;  %v1056_v59 = vrot.slane %v1000_v53, 6 }
 0xb89   :  { %v980_v60 = vsel %vm969_vm5, %v2643_v48, %v2644_v47 }
 0xb8a   :  { %v935_v14 = vmul.f32 %v2763_v11, %v934_v13  ;;  %v2467_v13 = vld [vmem:[%s3658_s6 + $0x8] sm:$0xf0]  ;;  %1162 = vmatpush.bf16.msrb.mxu1 %v2436_v10 }
 0xb8c   :  { %v936_v18 = vadd.f32 %v2763_v11, %v935_v14  ;;  %v2470_v14 = vor.u32 %v2598_v12, %v2467_v13 }
 0xb8e   :  { %v940_v38 = vsel %vm939_vm3, %v2763_v11, %v936_v18  ;;  %v2596_v18 = vld [vmem:[#allocation5 + $0x34] sm:$0xf] }
 0xb8f   :  { %2636 = vrot.lane.b32.xlu2 %v2635_v4, %s2967_s5  ;;  %v945_v22 = vsel %vm942_vm4, %v944_v20, %v940_v38  ;;  %v3364_v38 = vor.u32 %v2596_v18, %v2525_v23  ;;  %v2515_v20 = vld [vmem:[#allocation5 + $0x20] sm:$0xf] }
 0xb91   :  { %1307 = vmatpush.bf16.msra.mxu1 %v3364_v38 }
 0xb97   :  { %2646 = vrot.lane.b32.xlu2 %v2645_v6, %s2967_s5  ;;  %v2465_v6 = vld [vmem:[%s3658_s6] sm:$0xf] }
 0xb98   :  { %v2466_v11 = vor.u32 %v2599_v8, %v2465_v6 }
 0xb9a   :  { %1219 = vmatpush.bf16.msrb.mxu2 %v2466_v11 }
 0xbe1   :  { %v955_v15 = vpop.permute.xlu2 %954 }
 0xbe2   :  { %v957_v30 = vadd.f32 %v955_v15, %v951_v3  ;;  %v2607_v3 = vld [vmem:[#allocation2 + $0x4] sm:$0xf0]  ;;  %v2523_v15 = vld [vmem:[#allocation5 + $0x30] sm:$0xf] }
 0xbe3   :  { %v2432_v4 = vor.u32 %v2607_v3, %v2431_v1  ;;  %v990_v3 = vsel %vm969_vm5, %v2628_v55, %v2629_v54 }
 0xbe4   :  { %2764 = vtanh.f32 %v957_v30  ;;  %v2597_v30 = vld [vmem:[#allocation5 + $0x34] sm:$0xf0]  ;;  %v1059_v12 = vrot.slane %v990_v3, 2 }
 0xbe5   :  { %1148 = vmatpush.bf16.msrb.mxu0 %v2432_v4  ;;  %v3362_v19 = vor.u32 %v2597_v30, %v2523_v15  ;;  %v1062_v4 = vrot.slane %v980_v60, 6 }
 0xbe6   :  { %v1070_v30 = vsel %vm1033_vm6, %v1056_v59, %v1059_v12 }
 0xbe7   :  { %1377 = vmatpush.bf16.msra.mxu2 %v3362_v19 }
 0xbe9   :  { %1294 = vmatpush.bf16.msra.mxu0 %v3362_v19  ;;  %v2637_v33 = vpop.permute.xlu2 %2636 }
 0xbea   :  { %v2765_v21 = vpop.eup %2764  ;;  %v2639_v42 = vunpack.i.h.bf16 %v2637_v33  ;;  %v2638_v43 = vunpack.i.l.bf16 %v2637_v33 }
 0xbeb   :  { %v959_v24 = vmul.f32 %v2765_v21, %v945_v22  ;;  %v2595_v21 = vld [vmem:[#allocation5 + $0x24] sm:$0xf0]  ;;  %v2594_v22 = vld [vmem:[#allocation5 + $0x24] sm:$0xf] }
 0xbec   :  { %v1024_v56 = vsel %vm969_vm5, %v2638_v43, %v2639_v42 }
 0xbed   :  { %v2650_v27 = vpack.i.bf16 %v1028_v26, %v959_v24  ;;  %v965_v29 = vrot.slane %v959_v24, 6  ;;  %v3367_v24 = vor.u32 %v2595_v21, %v2515_v20  ;;  %v2517_v26 = vld [vmem:[#allocation5 + $0x28] sm:$0xf0]  ;;  %v1071_v21 = vsel %vm1035_vm7, %v1070_v30, %v1062_v4 }
 0xbef   :  { %2651 = vrot.lane.b32.xlu0 %v2650_v27, %s2967_s5  ;;  %v2655_v32 = vpack.i.bf16 %v965_v29, %v3202_v41  ;;  %v2604_v41 = vld [vmem:[%s3658_s6 + $0x34] sm:$0xf]  ;;  %v3371_v27 = vor.u32 %v2594_v22, %v2517_v26  ;;  %v2507_v29 = vld [vmem:[#allocation5 + $0x10] sm:$0xf]  ;;  %1295 = vmatpush.bf16.msra.mxu0 %v3367_v24 }
 0xbf0   :  { %v2494_v40 = vor.u32 %v2604_v41, %v2491_v31  ;;  %1378 = vmatpush.bf16.msra.mxu2 %v3367_v24  ;;  %v2590_v41 = vld [vmem:[#allocation5 + $0x4] sm:$0xf]  ;;  %v2501_v31 = vld [vmem:[#allocation5 + $0x8] sm:$0xf0] }
 0xbf1   :  { %1308 = vmatpush.bf16.msra.mxu1 %v3371_v27  ;;  %v3387_v37 = vor.u32 %v2590_v41, %v2501_v31  ;;  %v2647_v44 = vpop.permute.xlu2 %2646  ;;  %v1240_v41 = vld [vmem:[%s3661_s9] sm:$0x3] }
 0xbf2   :  { %1230 = vmatpush.bf16.msrb.mxu3 %v2494_v40  ;;  %v3383_v40 = vor.u32 %v2591_v34, %v2499_v25  ;;  %v2649_v51 = vunpack.i.h.bf16 %v2647_v44  ;;  %v2648_v2 = vunpack.i.l.bf16 %v2647_v44  ;;  %v1242_v44 = vperm.slane %v1240_v41, 0 }
 0xbf3   :  { %v1243_v47 = vperm.slane %v1240_v41, 1 }
 0xbf4   :  { %v1016_v1 = vsel %vm969_vm5, %v2648_v2, %v2649_v51 }
 0xbf5   :  { %1309 = vmatpush.bf16.msra.mxu1 %v3379_v39  ;;  %v1050_v9 = vrot.slane %v1016_v1, 6 }
 0xbf6   :  { %1231 = vmatpush.bf16.msrb.mxu3 %v2486_v50  ;;  %v2662_v50 = vpop.permute.xlu1 %2661 }
 0xbf7   :  { %2656 = vrot.lane.b32.xlu0 %v2655_v32, %s2967_s5  ;;  %v2593_v32 = vld [vmem:[#allocation5 + $0x14] sm:$0xf0]  ;;  %v2664_v61 = vunpack.i.h.bf16 %v2662_v50  ;;  %v2663_v62 = vunpack.i.l.bf16 %v2662_v50 }
 0xbf8   :  { %v3375_v17 = vor.u32 %v2593_v32, %v2507_v29 }
 0xbf9   :  { %1310 = vmatpush.bf16.msra.mxu1 %v3387_v37  ;;  %v1008_v8 = vsel %vm969_vm5, %v2663_v62, %v2664_v61 }
 0xbfa   :  { %1232 = vmatpush.bf16.msrb.mxu3 %v2478_v63  ;;  %1296 = vmatpush.bf16.msra.mxu0 %v3375_v17  ;;  %v1047_v63 = vrot.slane %v1024_v56, 2  ;;  %v1039_v13 = vsel %vm1033_vm6, %v1008_v8, %v1016_v1  ;;  %v1053_v18 = vrot.slane %v1008_v8, 2 }
 0xbfb   :  { %1379 = vmatpush.bf16.msra.mxu2 %v3375_v17  ;;  %v1040_v22 = vsel %vm1035_vm7, %v1039_v13, %v1024_v56 }
 0xbfe   :  { %1233 = vmatpush.bf16.msrb.mxu3 %v2470_v14  ;;  %1297 = vmatpush.bf16.msra.mxu0 %v3383_v40 }
 0xbff   :  { %1380 = vmatpush.bf16.msra.mxu2 %v3383_v40 }
 0xc02   :  { %1390 = vmatpush.bf16.msra.mxu3 %v3364_v38 }
 0xc06   :  { %1391 = vmatpush.bf16.msra.mxu3 %v3371_v27 }
 0xc0a   :  { %1392 = vmatpush.bf16.msra.mxu3 %v3379_v39 }
 0xc0e   :  { %1393 = vmatpush.bf16.msra.mxu3 %v3387_v37 }
 0xc61   :  { %v2652_v46 = vpop.permute.xlu0 %2651 }
 0xc62   :  { %v2654_v7 = vunpack.i.h.bf16 %v2652_v46  ;;  %v2653_v52 = vunpack.i.l.bf16 %v2652_v46 }
 0xc64   :  { %v1032_v57 = vsel %vm969_vm5, %v2653_v52, %v2654_v7 }
 0xc65   :  { %v1044_v58 = vrot.slane %v1032_v57, 6  ;;  %v1041_v29 = vsel %vm1037_vm8, %v1040_v22, %v1032_v57 }
 0xc67   :  { %v1067_v5 = vsel %vm1033_vm6, %v1044_v58, %v1047_v63 }
 0xc68   :  { %v1068_v14 = vsel %vm1035_vm7, %v1067_v5, %v1050_v9 }
 0xc69   :  { %v2657_v6 = vpop.permute.xlu0 %2656  ;;  %v1069_v33 = vsel %vm1037_vm8, %v1068_v14, %v1053_v18 }
 0xc6a   :  { %v2659_v10 = vunpack.i.h.bf16 %v2657_v6  ;;  %v2658_v11 = vunpack.i.l.bf16 %v2657_v6 }
 0xc6c   :  { %v970_v15 = vsel %vm969_vm5, %v2658_v11, %v2659_v10 }
 0xc6d   :  { %v1034_v23 = vsel %vm1033_vm6, %v970_v15, %v980_v60  ;;  %v1065_v20 = vrot.slane %v970_v15, 2 }
 0xc6e   :  { %v1036_v26 = vsel %vm1035_vm7, %v1034_v23, %v990_v3 }
 0xc6f   :  { %v1072_v32 = vsel %vm1037_vm8, %v1071_v21, %v1065_v20  ;;  %v1038_v35 = vsel %vm1037_vm8, %v1036_v26, %v1000_v53 }
 0xc70   :  { %v1073_v16 = vpack.c.bf16 %v1072_v32, %v1069_v33  ;;  %v1042_v36 = vpack.c.bf16 %v1041_v29, %v1038_v35 }
 0xc72   :  { %2461 = vmatmul.msk.bf16.vlgmr.msrb.gmra.mxu0 %vm237_vm9, %v1073_v16  ;;  %2462 = vmatmul.msk.bf16.vlgmr.msrb.gmra.mxu1 %vm237_vm9, %v1073_v16 }
 0xc73   :  { %2495 = vmatmul.msk.bf16.vlgmr.msrb.gmra.mxu2 %vm237_vm9, %v1042_v36  ;;  %2496 = vmatmul.msk.bf16.vlgmr.msrb.gmra.mxu3 %vm237_vm9, %v1042_v36 }
 0xc74   :  { %1470 = vmatpush.bf16.msrb.mxu0 %v3362_v19  ;;  %1483 = vmatpush.bf16.msrb.mxu1 %v3364_v38 }
 0xc75   :  { %1563 = vmatpush.bf16.msrb.mxu2 %v3362_v19  ;;  %1576 = vmatpush.bf16.msrb.mxu3 %v3364_v38 }
 0xc78   :  { %1471 = vmatpush.bf16.msrb.mxu0 %v3367_v24  ;;  %1484 = vmatpush.bf16.msrb.mxu1 %v3371_v27 }
 0xc79   :  { %1564 = vmatpush.bf16.msrb.mxu2 %v3367_v24  ;;  %1577 = vmatpush.bf16.msrb.mxu3 %v3371_v27 }
 0xc7c   :  { %1472 = vmatpush.bf16.msrb.mxu0 %v3375_v17  ;;  %1485 = vmatpush.bf16.msrb.mxu1 %v3379_v39 }
 0xc7d   :  { %1565 = vmatpush.bf16.msrb.mxu2 %v3375_v17  ;;  %1578 = vmatpush.bf16.msrb.mxu3 %v3379_v39 }
 0xc80   :  { %1473 = vmatpush.bf16.msrb.mxu0 %v3383_v40  ;;  %1486 = vmatpush.bf16.msrb.mxu1 %v3387_v37 }
 0xc81   :  { %1566 = vmatpush.bf16.msrb.mxu2 %v3383_v40  ;;  %1579 = vmatpush.bf16.msrb.mxu3 %v3387_v37 }
 0xc82   :  { %1298 = vmatmul.bf16.vlgmr.msra.gmra.mxu0 %v2966_v0  ;;  %1311 = vmatmul.bf16.vlgmr.msra.gmra.mxu1 %v2966_v0 }
 0xc84   :  { %1656 = vmatpush.bf16.msra.mxu0 %v3362_v19  ;;  %1669 = vmatpush.bf16.msra.mxu1 %v3364_v38 }
 0xc88   :  { %1657 = vmatpush.bf16.msra.mxu0 %v3367_v24  ;;  %1670 = vmatpush.bf16.msra.mxu1 %v3371_v27 }
 0xc8c   :  { %1658 = vmatpush.bf16.msra.mxu0 %v3375_v17  ;;  %1671 = vmatpush.bf16.msra.mxu1 %v3379_v39 }
 0xc90   :  { %1659 = vmatpush.bf16.msra.mxu0 %v3383_v40  ;;  %1672 = vmatpush.bf16.msra.mxu1 %v3387_v37 }
 0xcef   :  { %v1150_v28 = vpop.f32.mrf.mxu0  ;;  %v1164_v25 = vpop.f32.mrf.mxu1 }
 0xcf6   :  { %v1221_v34 = vpop.f32.mrf.mxu2  ;;  %v1235_v0 = vpop.f32.mrf.mxu3 }
 0xcf7   :  { %v1152_v31 = vpop.f32.mrf.mxu0  ;;  %v1166_v42 = vpop.f32.mrf.mxu1  ;;  %v1222_v43 = vadd.f32 %v1221_v34, %v1150_v28  ;;  %v1236_v60 = vadd.f32 %v1235_v0, %v1164_v25 }
 0xcf9   :  { %v3449_v49 = vadd.f32 %v1242_v44, %v1222_v43  ;;  %v3456_v61 = vadd.f32 %v1243_v47, %v1236_v60 }
 0xcfe   :  { %v1223_v45 = vpop.f32.mrf.mxu2  ;;  %v1237_v46 = vpop.f32.mrf.mxu3 }
 0xcff   :  { %v1224_v48 = vadd.f32 %v1223_v45, %v1152_v31  ;;  %v1238_v7 = vadd.f32 %v1237_v46, %v1166_v42  ;;  %v1299_v52 = vpop.f32.mrf.mxu0  ;;  %v1312_v50 = vpop.f32.mrf.mxu1 }
 0xd00   :  { %v1316_v51 = vadd.f32 %v1299_v52, %v3449_v49  ;;  %v1317_v63 = vadd.f32 %v1312_v50, %v3456_v61 }
 0xd01   :  { %v3452_v2 = vadd.f32 %v1242_v44, %v1224_v48  ;;  %v3454_v54 = vadd.f32 %v1243_v47, %v1238_v7 }
 0xd02   :  { %v2529_v55 = vmul.f32 -1.442695, %v1316_v51  ;;  %v2530_v13 = vmul.f32 -1.442695, %v1317_v63 }
 0xd04   :  { %2766 = vpow2.f32 %v2529_v55 }
 0xd07   :  { %v1301_v56 = vpop.f32.mrf.mxu0  ;;  %v1314_v57 = vpop.f32.mrf.mxu1 }
 0xd0a   :  { %v2767_v58 = vpop.eup %2766 }
 0xd0b   :  { %v1324_v53 = vadd.f32 1.0, %v2767_v58 }
 0xd0d   :  { %2768 = vrcp.f32 %v1324_v53  ;;  %v1337_v59 = vand.u32 2147483648, %v1324_v53  ;;  %v1335_v5 = vand.u32 2147483647, %v1324_v53  ;;  %vm1331_vm11 = vweird.f32 %v1324_v53 }
 0xd0e   :  { %2770 = vtanh.f32 %v1317_v63 }
 0xd0f   :  { %v1338_v8 = vor.u32 1.1754944e-38, %v1337_v59  ;;  %vm1336_vm13 = vcmp.eq.f32.partialorder %v1335_v5, 8.507059e+37  ;;  %2772 = vpow2.f32 %v2530_v13 }
 0xd13   :  { %v2769_v62 = vpop.eup %2768 }
 0xd14   :  { %v1327_v1 = vmul.f32 %v2769_v62, %v1324_v53  ;;  %vm1332_vm10 = vweird.f32 %v2769_v62  ;;  %v2771_v10 = vpop.eup %2770 }
 0xd15   :  { %vm1333_vm12 = vmor %vm1331_vm11, %vm1332_vm10  ;;  %v2773_v14 = vpop.eup %2772 }
 0xd16   :  { %v1328_v3 = vsub.f32 1.0, %v1327_v1  ;;  %v1325_v15 = vadd.f32 1.0, %v2773_v14 }
 0xd18   :  { %v1329_v4 = vmul.f32 %v2769_v62, %v1328_v3  ;;  %2774 = vrcp.f32 %v1325_v15  ;;  %v1352_v32 = vand.u32 2147483648, %v1325_v15  ;;  %vm1346_vm15 = vweird.f32 %v1325_v15 }
 0xd19   :  { %v1350_v33 = vand.u32 2147483647, %v1325_v15 }
 0xd1a   :  { %v1330_v6 = vadd.f32 %v2769_v62, %v1329_v4  ;;  %v1353_v16 = vor.u32 1.1754944e-38, %v1352_v32 }
 0xd1b   :  { %vm1351_vm1 = vcmp.eq.f32.partialorder %v1350_v33, 8.507059e+37 }
 0xd1c   :  { %v1334_v9 = vsel %vm1333_vm12, %v2769_v62, %v1330_v6 }
 0xd1d   :  { %v1339_v11 = vsel %vm1336_vm13, %v1338_v8, %v1334_v9 }
 0xd1e   :  { %v1358_v12 = vmul.f32 %v2771_v10, %v1339_v11  ;;  %v2775_v30 = vpop.eup %2774  ;;  %v1357_v21 = vmul.f32 0.0, %v1339_v11 }
 0xd1f   :  { %v1342_v18 = vmul.f32 %v2775_v30, %v1325_v15  ;;  %vm1347_vm14 = vweird.f32 %v2775_v30 }
 0xd20   :  { %1360 = vrot.lane.b32.xlu2 %v1358_v12, %s2967_s5  ;;  %vm1348_vm0 = vmor %vm1346_vm15, %vm1347_vm14 }
 0xd21   :  { %v1343_v23 = vsub.f32 1.0, %v1342_v18 }
 0xd23   :  { %v1344_v20 = vmul.f32 %v2775_v30, %v1343_v23 }
 0xd25   :  { %v1345_v29 = vadd.f32 %v2775_v30, %v1344_v20 }
 0xd27   :  { %v1349_v35 = vsel %vm1348_vm0, %v2775_v30, %v1345_v29 }
 0xd28   :  { %v1354_v28 = vsel %vm1351_vm1, %v1353_v16, %v1349_v35 }
 0xd7a   :  { %v1361_v22 = vpop.permute.xlu2 %1360 }
 0xd7b   :  { %v1363_v26 = vadd.f32 %v1361_v22, %v1357_v21 }
 0xd7d   :  { %2776 = vtanh.f32 %v1363_v26  ;;  %v1447_v62 = vrot.slane %v1363_v26, 6 }
 0xd83   :  { %v2777_v36 = vpop.eup %2776 }
 0xd84   :  { %v3460_v25 = vmul.f32 %v2777_v36, %v1354_v28 }
 0xd86   :  { %v1366_v34 = vpack.c.bf16 %v3460_v25, %v3460_v25 }
 0xd88   :  { %1368 = vrot.lane.b32.xlu0 %v1366_v34, %s2967_s5 }
 0xdfa   :  { %v1369_v0 = vpop.permute.xlu0 %1368 }
 0xdfb   :  { %2531 = vmatmul.msk.bf16.vlgmr.msra.gmra.mxu2 %vm237_vm9, %v1369_v0  ;;  %2532 = vmatmul.msk.bf16.vlgmr.msra.gmra.mxu3 %vm237_vm9, %v1369_v0 }
 0xdfc   :  { %1742 = vmatpush.bf16.msra.mxu2 %v3362_v19  ;;  %1755 = vmatpush.bf16.msra.mxu3 %v3364_v38 }
 0xe00   :  { %1743 = vmatpush.bf16.msra.mxu2 %v3367_v24  ;;  %1756 = vmatpush.bf16.msra.mxu3 %v3371_v27 }
 0xe04   :  { %1744 = vmatpush.bf16.msra.mxu2 %v3375_v17  ;;  %1757 = vmatpush.bf16.msra.mxu3 %v3379_v39 }
 0xe08   :  { %1745 = vmatpush.bf16.msra.mxu2 %v3383_v40  ;;  %1758 = vmatpush.bf16.msra.mxu3 %v3387_v37 }
 0xe7e   :  { %v1382_v41 = vpop.f32.mrf.mxu2  ;;  %v1395_v31 = vpop.f32.mrf.mxu3 }
 0xe7f   :  { %v1401_v42 = vrot.slane %v1382_v41, 6  ;;  %v1402_v7 = vrot.slane %v1395_v31, 6 }
 0xe81   :  { %v1405_v43 = vadd.f32 %v1401_v42, %v3449_v49  ;;  %v1406_v50 = vadd.f32 %v1402_v7, %v3456_v61 }
 0xe83   :  { %v2533_v44 = vmul.f32 -1.442695, %v1405_v43  ;;  %v2534_v5 = vmul.f32 -1.442695, %v1406_v50 }
 0xe85   :  { %2778 = vpow2.f32 %v2533_v44 }
 0xe86   :  { %v1384_v45 = vpop.f32.mrf.mxu2  ;;  %v1397_v46 = vpop.f32.mrf.mxu3 }
 0xe8b   :  { %v2779_v47 = vpop.eup %2778 }
 0xe8c   :  { %v1413_v48 = vadd.f32 1.0, %v2779_v47 }
 0xe8e   :  { %2780 = vrcp.f32 %v1413_v48  ;;  %v1426_v56 = vand.u32 2147483648, %v1413_v48  ;;  %v1424_v58 = vand.u32 2147483647, %v1413_v48  ;;  %vm1420_vm3 = vweird.f32 %v1413_v48 }
 0xe8f   :  { %2782 = vtanh.f32 %v1406_v50 }
 0xe90   :  { %v1427_v60 = vor.u32 1.1754944e-38, %v1426_v56  ;;  %vm1425_vm10 = vcmp.eq.f32.partialorder %v1424_v58, 8.507059e+37  ;;  %2784 = vpow2.f32 %v2534_v5 }
 0xe94   :  { %v2781_v52 = vpop.eup %2780 }
 0xe95   :  { %v1416_v51 = vmul.f32 %v2781_v52, %v1413_v48  ;;  %vm1421_vm2 = vweird.f32 %v2781_v52  ;;  %v2783_v1 = vpop.eup %2782 }
 0xe96   :  { %vm1422_vm4 = vmor %vm1420_vm3, %vm1421_vm2  ;;  %v2785_v6 = vpop.eup %2784 }
 0xe97   :  { %v1417_v55 = vsub.f32 1.0, %v1416_v51  ;;  %v1414_v8 = vadd.f32 1.0, %v2785_v6 }
 0xe99   :  { %v1418_v57 = vmul.f32 %v2781_v52, %v1417_v55  ;;  %2786 = vrcp.f32 %v1414_v8  ;;  %v1441_v30 = vand.u32 2147483648, %v1414_v8  ;;  %vm1435_vm12 = vweird.f32 %v1414_v8 }
 0xe9a   :  { %v1439_v18 = vand.u32 2147483647, %v1414_v8 }
 0xe9b   :  { %v1419_v53 = vadd.f32 %v2781_v52, %v1418_v57  ;;  %v1442_v20 = vor.u32 1.1754944e-38, %v1441_v30 }
 0xe9c   :  { %vm1440_vm14 = vcmp.eq.f32.partialorder %v1439_v18, 8.507059e+37 }
 0xe9d   :  { %v1423_v63 = vsel %vm1422_vm4, %v2781_v52, %v1419_v53 }
 0xe9e   :  { %v1428_v3 = vsel %vm1425_vm10, %v1427_v60, %v1423_v63 }
 0xe9f   :  { %v1450_v59 = vmul.f32 %v2783_v1, %v1428_v3  ;;  %v1449_v4 = vmul.f32 %v1447_v62, %v1428_v3  ;;  %v2787_v9 = vpop.eup %2786 }
 0xea0   :  { %v1431_v10 = vmul.f32 %v2787_v9, %v1414_v8  ;;  %vm1436_vm11 = vweird.f32 %v2787_v9 }
 0xea1   :  { %1452 = vrot.lane.b32.xlu1 %v1450_v59, %s2967_s5  ;;  %vm1437_vm13 = vmor %vm1435_vm12, %vm1436_vm11 }
 0xea2   :  { %v1432_v11 = vsub.f32 1.0, %v1431_v10 }
 0xea4   :  { %v1433_v12 = vmul.f32 %v2787_v9, %v1432_v11 }
 0xea6   :  { %v1434_v15 = vadd.f32 %v2787_v9, %v1433_v12 }
 0xea8   :  { %v1438_v23 = vsel %vm1437_vm13, %v2787_v9, %v1434_v15 }
 0xea9   :  { %v1443_v22 = vsel %vm1440_vm14, %v1442_v20, %v1438_v23 }
 0xf13   :  { %v1453_v13 = vpop.permute.xlu1 %1452 }
 0xf14   :  { %v1455_v14 = vadd.f32 %v1453_v13, %v1449_v4 }
 0xf16   :  { %2788 = vtanh.f32 %v1455_v14  ;;  %v1540_v55 = vrot.slane %v1455_v14, 6 }
 0xf1c   :  { %v2789_v21 = vpop.eup %2788 }
 0xf1d   :  { %v3478_v26 = vmul.f32 %v2789_v21, %v1443_v22 }
 0xf1f   :  { %v1458_v29 = vpack.c.bf16 %v3478_v26, %v3478_v26 }
 0xf21   :  { %v1460_v32 = vrot.slane %v1458_v29, 1 }
 0xf23   :  { %1461 = vrot.lane.b32.xlu2 %v1460_v32, %s2967_s5 }
 0xf7d   :  { %v1462_v33 = vpop.permute.xlu2 %1461 }
 0xf7e   :  { %2535 = vmatmul.msk.bf16.vlgmr.msrb.gmra.mxu0 %vm237_vm9, %v1462_v33  ;;  %2536 = vmatmul.msk.bf16.vlgmr.msrb.gmra.mxu1 %vm237_vm9, %v1462_v33 }
 0xf7f   :  { %1835 = vmatpush.bf16.msrb.mxu0 %v3362_v19  ;;  %1848 = vmatpush.bf16.msrb.mxu1 %v3364_v38 }
 0xf83   :  { %1836 = vmatpush.bf16.msrb.mxu0 %v3367_v24  ;;  %1849 = vmatpush.bf16.msrb.mxu1 %v3371_v27 }
 0xf87   :  { %1837 = vmatpush.bf16.msrb.mxu0 %v3375_v17  ;;  %1850 = vmatpush.bf16.msrb.mxu1 %v3379_v39 }
 0xf8b   :  { %1838 = vmatpush.bf16.msrb.mxu0 %v3383_v40  ;;  %1851 = vmatpush.bf16.msrb.mxu1 %v3387_v37 }
 0xffb   :  { %v1475_v35 = vpop.f32.mrf.mxu0  ;;  %v1488_v16 = vpop.f32.mrf.mxu1 }
 0xffc   :  { %v1494_v36 = vrot.slane %v1475_v35, 4  ;;  %v1495_v43 = vrot.slane %v1488_v16, 4 }
 0xffe   :  { %v1498_v28 = vadd.f32 %v1494_v36, %v3449_v49  ;;  %v1499_v45 = vadd.f32 %v1495_v43, %v3456_v61 }
0x1000   :  { %v2537_v34 = vmul.f32 -1.442695, %v1498_v28  ;;  %v2538_v62 = vmul.f32 -1.442695, %v1499_v45 }
0x1002   :  { %2790 = vpow2.f32 %v2537_v34 }
0x1003   :  { %v1477_v0 = vpop.f32.mrf.mxu0  ;;  %v1490_v41 = vpop.f32.mrf.mxu1 }
0x1008   :  { %v2791_v31 = vpop.eup %2790 }
0x1009   :  { %v1506_v42 = vadd.f32 1.0, %v2791_v31 }
0x100b   :  { %2792 = vrcp.f32 %v1506_v42  ;;  %v1519_v48 = vand.u32 2147483648, %v1506_v42  ;;  %v1517_v52 = vand.u32 2147483647, %v1506_v42  ;;  %vm1513_vm0 = vweird.f32 %v1506_v42 }
0x100c   :  { %2794 = vtanh.f32 %v1499_v45 }
0x100d   :  { %v1520_v51 = vor.u32 1.1754944e-38, %v1519_v48  ;;  %vm1518_vm2 = vcmp.eq.f32.partialorder %v1517_v52, 8.507059e+37  ;;  %2796 = vpow2.f32 %v2538_v62 }
0x1011   :  { %v2793_v44 = vpop.eup %2792 }
0x1012   :  { %v1509_v46 = vmul.f32 %v2793_v44, %v1506_v42  ;;  %vm1514_vm15 = vweird.f32 %v2793_v44  ;;  %v2795_v57 = vpop.eup %2794 }
0x1013   :  { %vm1515_vm1 = vmor %vm1513_vm0, %vm1514_vm15  ;;  %v2797_v63 = vpop.eup %2796 }
0x1014   :  { %v1510_v47 = vsub.f32 1.0, %v1509_v46  ;;  %v1507_v1 = vadd.f32 1.0, %v2797_v63 }
0x1016   :  { %v1511_v7 = vmul.f32 %v2793_v44, %v1510_v47  ;;  %2798 = vrcp.f32 %v1507_v1  ;;  %v1534_v10 = vand.u32 2147483648, %v1507_v1  ;;  %vm1528_vm4 = vweird.f32 %v1507_v1 }
0x1017   :  { %v1532_v11 = vand.u32 2147483647, %v1507_v1 }
0x1018   :  { %v1512_v50 = vadd.f32 %v2793_v44, %v1511_v7  ;;  %v1535_v13 = vor.u32 1.1754944e-38, %v1534_v10 }
0x1019   :  { %vm1533_vm11 = vcmp.eq.f32.partialorder %v1532_v11, 8.507059e+37 }
0x101a   :  { %v1516_v56 = vsel %vm1515_vm1, %v2793_v44, %v1512_v50 }
0x101b   :  { %v1521_v58 = vsel %vm1518_vm2, %v1520_v51, %v1516_v56 }
0x101c   :  { %v1543_v53 = vmul.f32 %v2795_v57, %v1521_v58  ;;  %v1542_v60 = vmul.f32 %v1540_v55, %v1521_v58  ;;  %v2799_v3 = vpop.eup %2798 }
0x101d   :  { %v1524_v59 = vmul.f32 %v2799_v3, %v1507_v1  ;;  %vm1529_vm3 = vweird.f32 %v2799_v3 }
0x101e   :  { %1545 = vrot.lane.b32.xlu0 %v1543_v53, %s2967_s5  ;;  %vm1530_vm10 = vmor %vm1528_vm4, %vm1529_vm3 }
0x101f   :  { %v1525_v4 = vsub.f32 1.0, %v1524_v59 }
0x1021   :  { %v1526_v5 = vmul.f32 %v2799_v3, %v1525_v4 }
0x1023   :  { %v1527_v9 = vadd.f32 %v2799_v3, %v1526_v5 }
0x1025   :  { %v1531_v12 = vsel %vm1530_vm10, %v2799_v3, %v1527_v9 }
0x1026   :  { %v1536_v15 = vsel %vm1533_vm11, %v1535_v13, %v1531_v12 }
0x1090   :  { %v1546_v6 = vpop.permute.xlu0 %1545 }
0x1091   :  { %v1548_v8 = vadd.f32 %v1546_v6, %v1542_v60 }
0x1093   :  { %2800 = vtanh.f32 %v1548_v8  ;;  %v1633_v0 = vrot.slane %v1548_v8, 6 }
0x1099   :  { %v2801_v14 = vpop.eup %2800 }
0x109a   :  { %v3496_v30 = vmul.f32 %v2801_v14, %v1536_v15 }
0x109c   :  { %v1551_v18 = vpack.c.bf16 %v3496_v30, %v3496_v30 }
0x109e   :  { %v1553_v23 = vrot.slane %v1551_v18, 2 }
0x10a0   :  { %1554 = vrot.lane.b32.xlu1 %v1553_v23, %s2967_s5 }
0x1112   :  { %v1555_v20 = vpop.permute.xlu1 %1554 }
0x1113   :  { %2539 = vmatmul.msk.bf16.vlgmr.msrb.gmra.mxu2 %vm237_vm9, %v1555_v20  ;;  %2540 = vmatmul.msk.bf16.vlgmr.msrb.gmra.mxu3 %vm237_vm9, %v1555_v20 }
0x1114   :  { %1928 = vmatpush.bf16.msrb.mxu2 %v3362_v19  ;;  %1941 = vmatpush.bf16.msrb.mxu3 %v3364_v38 }
0x1118   :  { %1929 = vmatpush.bf16.msrb.mxu2 %v3367_v24  ;;  %1942 = vmatpush.bf16.msrb.mxu3 %v3371_v27 }
0x111c   :  { %1930 = vmatpush.bf16.msrb.mxu2 %v3375_v17  ;;  %1943 = vmatpush.bf16.msrb.mxu3 %v3379_v39 }
0x1120   :  { %1931 = vmatpush.bf16.msrb.mxu2 %v3383_v40  ;;  %1944 = vmatpush.bf16.msrb.mxu3 %v3387_v37 }
0x1196   :  { %v1568_v21 = vpop.f32.mrf.mxu2  ;;  %v1581_v22 = vpop.f32.mrf.mxu3 }
0x1197   :  { %v1587_v29 = vrot.slane %v1568_v21, 2  ;;  %v1588_v27 = vrot.slane %v1581_v22, 2 }
0x1199   :  { %v1591_v32 = vadd.f32 %v1587_v29, %v3449_v49  ;;  %v1592_v39 = vadd.f32 %v1588_v27, %v3456_v61 }
0x119b   :  { %v2541_v19 = vmul.f32 -1.442695, %v1591_v32  ;;  %v2542_v61 = vmul.f32 -1.442695, %v1592_v39 }
0x119d   :  { %2802 = vpow2.f32 %v2541_v19 }
0x119e   :  { %v1570_v38 = vpop.f32.mrf.mxu2  ;;  %v1583_v33 = vpop.f32.mrf.mxu3 }
0x11a3   :  { %v2803_v24 = vpop.eup %2802 }
0x11a4   :  { %v1599_v35 = vadd.f32 1.0, %v2803_v24 }
0x11a6   :  { %2804 = vrcp.f32 %v1599_v35  ;;  %v1612_v37 = vand.u32 2147483648, %v1599_v35  ;;  %v1610_v28 = vand.u32 2147483647, %v1599_v35  ;;  %vm1606_vm13 = vweird.f32 %v1599_v35 }
0x11a7   :  { %2806 = vtanh.f32 %v1592_v39 }
0x11a8   :  { %v1613_v49 = vor.u32 1.1754944e-38, %v1612_v37  ;;  %vm1611_vm15 = vcmp.eq.f32.partialorder %v1610_v28, 8.507059e+37  ;;  %2808 = vpow2.f32 %v2542_v61 }
0x11ac   :  { %v2805_v17 = vpop.eup %2804 }
0x11ad   :  { %v1602_v16 = vmul.f32 %v2805_v17, %v1599_v35  ;;  %vm1607_vm12 = vweird.f32 %v2805_v17  ;;  %v2807_v31 = vpop.eup %2806 }
0x11ae   :  { %vm1608_vm14 = vmor %vm1606_vm13, %vm1607_vm12  ;;  %v2809_v45 = vpop.eup %2808 }
0x11af   :  { %v1603_v40 = vsub.f32 1.0, %v1602_v16  ;;  %v1600_v46 = vadd.f32 1.0, %v2809_v45 }
0x11b1   :  { %v1604_v36 = vmul.f32 %v2805_v17, %v1603_v40  ;;  %2810 = vrcp.f32 %v1600_v46  ;;  %v1627_v56 = vand.u32 2147483648, %v1600_v46  ;;  %vm1621_vm1 = vweird.f32 %v1600_v46 }
0x11b2   :  { %v1625_v57 = vand.u32 2147483647, %v1600_v46 }
0x11b3   :  { %v1605_v34 = vadd.f32 %v2805_v17, %v1604_v36  ;;  %v1628_v53 = vor.u32 1.1754944e-38, %v1627_v56 }
0x11b4   :  { %vm1626_vm3 = vcmp.eq.f32.partialorder %v1625_v57, 8.507059e+37 }
0x11b5   :  { %v1609_v41 = vsel %vm1608_vm14, %v2805_v17, %v1605_v34 }
0x11b6   :  { %v1614_v42 = vsel %vm1611_vm15, %v1613_v49, %v1609_v41 }
0x11b7   :  { %v1636_v43 = vmul.f32 %v2807_v31, %v1614_v42  ;;  %v1635_v44 = vmul.f32 %v1633_v0, %v1614_v42  ;;  %v2811_v47 = vpop.eup %2810 }
0x11b8   :  { %v1617_v48 = vmul.f32 %v2811_v47, %v1600_v46  ;;  %vm1622_vm0 = vweird.f32 %v2811_v47 }
0x11b9   :  { %1638 = vrot.lane.b32.xlu2 %v1636_v43, %s2967_s5  ;;  %vm1623_vm2 = vmor %vm1621_vm1, %vm1622_vm0 }
0x11ba   :  { %v1618_v7 = vsub.f32 1.0, %v1617_v48 }
0x11bc   :  { %v1619_v52 = vmul.f32 %v2811_v47, %v1618_v7 }
0x11be   :  { %v1620_v55 = vadd.f32 %v2811_v47, %v1619_v52 }
0x11c0   :  { %v1624_v58 = vsel %vm1623_vm2, %v2811_v47, %v1620_v55 }
0x11c1   :  { %v1629_v62 = vsel %vm1626_vm3, %v1628_v53, %v1624_v58 }
0x1213   :  { %v1639_v50 = vpop.permute.xlu2 %1638 }
0x1214   :  { %v1641_v51 = vadd.f32 %v1639_v50, %v1635_v44 }
0x1216   :  { %2812 = vtanh.f32 %v1641_v51  ;;  %v1720_v32 = vrot.slane %v1641_v51, 6 }
0x121c   :  { %v2813_v60 = vpop.eup %2812 }
0x121d   :  { %v3514_v63 = vmul.f32 %v2813_v60, %v1629_v62 }
0x121f   :  { %v1644_v1 = vpack.c.bf16 %v3514_v63, %v3514_v63 }
0x1221   :  { %v1646_v3 = vrot.slane %v1644_v1, 3 }
0x1223   :  { %1647 = vrot.lane.b32.xlu0 %v1646_v3, %s2967_s5 }
0x1295   :  { %v1648_v59 = vpop.permute.xlu0 %1647 }
0x1296   :  { %2543 = vmatmul.msk.bf16.vlgmr.msra.gmra.mxu0 %vm237_vm9, %v1648_v59  ;;  %2544 = vmatmul.msk.bf16.vlgmr.msra.gmra.mxu1 %vm237_vm9, %v1648_v59 }
0x1313   :  { %v1661_v4 = vpop.f32.mrf.mxu0  ;;  %v1674_v5 = vpop.f32.mrf.mxu1 }
0x1314   :  { %v1678_v6 = vadd.f32 %v1661_v4, %v3452_v2  ;;  %v1679_v14 = vadd.f32 %v1674_v5, %v3454_v54 }
0x1316   :  { %v2545_v8 = vmul.f32 -1.442695, %v1678_v6  ;;  %v2546_v27 = vmul.f32 -1.442695, %v1679_v14 }
0x1318   :  { %2814 = vpow2.f32 %v2545_v8 }
0x131b   :  { %v1663_v9 = vpop.f32.mrf.mxu0  ;;  %v1676_v10 = vpop.f32.mrf.mxu1 }
0x131e   :  { %v2815_v11 = vpop.eup %2814 }
0x131f   :  { %v1686_v12 = vadd.f32 1.0, %v2815_v11 }
0x1321   :  { %2816 = vrcp.f32 %v1686_v12  ;;  %v1699_v23 = vand.u32 2147483648, %v1686_v12  ;;  %v1697_v21 = vand.u32 2147483647, %v1686_v12  ;;  %vm1693_vm10 = vweird.f32 %v1686_v12 }
0x1322   :  { %2818 = vtanh.f32 %v1679_v14 }
0x1323   :  { %v1700_v29 = vor.u32 1.1754944e-38, %v1699_v23  ;;  %vm1698_vm12 = vcmp.eq.f32.partialorder %v1697_v21, 8.507059e+37  ;;  %2820 = vpow2.f32 %v2546_v27 }
0x1327   :  { %v2817_v13 = vpop.eup %2816 }
0x1328   :  { %v1689_v15 = vmul.f32 %v2817_v13, %v1686_v12  ;;  %vm1694_vm4 = vweird.f32 %v2817_v13  ;;  %v2819_v38 = vpop.eup %2818 }
0x1329   :  { %vm1695_vm11 = vmor %vm1693_vm10, %vm1694_vm4  ;;  %v2821_v17 = vpop.eup %2820 }
0x132a   :  { %v1690_v18 = vsub.f32 1.0, %v1689_v15  ;;  %v1687_v39 = vadd.f32 1.0, %v2821_v17 }
0x132c   :  { %v1691_v20 = vmul.f32 %v2817_v13, %v1690_v18  ;;  %2822 = vrcp.f32 %v1687_v39  ;;  %v1714_v0 = vand.u32 2147483648, %v1687_v39  ;;  %vm1708_vm14 = vweird.f32 %v1687_v39 }
0x132d   :  { %v1712_v41 = vand.u32 2147483647, %v1687_v39 }
0x132e   :  { %v1692_v22 = vadd.f32 %v2817_v13, %v1691_v20  ;;  %v1715_v42 = vor.u32 1.1754944e-38, %v1714_v0 }
0x132f   :  { %vm1713_vm0 = vcmp.eq.f32.partialorder %v1712_v41, 8.507059e+37 }
0x1330   :  { %v1696_v19 = vsel %vm1695_vm11, %v2817_v13, %v1692_v22 }
0x1331   :  { %v1701_v33 = vsel %vm1698_vm12, %v1700_v29, %v1696_v19 }
0x1332   :  { %v1723_v24 = vmul.f32 %v2819_v38, %v1701_v33  ;;  %v1722_v35 = vmul.f32 %v1720_v32, %v1701_v33  ;;  %v2823_v16 = vpop.eup %2822 }
0x1333   :  { %v1704_v40 = vmul.f32 %v2823_v16, %v1687_v39  ;;  %vm1709_vm13 = vweird.f32 %v2823_v16 }
0x1334   :  { %1725 = vrot.lane.b32.xlu1 %v1723_v24, %s2967_s5  ;;  %vm1710_vm15 = vmor %vm1708_vm14, %vm1709_vm13 }
0x1335   :  { %v1705_v37 = vsub.f32 1.0, %v1704_v40 }
0x1337   :  { %v1706_v36 = vmul.f32 %v2823_v16, %v1705_v37 }
0x1339   :  { %v1707_v49 = vadd.f32 %v2823_v16, %v1706_v36 }
0x133b   :  { %v1711_v31 = vsel %vm1710_vm15, %v2823_v16, %v1707_v49 }
0x133c   :  { %v1716_v44 = vsel %vm1713_vm0, %v1715_v42, %v1711_v31 }
0x13a6   :  { %v1726_v28 = vpop.permute.xlu1 %1725 }
0x13a7   :  { %v1728_v34 = vadd.f32 %v1726_v28, %v1722_v35 }
0x13a9   :  { %2824 = vtanh.f32 %v1728_v34  ;;  %v1812_v8 = vrot.slane %v1728_v34, 6 }
0x13af   :  { %v2825_v43 = vpop.eup %2824 }
0x13b0   :  { %v3524_v61 = vmul.f32 %v2825_v43, %v1716_v44 }
0x13b2   :  { %v1731_v45 = vpack.c.bf16 %v3524_v61, %v3524_v61 }
0x13b4   :  { %1733 = vrot.lane.b32.xlu2 %v1731_v45, %s2967_s5 }
0x140e   :  { %v1734_v46 = vpop.permute.xlu2 %1733 }
0x140f   :  { %2547 = vmatmul.msk.bf16.vlgmr.msra.gmra.mxu2 %vm237_vm9, %v1734_v46  ;;  %2548 = vmatmul.msk.bf16.vlgmr.msra.gmra.mxu3 %vm237_vm9, %v1734_v46 }
0x1492   :  { %v1747_v47 = vpop.f32.mrf.mxu2  ;;  %v1760_v48 = vpop.f32.mrf.mxu3 }
0x1493   :  { %v1766_v7 = vrot.slane %v1747_v47, 6  ;;  %v1767_v58 = vrot.slane %v1760_v48, 6 }
0x1495   :  { %v1770_v52 = vadd.f32 %v1766_v7, %v3452_v2  ;;  %v1771_v60 = vadd.f32 %v1767_v58, %v3454_v54 }
0x1497   :  { %v2549_v50 = vmul.f32 -1.442695, %v1770_v52  ;;  %v2550_v14 = vmul.f32 -1.442695, %v1771_v60 }
0x1499   :  { %2826 = vpow2.f32 %v2549_v50 }
0x149a   :  { %v1749_v51 = vpop.f32.mrf.mxu2  ;;  %v1762_v55 = vpop.f32.mrf.mxu3 }
0x149f   :  { %v2827_v56 = vpop.eup %2826 }
0x14a0   :  { %v1778_v57 = vadd.f32 1.0, %v2827_v56 }
0x14a2   :  { %2828 = vrcp.f32 %v1778_v57  ;;  %v1791_v3 = vand.u32 2147483648, %v1778_v57  ;;  %v1789_v4 = vand.u32 2147483647, %v1778_v57  ;;  %vm1785_vm2 = vweird.f32 %v1778_v57 }
0x14a3   :  { %2830 = vtanh.f32 %v1771_v60 }
0x14a4   :  { %v1792_v6 = vor.u32 1.1754944e-38, %v1791_v3  ;;  %vm1790_vm4 = vcmp.eq.f32.partialorder %v1789_v4, 8.507059e+37  ;;  %2832 = vpow2.f32 %v2550_v14 }
0x14a8   :  { %v2829_v53 = vpop.eup %2828 }
0x14a9   :  { %v1781_v62 = vmul.f32 %v2829_v53, %v1778_v57  ;;  %vm1786_vm1 = vweird.f32 %v2829_v53  ;;  %v2831_v10 = vpop.eup %2830 }
0x14aa   :  { %vm1787_vm3 = vmor %vm1785_vm2, %vm1786_vm1  ;;  %v2833_v15 = vpop.eup %2832 }
0x14ab   :  { %v1782_v1 = vsub.f32 1.0, %v1781_v62  ;;  %v1779_v18 = vadd.f32 1.0, %v2833_v15 }
0x14ad   :  { %v1783_v59 = vmul.f32 %v2829_v53, %v1782_v1  ;;  %2834 = vrcp.f32 %v1779_v18  ;;  %v1806_v38 = vand.u32 2147483648, %v1779_v18  ;;  %vm1800_vm11 = vweird.f32 %v1779_v18 }
0x14ae   :  { %v1804_v33 = vand.u32 2147483647, %v1779_v18 }
0x14af   :  { %v1784_v5 = vadd.f32 %v2829_v53, %v1783_v59  ;;  %v1807_v35 = vor.u32 1.1754944e-38, %v1806_v38  ;;  %v2076_v38 = vrot.slane %v3460_v25, 2 }
0x14b0   :  { %vm1805_vm13 = vcmp.eq.f32.partialorder %v1804_v33, 8.507059e+37 }
0x14b1   :  { %v1788_v9 = vsel %vm1787_vm3, %v2829_v53, %v1784_v5 }
0x14b2   :  { %v1793_v11 = vsel %vm1790_vm4, %v1792_v6, %v1788_v9 }
0x14b3   :  { %v1815_v12 = vmul.f32 %v2831_v10, %v1793_v11  ;;  %v1814_v13 = vmul.f32 %v1812_v8, %v1793_v11  ;;  %v2835_v23 = vpop.eup %2834 }
0x14b4   :  { %v1796_v20 = vmul.f32 %v2835_v23, %v1779_v18  ;;  %vm1801_vm10 = vweird.f32 %v2835_v23 }
0x14b5   :  { %1817 = vrot.lane.b32.xlu0 %v1815_v12, %s2967_s5  ;;  %vm1802_vm12 = vmor %vm1800_vm11, %vm1801_vm10 }
0x14b6   :  { %v1797_v21 = vsub.f32 1.0, %v1796_v20 }
0x14b8   :  { %v1798_v22 = vmul.f32 %v2835_v23, %v1797_v21 }
0x14ba   :  { %v1799_v19 = vadd.f32 %v2835_v23, %v1798_v22 }
0x14bc   :  { %v1803_v24 = vsel %vm1802_vm12, %v2835_v23, %v1799_v19  ;;  %v2044_v19 = vrot.slane %v3524_v61, 2 }
0x14bd   :  { %v1808_v17 = vsel %vm1805_vm13, %v1807_v35, %v1803_v24 }
0x1527   :  { %v1818_v29 = vpop.permute.xlu0 %1817 }
0x1528   :  { %v1820_v32 = vadd.f32 %v1818_v29, %v1814_v13 }
0x152a   :  { %2836 = vtanh.f32 %v1820_v32  ;;  %v1905_v56 = vrot.slane %v1820_v32, 6  ;;  %v2052_v32 = vrot.slane %v3514_v63, 6 }
0x1530   :  { %v2837_v27 = vpop.eup %2836 }
0x1531   :  { %v3534_v39 = vmul.f32 %v2837_v27, %v1808_v17 }
0x1533   :  { %v1823_v16 = vpack.c.bf16 %v3534_v39, %v3534_v39 }
0x1535   :  { %v1825_v40 = vrot.slane %v1823_v16, 1 }
0x1537   :  { %1826 = vrot.lane.b32.xlu1 %v1825_v40, %s2967_s5 }
0x15a9   :  { %v1827_v37 = vpop.permute.xlu1 %1826 }
0x15aa   :  { %2551 = vmatmul.msk.bf16.vlgmr.msrb.gmra.mxu0 %vm237_vm9, %v1827_v37  ;;  %2552 = vmatmul.msk.bf16.vlgmr.msrb.gmra.mxu1 %vm237_vm9, %v1827_v37 }
0x1627   :  { %v1840_v36 = vpop.f32.mrf.mxu0  ;;  %v1853_v28 = vpop.f32.mrf.mxu1 }
0x1628   :  { %v1859_v34 = vrot.slane %v1840_v36, 4  ;;  %v1860_v44 = vrot.slane %v1853_v28, 4 }
0x162a   :  { %v1863_v49 = vadd.f32 %v1859_v34, %v3452_v2  ;;  %v1864_v46 = vadd.f32 %v1860_v44, %v3454_v54 }
0x162c   :  { %v2553_v0 = vmul.f32 -1.442695, %v1863_v49  ;;  %v2554_v1 = vmul.f32 -1.442695, %v1864_v46 }
0x162e   :  { %2838 = vpow2.f32 %v2553_v0 }
0x162f   :  { %v1842_v41 = vpop.f32.mrf.mxu0  ;;  %v1855_v31 = vpop.f32.mrf.mxu1 }
0x1634   :  { %v2839_v42 = vpop.eup %2838 }
0x1635   :  { %v1871_v43 = vadd.f32 1.0, %v2839_v42 }
0x1637   :  { %2840 = vrcp.f32 %v1871_v43  ;;  %v1884_v7 = vand.u32 2147483648, %v1871_v43  ;;  %v1882_v50 = vand.u32 2147483647, %v1871_v43  ;;  %vm1878_vm15 = vweird.f32 %v1871_v43 }
0x1638   :  { %2842 = vtanh.f32 %v1864_v46 }
0x1639   :  { %v1885_v55 = vor.u32 1.1754944e-38, %v1884_v7  ;;  %vm1883_vm1 = vcmp.eq.f32.partialorder %v1882_v50, 8.507059e+37  ;;  %2844 = vpow2.f32 %v2554_v1 }
0x163d   :  { %v2841_v45 = vpop.eup %2840 }
0x163e   :  { %v1874_v47 = vmul.f32 %v2841_v45, %v1871_v43  ;;  %vm1879_vm14 = vweird.f32 %v2841_v45  ;;  %v2843_v58 = vpop.eup %2842 }
0x163f   :  { %vm1880_vm0 = vmor %vm1878_vm15, %vm1879_vm14  ;;  %v2845_v3 = vpop.eup %2844 }
0x1640   :  { %v1875_v48 = vsub.f32 1.0, %v1874_v47  ;;  %v1872_v59 = vadd.f32 1.0, %v2845_v3 }
0x1642   :  { %v1876_v52 = vmul.f32 %v2841_v45, %v1875_v48  ;;  %2846 = vrcp.f32 %v1872_v59  ;;  %v1899_v12 = vand.u32 2147483648, %v1872_v59  ;;  %vm1893_vm3 = vweird.f32 %v1872_v59 }
0x1643   :  { %v1897_v13 = vand.u32 2147483647, %v1872_v59 }
0x1644   :  { %v1877_v51 = vadd.f32 %v2841_v45, %v1876_v52  ;;  %v1900_v15 = vor.u32 1.1754944e-38, %v1899_v12  ;;  %v2060_v52 = vrot.slane %v3496_v30, 2 }
0x1645   :  { %vm1898_vm10 = vcmp.eq.f32.partialorder %v1897_v13, 8.507059e+37 }
0x1646   :  { %v1881_v57 = vsel %vm1880_vm0, %v2841_v45, %v1877_v51 }
0x1647   :  { %v1886_v53 = vsel %vm1883_vm1, %v1885_v55, %v1881_v57 }
0x1648   :  { %v1908_v60 = vmul.f32 %v2843_v58, %v1886_v53  ;;  %v1907_v62 = vmul.f32 %v1905_v56, %v1886_v53  ;;  %v2847_v4 = vpop.eup %2846 }
0x1649   :  { %v1889_v5 = vmul.f32 %v2847_v4, %v1872_v59  ;;  %vm1894_vm2 = vweird.f32 %v2847_v4 }
0x164a   :  { %1910 = vrot.lane.b32.xlu2 %v1908_v60, %s2967_s5  ;;  %vm1895_vm4 = vmor %vm1893_vm3, %vm1894_vm2  ;;  %vm2319_vm3 = vcmask 25600  }
0x164b   :  { %v1890_v6 = vsub.f32 1.0, %v1889_v5 }
0x164d   :  { %v1891_v8 = vmul.f32 %v2847_v4, %v1890_v6 }
0x164f   :  { %v1892_v11 = vadd.f32 %v2847_v4, %v1891_v8 }
0x1651   :  { %v1896_v14 = vsel %vm1895_vm4, %v2847_v4, %v1892_v11 }
0x1652   :  { %2010 = vrot.lane.b32.xlu2 %v3460_v25, %s2967_s5  ;;  %v1901_v23 = vsel %vm1898_vm10, %v1900_v15, %v1896_v14 }
0x16a4   :  { %v1911_v9 = vpop.permute.xlu2 %1910 }
0x16a5   :  { %v3546_v10 = vadd.f32 %v1911_v9, %v1907_v62  ;;  %v2068_v9 = vrot.slane %v3478_v26, 6 }
0x16a7   :  { %2848 = vtanh.f32 %v3546_v10  ;;  %v1998_v44 = vrot.slane %v3546_v10, 6 }
0x16ac   :  { %v2011_v10 = vpop.permute.xlu2 %2010 }
0x16ad   :  { %v2849_v18 = vpop.eup %2848 }
0x16ae   :  { %v1915_v20 = vmul.f32 %v2849_v18, %v1901_v23 }
0x16b0   :  { %v2024_v21 = vrot.slane %v1915_v20, 2  ;;  %v1916_v22 = vpack.c.bf16 %v1915_v20, %v1915_v20 }
0x16b2   :  { %2025 = vrot.lane.b32.xlu2 %v2024_v21, %s2967_s5  ;;  %v1918_v29 = vrot.slane %v1916_v22, 2 }
0x16b4   :  { %1919 = vrot.lane.b32.xlu0 %v1918_v29, %s2967_s5 }
0x16ba   :  { %2040 = vrot.lane.b32.xlu2 %v3514_v63, %s2967_s5 }
0x16bc   :  { %2030 = vrot.lane.b32.xlu0 %v3496_v30, %s2967_s5 }
0x16c2   :  { %2053 = vrot.lane.b32.xlu2 %v2052_v32, %s2967_s5 }
0x16c4   :  { %2045 = vrot.lane.b32.xlu0 %v2044_v19, %s2967_s5 }
0x16ca   :  { %2065 = vrot.lane.b32.xlu2 %v1915_v20, %s2967_s5 }
0x16d2   :  { %2077 = vrot.lane.b32.xlu2 %v2076_v38, %s2967_s5 }
0x170c   :  { %v2026_v11 = vpop.permute.xlu2 %2025 }
0x1714   :  { %v2041_v14 = vpop.permute.xlu2 %2040 }
0x171c   :  { %v2054_v23 = vpop.permute.xlu2 %2053 }
0x1726   :  { %v1920_v33 = vpop.permute.xlu0 %1919 }
0x1727   :  { %2555 = vmatmul.msk.bf16.vlgmr.msrb.gmra.mxu2 %vm237_vm9, %v1920_v33  ;;  %2556 = vmatmul.msk.bf16.vlgmr.msrb.gmra.mxu3 %vm237_vm9, %v1920_v33  ;;  %v2066_v33 = vpop.permute.xlu2 %2065 }
0x172e   :  { %v2031_v13 = vpop.permute.xlu0 %2030 }
0x1736   :  { %v2046_v18 = vpop.permute.xlu0 %2045 }
0x1737   :  { %v3595_v32 = vsel %vm969_vm5, %v2041_v14, %v2046_v18 }
0x17aa   :  { %v1933_v24 = vpop.f32.mrf.mxu2  ;;  %v1946_v35 = vpop.f32.mrf.mxu3 }
0x17ab   :  { %v1952_v63 = vrot.slane %v1933_v24, 2  ;;  %v1953_v25 = vrot.slane %v1946_v35, 2 }
0x17ad   :  { %v1956_v27 = vadd.f32 %v1952_v63, %v3452_v2  ;;  %v1957_v34 = vadd.f32 %v1953_v25, %v3454_v54  ;;  %v2034_v54 = vrot.slane %v3534_v39, 6  ;;  %v2668_v63 = vld [vmem:[%s3662_s10] ss:$0 sm:$0xff] }
0x17af   :  { %v2557_v17 = vmul.f32 -1.442695, %v1956_v27  ;;  %v2558_v50 = vmul.f32 -1.442695, %v1957_v34 }
0x17b1   :  { %2850 = vpow2.f32 %v2557_v17 }
0x17b2   :  { %v1935_v16 = vpop.f32.mrf.mxu2  ;;  %v1948_v40 = vpop.f32.mrf.mxu3 }
0x17b7   :  { %v2851_v37 = vpop.eup %2850 }
0x17b8   :  { %v1964_v36 = vadd.f32 1.0, %v2851_v37 }
0x17ba   :  { %2852 = vrcp.f32 %v1964_v36  ;;  %v1977_v41 = vand.u32 2147483648, %v1964_v36  ;;  %v1975_v42 = vand.u32 2147483647, %v1964_v36  ;;  %vm1971_vm12 = vweird.f32 %v1964_v36 }
0x17bb   :  { %2854 = vtanh.f32 %v1957_v34 }
0x17bc   :  { %v1978_v2 = vor.u32 1.1754944e-38, %v1977_v41  ;;  %vm1976_vm14 = vcmp.eq.f32.partialorder %v1975_v42, 8.507059e+37  ;;  %2856 = vpow2.f32 %v2558_v50 }
0x17c0   :  { %v2853_v28 = vpop.eup %2852 }
0x17c1   :  { %v1967_v49 = vmul.f32 %v2853_v28, %v1964_v36  ;;  %vm1972_vm11 = vweird.f32 %v2853_v28  ;;  %v2855_v46 = vpop.eup %2854 }
0x17c2   :  { %vm1973_vm13 = vmor %vm1971_vm12, %vm1972_vm11  ;;  %v2857_v51 = vpop.eup %2856 }
0x17c3   :  { %v1968_v0 = vsub.f32 1.0, %v1967_v49  ;;  %v1965_v55 = vadd.f32 1.0, %v2857_v51 }
0x17c5   :  { %v1969_v31 = vmul.f32 %v2853_v28, %v1968_v0  ;;  %2858 = vrcp.f32 %v1965_v55  ;;  %v1992_v3 = vand.u32 2147483648, %v1965_v55  ;;  %vm1986_vm0 = vweird.f32 %v1965_v55 }
0x17c7   :  { %v1970_v43 = vadd.f32 %v2853_v28, %v1969_v31  ;;  %v1993_v59 = vor.u32 1.1754944e-38, %v1992_v3 }
0x17c9   :  { %v1974_v45 = vsel %vm1973_vm13, %v2853_v28, %v1970_v43  ;;  %v2078_v28 = vpop.permute.xlu2 %2077 }
0x17ca   :  { %v1979_v47 = vsel %vm1976_vm14, %v1978_v2, %v1974_v45 }
0x17cb   :  { %v2001_v48 = vmul.f32 %v2855_v46, %v1979_v47  ;;  %v2000_v7 = vmul.f32 %v1998_v44, %v1979_v47  ;;  %v2859_v56 = vpop.eup %2858 }
0x17cc   :  { %v1982_v57 = vmul.f32 %v2859_v56, %v1965_v55  ;;  %vm1987_vm15 = vweird.f32 %v2859_v56 }
0x17cd   :  { %2003 = vrot.lane.b32.xlu1 %v2001_v48, %s2967_s5  ;;  %vm1988_vm1 = vmor %vm1986_vm0, %vm1987_vm15 }
0x17ce   :  { %v1983_v58 = vsub.f32 1.0, %v1982_v57 }
0x17d0   :  { %v1984_v53 = vmul.f32 %v2859_v56, %v1983_v58 }
0x17d2   :  { %v1985_v1 = vadd.f32 %v2859_v56, %v1984_v53 }
0x17d4   :  { %v1989_v30 = vsel %vm1988_vm1, %v2859_v56, %v1985_v1 }
0x17d5   :  { %2020 = vrot.lane.b32.xlu1 %v3478_v26, %s2967_s5 }
0x17dd   :  { %2035 = vrot.lane.b32.xlu1 %v2034_v54, %s2967_s5 }
0x17e5   :  { %2049 = vrot.lane.b32.xlu1 %v3524_v61, %s2967_s5  ;;  %v1990_v61 = vand.u32 2147483647, %v1965_v55 }
0x17e7   :  { %vm1991_vm2 = vcmp.eq.f32.partialorder %v1990_v61, 8.507059e+37 }
0x17e8   :  { %v1994_v5 = vsel %vm1991_vm2, %v1993_v59, %v1989_v30 }
0x17ed   :  { %2061 = vrot.lane.b32.xlu1 %v2060_v52, %s2967_s5 }
0x183f   :  { %v2004_v60 = vpop.permute.xlu1 %2003 }
0x1840   :  { %v2006_v62 = vadd.f32 %v2004_v60, %v2000_v7 }
0x1842   :  { %2860 = vtanh.f32 %v2006_v62 }
0x1847   :  { %v2021_v12 = vpop.permute.xlu1 %2020 }
0x1848   :  { %v2861_v4 = vpop.eup %2860  ;;  %v3583_v22 = vsel %vm969_vm5, %v2021_v12, %v2026_v11 }
0x1849   :  { %v2008_v6 = vmul.f32 %v2861_v4, %v1994_v5 }
0x184b   :  { %2073 = vrot.lane.b32.xlu1 %v2008_v6, %s2967_s5  ;;  %v2014_v8 = vrot.slane %v2008_v6, 6 }
0x184d   :  { %2015 = vrot.lane.b32.xlu0 %v2014_v8, %s2967_s5 }
0x184f   :  { %v2036_v15 = vpop.permute.xlu1 %2035 }
0x1850   :  { %v3589_v26 = vsel %vm969_vm5, %v2031_v13, %v2036_v15 }
0x1855   :  { %2057 = vrot.lane.b32.xlu0 %v3534_v39, %s2967_s5 }
0x1857   :  { %v2050_v20 = vpop.permute.xlu1 %2049 }
0x1858   :  { %v3609_v36 = vsel %vm969_vm5, %v2050_v20, %v2054_v23 }
0x185d   :  { %2069 = vrot.lane.b32.xlu0 %v2068_v9, %s2967_s5 }
0x185f   :  { %v2062_v24 = vpop.permute.xlu1 %2061 }
0x18bd   :  { %v2074_v37 = vpop.permute.xlu1 %2073 }
0x18be   :  { %v3618_v0 = vsel %vm969_vm5, %v2074_v37, %v2078_v28 }
0x18bf   :  { %v2016_v21 = vpop.permute.xlu0 %2015 }
0x18c0   :  { %v3586_v29 = vsel %vm969_vm5, %v2011_v10, %v2016_v21 }
0x18c1   :  { %v2081_v39 = vsel %vm1033_vm6, %v3586_v29, %v3583_v22 }
0x18c2   :  { %v2082_v19 = vsel %vm1035_vm7, %v2081_v39, %v3589_v26 }
0x18c3   :  { %v2083_v38 = vsel %vm1037_vm8, %v2082_v19, %v3595_v32 }
0x18c4   :  { %2862 = vtanh.f32 %v2083_v38 }
0x18c7   :  { %v2058_v35 = vpop.permute.xlu0 %2057 }
0x18c8   :  { %v3605_v16 = vsel %vm969_vm5, %v2058_v35, %v2062_v24 }
0x18c9   :  { %v2084_v34 = vsel %vm1033_vm6, %v3609_v36, %v3605_v16 }
0x18ca   :  { %v2863_v27 = vpop.eup %2862 }
0x18cb   :  { %v2093_v17 = vmul.f32 %v2863_v27, %v2668_v63 }
0x18cd   :  { %v2095_v40 = vsel %vm237_vm9, %v2093_v17, 0.0 }
0x18ce   :  { %2096 = vadd.xlane.f32.xlu0 %v2095_v40 }
0x18cf   :  { %v2070_v25 = vpop.permute.xlu0 %2069 }
0x18d0   :  { %v3615_v49 = vsel %vm969_vm5, %v2066_v33, %v2070_v25 }
0x18d1   :  { %v2085_v41 = vsel %vm1035_vm7, %v2084_v34, %v3615_v49 }
0x18d2   :  { %v2086_v31 = vsel %vm1037_vm8, %v2085_v41, %v3618_v0 }
0x18d3   :  { %2864 = vtanh.f32 %v2086_v31 }
0x18d9   :  { %v2865_v42 = vpop.eup %2864 }
0x18da   :  { %v2094_v43 = vmul.f32 %v2865_v42, %v2668_v63 }
0x18dc   :  { %v2098_v2 = vsel %vm237_vm9, %v2094_v43, 0.0 }
0x18dd   :  { %2099 = vadd.xlane.f32.xlu1 %v2098_v2 }
0x1941   :  { %v2097_v44 = vpop.xlane.xlu0 %2096 }
0x1942   :  { %v2102_v45 = vrot.slane %v2097_v44, 2  ;;  %v2105_v47 = vrot.slane %v2097_v44, 4  ;;  %v2108_v7 = vrot.slane %v2097_v44, 6 }
0x1944   :  { %v2104_v46 = vmax.f32 %v2097_v44, %v2102_v45 }
0x1946   :  { %v2107_v48 = vmax.f32 %v2104_v46, %v2105_v47 }
0x1948   :  { %v2110_v54 = vmax.f32 %v2107_v48, %v2108_v7 }
0x1950   :  { %v2100_v52 = vpop.xlane.xlu1 %2099 }
0x1951   :  { %v2111_v50 = vmax.f32 %v2110_v54, %v2100_v52  ;;  %v2113_v51 = vrot.slane %v2100_v52, 2  ;;  %v2116_v56 = vrot.slane %v2100_v52, 4  ;;  %v2119_v58 = vrot.slane %v2100_v52, 6 }
0x1953   :  { %v2115_v55 = vmax.f32 %v2111_v50, %v2113_v51 }
0x1955   :  { %v2118_v57 = vmax.f32 %v2115_v55, %v2116_v56  ;;  %v2617_v55 = vld [vmem:[%s3663_s11 + $0x18] sm:$0xff] }
0x1956   :  { %2310 = vmatpush.bf16.msra.mxu0 %v2617_v55 }
0x1957   :  { %v2121_v53 = vmax.f32 %v2118_v57, %v2119_v58  ;;  %v2616_v57 = vld [vmem:[%s3663_s11 + $0x10] sm:$0xff]  ;;  %v2615_v58 = vld [vmem:[%s3663_s11 + $0x8] sm:$0xff] }
0x1959   :  { %v2122_v60 = vsub.f32 %v2097_v44, %v2121_v53  ;;  %v2136_v62 = vrot.slane %v2121_v53, 2  ;;  %v2131_v1 = vrot.slane %v2121_v53, 4  ;;  %v2126_v3 = vrot.slane %v2121_v53, 6 }
0x195a   :  { %v2141_v10 = vsub.f32 %v2100_v52, %v2121_v53  ;;  %2311 = vmatpush.bf16.msra.mxu0 %v2616_v57 }
0x195b   :  { %v2123_v61 = vmul.f32 1.442695, %v2122_v60  ;;  %v2150_v30 = vsub.f32 %v2100_v52, %v2136_v62  ;;  %v2147_v59 = vsub.f32 %v2100_v52, %v2131_v1  ;;  %v2128_v4 = vsub.f32 %v2097_v44, %v2126_v3  ;;  %v2614_v60 = vld [vmem:[%s3663_s11] sm:$0xff] }
0x195c   :  { %v2133_v5 = vsub.f32 %v2097_v44, %v2131_v1  ;;  %v2138_v6 = vsub.f32 %v2097_v44, %v2136_v62  ;;  %v2144_v14 = vsub.f32 %v2100_v52, %v2126_v3  ;;  %v2142_v15 = vmul.f32 1.442695, %v2141_v10 }
0x195d   :  { %2866 = vpow2.f32 %v2123_v61  ;;  %v2151_v8 = vmul.f32 1.442695, %v2150_v30  ;;  %v2148_v9 = vmul.f32 1.442695, %v2147_v59  ;;  %v2129_v11 = vmul.f32 1.442695, %v2128_v4 }
0x195e   :  { %v2134_v12 = vmul.f32 1.442695, %v2133_v5  ;;  %v2139_v13 = vmul.f32 1.442695, %v2138_v6  ;;  %v2145_v23 = vmul.f32 1.442695, %v2144_v14  ;;  %2312 = vmatpush.bf16.msra.mxu0 %v2615_v58 }
0x195f   :  { %2868 = vpow2.f32 %v2151_v8 }
0x1960   :  { %2870 = vpow2.f32 %v2148_v9 }
0x1961   :  { %2872 = vpow2.f32 %v2129_v11 }
0x1962   :  { %2874 = vpow2.f32 %v2134_v12  ;;  %2313 = vmatpush.bf16.msra.mxu0 %v2614_v60 }
0x1963   :  { %v2867_v18 = vpop.eup %2866  ;;  %2876 = vpow2.f32 %v2139_v13 }
0x1964   :  { %2180 = vperm.xlu2 %2665, %v2867_v18   ;;  %2878 = vpow2.f32 %v2142_v15 }
0x1965   :  { %v2869_v20 = vpop.eup %2868  ;;  %2880 = vpow2.f32 %v2145_v23 }
0x1966   :  { %v2871_v21 = vpop.eup %2870  ;;  %2237 = vperm.xlu1 %2667, %v2869_v20   ;;  %v2175_v42 = vrot.slane %v2869_v20, 6 }
0x1967   :  { %v2873_v39 = vpop.eup %2872  ;;  %2228 = vperm.xlu0 %2666, %v2871_v21   ;;  %v2171_v41 = vrot.slane %v2871_v21, 4 }
0x1968   :  { %v2875_v19 = vpop.eup %2874  ;;  %v2154_v38 = vrot.slane %v2873_v39, 2 }
0x1969   :  { %v2877_v33 = vpop.eup %2876  ;;  %v2158_v35 = vrot.slane %v2875_v19, 4 }
0x196a   :  { %v2156_v24 = vadd.f32 %v2867_v18, %v2154_v38  ;;  %v2879_v63 = vpop.eup %2878  ;;  %v2162_v17 = vrot.slane %v2877_v33, 6 }
0x196b   :  { %v2881_v40 = vpop.eup %2880 }
0x196c   :  { %2213 = vperm.xlu2 %2665, %v2879_v63   ;;  %v2160_v27 = vadd.f32 %v2158_v35, %v2156_v24  ;;  %v2167_v25 = vrot.slane %v2881_v40, 2 }
0x196e   :  { %v2164_v37 = vadd.f32 %v2162_v17, %v2160_v27 }
0x1970   :  { %v2165_v28 = vadd.f32 %v2879_v63, %v2164_v37 }
0x1972   :  { %v2169_v34 = vadd.f32 %v2167_v25, %v2165_v28 }
0x1974   :  { %2185 = vperm.xlu2 %2665, %v2873_v39   ;;  %v2173_v31 = vadd.f32 %v2171_v41, %v2169_v34 }
0x1976   :  { %v2177_v43 = vadd.f32 %v2175_v42, %v2173_v31 }
0x1978   :  { %2882 = vrcp.f32 %v2177_v43  ;;  %v2256_v48 = vand.u32 2147483648, %v2177_v43  ;;  %vm2250_vm6 = vweird.f32 %v2177_v43  ;;  %v2254_v7 = vand.u32 2147483647, %v2177_v43 }
0x197a   :  { %v2257_v52 = vor.u32 1.1754944e-38, %v2256_v48  ;;  %vm2255_vm8 = vcmp.eq.f32.partialorder %v2254_v7, 8.507059e+37 }
0x197c   :  { %2194 = vperm.xlu2 %2665, %v2875_v19  }
0x197e   :  { %v2883_v2 = vpop.eup %2882 }
0x197f   :  { %v2246_v44 = vmul.f32 %v2883_v2, %v2177_v43  ;;  %vm2251_vm5 = vweird.f32 %v2883_v2 }
0x1980   :  { %vm2252_vm7 = vmor %vm2250_vm6, %vm2251_vm5 }
0x1981   :  { %v2247_v45 = vsub.f32 1.0, %v2246_v44 }
0x1983   :  { %v2248_v46 = vmul.f32 %v2883_v2, %v2247_v45 }
0x1984   :  { %2203 = vperm.xlu2 %2665, %v2877_v33  }
0x1985   :  { %v2249_v47 = vadd.f32 %v2883_v2, %v2248_v46 }
0x1987   :  { %v2253_v54 = vsel %vm2252_vm7, %v2883_v2, %v2249_v47 }
0x1988   :  { %v2258_v50 = vsel %vm2255_vm8, %v2257_v52, %v2253_v54 }
0x198c   :  { %2219 = vperm.xlu2 %2665, %v2881_v40  }
0x1994   :  { %2262 = vperm.xlu2 %2665, %v2258_v50  }
0x19be   :  { %v2181_v51 = vpop.permute.xlu2 %2180 }
0x19bf   :  { %v2183_v59 = vmul.f32 %v2181_v51, %v3586_v29 }
0x19c6   :  { %v2214_v56 = vpop.permute.xlu2 %2213 }
0x19c7   :  { %v2216_v14 = vmul.f32 %v2214_v56, %v3609_v36  ;;  %v2669_v36 = vld [vmem:[%s3664_s12] ss:$0 sm:$0xff] }
0x19ce   :  { %v2186_v53 = vpop.permute.xlu2 %2185 }
0x19cf   :  { %v2188_v1 = vmul.f32 %v2186_v53, %v3583_v22 }
0x19d1   :  { %v2190_v61 = vrot.slane %v2188_v1, 2 }
0x19d3   :  { %v2192_v6 = vadd.f32 %v2190_v61, %v2183_v59 }
0x19d6   :  { %v2195_v62 = vpop.permute.xlu2 %2194 }
0x19d7   :  { %v2197_v3 = vmul.f32 %v2195_v62, %v3589_v26 }
0x19d8   :  { %v2238_v12 = vpop.permute.xlu1 %2237 }
0x19d9   :  { %v2199_v4 = vrot.slane %v2197_v3, 4  ;;  %v2229_v10 = vpop.permute.xlu0 %2228  ;;  %v2240_v15 = vmul.f32 %v2238_v12, %v3618_v0 }
0x19da   :  { %v2231_v22 = vmul.f32 %v2229_v10, %v3615_v49 }
0x19db   :  { %v2201_v9 = vadd.f32 %v2199_v4, %v2192_v6 }
0x19dc   :  { %v2233_v23 = vrot.slane %v2231_v22, 4 }
0x19de   :  { %v2204_v30 = vpop.permute.xlu2 %2203 }
0x19df   :  { %v2206_v5 = vmul.f32 %v2204_v30, %v3595_v32  ;;  %v2242_v32 = vrot.slane %v2240_v15, 6 }
0x19e1   :  { %v2208_v8 = vrot.slane %v2206_v5, 6 }
0x19e3   :  { %v2210_v11 = vadd.f32 %v2208_v8, %v2201_v9 }
0x19e5   :  { %v2217_v18 = vadd.f32 %v2216_v14, %v2210_v11 }
0x19e6   :  { %v2220_v13 = vpop.permute.xlu2 %2219 }
0x19e7   :  { %v2222_v26 = vmul.f32 %v2220_v13, %v3605_v16 }
0x19e9   :  { %v2224_v29 = vrot.slane %v2222_v26, 2 }
0x19eb   :  { %v2226_v20 = vadd.f32 %v2224_v29, %v2217_v18 }
0x19ed   :  { %v2235_v21 = vadd.f32 %v2233_v23, %v2226_v20 }
0x19ee   :  { %v2263_v19 = vpop.permute.xlu2 %2262 }
0x19ef   :  { %v2244_v39 = vadd.f32 %v2242_v32, %v2235_v21 }
0x19f1   :  { %v2265_v38 = vmul.f32 %v2263_v19, %v2244_v39 }
0x19f3   :  { %v2266_v33 = vpack.c.bf16 %v2265_v38, %v2265_v38 }
0x19f5   :  { %2575 = vmatmul.msk.bf16.vlgmr.msra.gmra.mxu0 %vm237_vm9, %v2266_v33 }
0x1a72   :  { %v2315_v16 = vpop.f32.mrf.mxu0 }
0x1a73   :  { %v2316_v49 = vadd.f32 %v2669_v36, %v2315_v16 }
0x1a75   :  { %2320 = vst.msk [vmem:[#allocation7] sm:$0x3] %vm2319_vm3, %v2316_v49 }
0x1a76   :  { %2331 = dma.vmem_to_hbm [thread:$0]  %s2327_s21, 32, %s2329_s24, [#allocation4]  }
0x1a7a   :  { %v2317_v0 = vpop.f32.mrf.mxu0 }
0x1a7b   :  { %2960 = dma.done.wait [#allocation4], 32  }
0x1a7c   :  { %2961 = vsyncadd [#allocation4], 4294967264 }
0x1a7d   :  { %2336 = vsyncpa [#allocation3], 1 }
0x1a7e   :  { %2337 = vsyncpa [#allocation6], 1 }
0x1a7f   :  { %2338 = vsyncpa [#allocation4], 1 }

</bundles_post_ra>
